<compile_context>
chip_gen: v6e
topology: v6e:2x2x1
jax: 0.10.0
libtpu: 0.0.40
codegen_flags: <defaults>
</compile_context>

<pallas_src>
import functools

import jax
import jax.numpy as jnp
from jax.experimental import pallas as pl
from jax.experimental.pallas import tpu as pltpu


# ----------------------------------------------------------------------------
# Pallas kernel: bidirectional GRU + attention (+ optional final FC)
# ----------------------------------------------------------------------------
def _han_level_kernel(act_name, has_fc, *refs):
    if has_fc:
        (x_ref, wih_ref, bih_ref, whh_ref, bhh_ref,
         linw_ref, linb_ref, ctxw_ref, fcw_ref, fcb_ref,
         out_ref, gi_ref, h_ref) = refs
    else:
        (x_ref, wih_ref, bih_ref, whh_ref, bhh_ref,
         linw_ref, linb_ref, ctxw_ref,
         out_ref, gi_ref, h_ref) = refs
        fcw_ref = fcb_ref = None

    T, _, N = x_ref.shape                    # N = lane-tile of the batch axis
    H2 = whh_ref.shape[1]                    # 2H (fwd|bwd hidden concat)
    H = H2 // 2
    H3, H4, H5, H6 = 3 * H, 4 * H, 5 * H, 6 * H
    f32, bf16 = jnp.float32, jnp.bfloat16

    # --- 1) input projections for all timesteps, fwd|bwd weights fused -------
    #     gi[t] = W_ih_fb (6H, Din) @ x[t] (Din, N) + b_ih_fb   -> (6H, N)
    wih = wih_ref[...]                       # bf16
    bih = bih_ref[...]                       # f32 (6H, 1), broadcasts over lanes
    for t in range(T):
        gi_ref[t] = jnp.dot(wih, x_ref[t], preferred_element_type=f32) + bih

    # --- 2) fused forward / backward GRU recurrence (fully unrolled) ---------
    #     One block-diagonal hidden matmul per step covers both directions:
    #       gh = [[Whh_f, 0], [0, Whh_b]] @ [hf; hb] + [bhh_f; bhh_b]
    whh = whh_ref[...]                       # bf16 (6H, 2H) block-diagonal
    bhh = bhh_ref[...]                       # f32  (6H, 1)

    hf = jnp.zeros((H, N), f32)
    hb = jnp.zeros((H, N), f32)
    for i in range(T):
        tf = i
        tb = T - 1 - i
        gif = gi_ref[tf, 0:H3, :]            # forward input gates at time tf
        gib = gi_ref[tb, H3:H6, :]           # backward input gates at time tb

        h_cat = jnp.concatenate([hf, hb], axis=0).astype(bf16)   # (2H, N)
        gh = jnp.dot(whh, h_cat, preferred_element_type=f32) + bhh  # (6H, N)

        # torch.nn.GRU gate order (r, z, n); elementwise math in f32.
        rf = jax.nn.sigmoid(gif[0:H] + gh[0:H])
        zf = jax.nn.sigmoid(gif[H:2 * H] + gh[H:2 * H])
        nf = jnp.tanh(gif[2 * H:H3] + rf * gh[2 * H:H3])
        hf = (1.0 - zf) * nf + zf * hf

        rb = jax.nn.sigmoid(gib[0:H] + gh[H3:H4])
        zb = jax.nn.sigmoid(gib[H:2 * H] + gh[H4:H5])
        nb = jnp.tanh(gib[2 * H:H3] + rb * gh[H5:H6])
        hb = (1.0 - zb) * nb + zb * hb

        h_ref[tf, 0:H, :] = hf               # write fwd half of timestep tf
        h_ref[tb, H:H2, :] = hb              # write bwd half of timestep tb

    # --- 3) attention over time (lane-dense MXU matmuls) ---------------------
    linw = linw_ref[...]
    linb = linb_ref[...]
    ctxw = ctxw_ref[...]
    score_rows = []
    for t in range(T):
        h_t = h_ref[t]                                                  # (2H, N)
        u_t = jnp.dot(linw, h_t.astype(bf16), preferred_element_type=f32) + linb
        u_t = jnp.tanh(u_t) if act_name == "tanh" else jnp.maximum(u_t, 0.0)
        score_rows.append(
            jnp.dot(ctxw, u_t.astype(bf16), preferred_element_type=f32))  # (1, N)
    scores = jnp.concatenate(score_rows, axis=0)                          # (T, N)

    m = jnp.max(scores, axis=0, keepdims=True)
    e = jnp.exp(scores - m)
    attn = e * pl.reciprocal(jnp.sum(e, axis=0, keepdims=True), approx=True)

    h_all = h_ref[...]                                                    # (T, 2H, N)
    ctx_vec = jnp.sum(h_all * attn[:, None, :], axis=0)                   # (2H, N)

    # --- 4) output ------------------------------------------------------------
    if has_fc:
        out_ref[...] = (jnp.dot(fcw_ref[...], ctx_vec.astype(bf16),
                                preferred_element_type=f32) + fcb_ref[...])
    else:
        out_ref[...] = ctx_vec


def _run_level(x, p, act_name, fc=None, *, n_block=512):
    """x: (T, Din, N) f32  ->  (out_dim, N) f32  (out_dim = 2H, or n_class with fc)."""
    T, Din, N = x.shape
    H = p["w_hh_f"].shape[1]
    out_dim = (2 * H) if fc is None else fc["w"].shape[0]

    # Grid-tile the batch (lane) axis; pad to a multiple of the block if needed.
    if N <= n_block:
        n_blk, n_pad = N, N
    else:
        n_blk = n_block
        n_pad = ((N + n_blk - 1) // n_blk) * n_blk
        x = jnp.pad(x, ((0, 0), (0, 0), (0, n_pad - N)))

    # Fuse fwd/bwd hidden-to-hidden weights into one block-diagonal matrix.
    zeros = jnp.zeros((3 * H, H), jnp.float32)
    whh_fb = jnp.concatenate(
        [jnp.concatenate([p["w_hh_f"], zeros], axis=1),
         jnp.concatenate([zeros, p["w_hh_b"]], axis=1)], axis=0)     # (6H, 2H)
    bhh_fb = jnp.concatenate([p["b_hh_f"], p["b_hh_b"]], axis=0)     # (6H, 1)

    bf16 = jnp.bfloat16
    inputs = [
        x.astype(bf16),
        p["w_ih"].astype(bf16), p["b_ih"],
        whh_fb.astype(bf16), bhh_fb,
        p["lin_w"].astype(bf16), p["lin_b"],
        p["ctx_w"].astype(bf16),
    ]
    if fc is not None:
        inputs += [fc["w"].astype(bf16), fc["b"]]

    def whole(a):
        nd = a.ndim
        return pl.BlockSpec(a.shape, lambda *_: (0,) * nd)

    in_specs = [pl.BlockSpec((T, Din, n_blk), lambda i: (0, 0, i))]
    in_specs += [whole(a) for a in inputs[1:]]

    kernel = functools.partial(_han_level_kernel, act_name, fc is not None)

    out = pl.pallas_call(
        kernel,
        out_shape=jax.ShapeDtypeStruct((out_dim, n_pad), jnp.float32),
        grid=(n_pad // n_blk,),
        in_specs=in_specs,
        out_specs=pl.BlockSpec((out_dim, n_blk), lambda i: (0, i)),
        scratch_shapes=[
            pltpu.VMEM((T, 6 * H, n_blk), jnp.float32),   # fused fwd|bwd input gates
            pltpu.VMEM((T, 2 * H, n_blk), jnp.float32),   # fwd|bwd hidden states
        ],
        compiler_params=pltpu.CompilerParams(
            dimension_semantics=("parallel",),
            vmem_limit_bytes=48 * 1024 * 1024,
        ),
    )(*inputs)
    return out[:, :N] if n_pad != N else out


# ----------------------------------------------------------------------------
# HAN forward
# ----------------------------------------------------------------------------
def han_forward(x_tokens, params):
    # x_tokens: (B, S, W) int32 token ids (PyTorch: x.permute(1,2,0) -> (S, W, B)).
    B, S, W = x_tokens.shape
    emb = params["embed"][x_tokens]                               # (B, S, W, D) gather (glue)
    D = emb.shape[-1]
    # Word level: fold (S, B) into one lane-axis batch of size S*B, time-major.
    x_word = jnp.transpose(emb, (2, 3, 1, 0)).reshape(W, D, S * B)   # (W, D, S*B)
    word_out = _run_level(x_word, params["word"], "tanh")            # (2Hw, S*B)
    Hw2 = word_out.shape[0]
    # Sentence level input: (S, 2Hw, B) == word_attentions in the transposed layout.
    sent_in = jnp.transpose(word_out.reshape(Hw2, S, B), (1, 0, 2))
    logits = _run_level(sent_in, params["sent"], "relu", fc=params["fc"])  # (C, B)
    return logits.T                                                  # (B, C)


# ----------------------------------------------------------------------------
# Deterministic parameter init (shapes follow the PyTorch module's __init__,
# kept in the (out_features, in_features) orientation used by the kernel).
# ----------------------------------------------------------------------------
def init_params(key, vocab=50, words_dim=16, word_hidden=8, sent_hidden=8, n_class=4):
    keys = iter(jax.random.split(key, 32))

    def u(shape, lo, hi):
        return jax.random.uniform(next(keys), shape, jnp.float32, lo, hi)

    D, Hw, Hs, C = words_dim, word_hidden, sent_hidden, n_class

    embed = u((vocab, D), -0.25, 0.25)                  # pre_embed ('static' mode)

    def gru_level(din, h, ctx_scale):
        k = 1.0 / (h ** 0.5)
        klin = 1.0 / ((2 * h) ** 0.5)
        w_ih_f = u((3 * h, din), -k, k)
        b_ih_f = u((3 * h, 1), -k, k)
        w_ih_b = u((3 * h, din), -k, k)
        b_ih_b = u((3 * h, 1), -k, k)
        return dict(
            w_ih=jnp.concatenate([w_ih_f, w_ih_b], axis=0),   # (6h, din) fwd|bwd fused
            b_ih=jnp.concatenate([b_ih_f, b_ih_b], axis=0),   # (6h, 1)
            w_hh_f=u((3 * h, h), -k, k), b_hh_f=u((3 * h, 1), -k, k),
            w_hh_b=u((3 * h, h), -k, k), b_hh_b=u((3 * h, 1), -k, k),
            lin_w=u((2 * h, 2 * h), -klin, klin),
            lin_b=u((2 * h, 1), -klin, klin),
            ctx_w=u((1, 2 * h), -ctx_scale, ctx_scale),        # context_weights^T
        )

    word = gru_level(D, Hw, 0.25)
    sent = gru_level(2 * Hw, Hs, 0.1)
    kfc = 1.0 / ((2 * Hs) ** 0.5)
    fc = dict(w=u((C, 2 * Hs), -kfc, kfc), b=u((C, 1), -kfc, kfc))

    return dict(embed=embed, word=word, sent=sent, fc=fc)


if __name__ == "__main__":
    key = jax.random.PRNGKey(0)
    pkey, xkey = jax.random.split(key)

    VOCAB, D, HW, HS, C = 50, 16, 8, 8, 4
    B, S, W = 2, 3, 5

    params = init_params(pkey, vocab=VOCAB, words_dim=D,
                         word_hidden=HW, sent_hidden=HS, n_class=C)
    x_tokens = jax.random.randint(xkey, (B, S, W), 0, VOCAB, dtype=jnp.int32)

    logits = jax.jit(han_forward)(x_tokens, params)
    logits = jax.block_until_ready(logits)

    assert logits.shape == (B, C), logits.shape
    assert bool(jnp.all(jnp.isfinite(logits)))
    print("KERNEL_OK")
</pallas_src>

<mosaic_0001>
module attributes {stable_mosaic.version = 11 : i64} {
  func.func @_han_level_kernel(%arg0: i32, %arg1: memref<5x16x6xbf16, #tpu.memory_space<vmem>>, %arg2: memref<48x16xbf16, #tpu.memory_space<vmem>>, %arg3: memref<48x1xf32, #tpu.memory_space<vmem>>, %arg4: memref<48x16xbf16, #tpu.memory_space<vmem>>, %arg5: memref<48x1xf32, #tpu.memory_space<vmem>>, %arg6: memref<16x16xbf16, #tpu.memory_space<vmem>>, %arg7: memref<16x1xf32, #tpu.memory_space<vmem>>, %arg8: memref<1x16xbf16, #tpu.memory_space<vmem>>, %arg9: memref<16x6xf32, #tpu.memory_space<vmem>>, %arg10: memref<5x48x6xf32, #tpu.memory_space<vmem>>, %arg11: memref<5x16x6xf32, #tpu.memory_space<vmem>>) attributes {dimension_semantics = [#tpu.dimension_semantics<parallel>], iteration_bounds = array<i64: 1>, scalar_prefetch = 0 : i64, scratch_operands = 2 : i64, tpu.core_type = #tpu.core_type<tc>, window_params = [{transform_indices = @transform_0, window_bounds = array<i64: 5, 16, 6>}, {pipeline_mode = #tpu.pipeline_mode<synchronous>, transform_indices = @transform_1, window_bounds = array<i64: 48, 16>}, {pipeline_mode = #tpu.pipeline_mode<synchronous>, transform_indices = @transform_2, window_bounds = array<i64: 48, 1>}, {pipeline_mode = #tpu.pipeline_mode<synchronous>, transform_indices = @transform_3, window_bounds = array<i64: 48, 16>}, {pipeline_mode = #tpu.pipeline_mode<synchronous>, transform_indices = @transform_4, window_bounds = array<i64: 48, 1>}, {pipeline_mode = #tpu.pipeline_mode<synchronous>, transform_indices = @transform_5, window_bounds = array<i64: 16, 16>}, {pipeline_mode = #tpu.pipeline_mode<synchronous>, transform_indices = @transform_6, window_bounds = array<i64: 16, 1>}, {pipeline_mode = #tpu.pipeline_mode<synchronous>, transform_indices = @transform_7, window_bounds = array<i64: 1, 16>}, {transform_indices = @transform_8, window_bounds = array<i64: 16, 6>}]} {
    %c0 = arith.constant 0 : index
    %c0_0 = arith.constant 0 : index
    %0 = vector.load %arg2[%c0, %c0_0] : memref<48x16xbf16, #tpu.memory_space<vmem>>, vector<48x16xbf16>
    %c0_1 = arith.constant 0 : index
    %c0_2 = arith.constant 0 : index
    %1 = vector.load %arg3[%c0_1, %c0_2] : memref<48x1xf32, #tpu.memory_space<vmem>>, vector<48x1xf32>
    %c0_3 = arith.constant 0 : index
    %c0_4 = arith.constant 0 : index
    %c0_5 = arith.constant 0 : index
    %2 = vector.load %arg1[%c0_3, %c0_4, %c0_5] : memref<5x16x6xbf16, #tpu.memory_space<vmem>>, vector<1x16x6xbf16>
    %3 = vector.shape_cast %2 : vector<1x16x6xbf16> to vector<16x6xbf16>
    %cst = arith.constant dense<0.000000e+00> : vector<48x6xf32>
    %4 = tpu.matmul %0, %3, %cst {dimension_numbers = #tpu.dot_dimension_numbers<[1], [0], [0], [1], [0, 0, 1, 1], [], []>} : vector<48x16xbf16>, vector<16x6xbf16>, vector<48x6xf32> -> vector<48x6xf32>
    %5 = vector.broadcast %1 : vector<48x1xf32> to vector<48x6xf32>
    %6 = arith.addf %4, %5 : vector<48x6xf32>
    %c0_6 = arith.constant 0 : index
    %c0_7 = arith.constant 0 : index
    %c0_8 = arith.constant 0 : index
    %7 = vector.load %arg10[%c0_6, %c0_7, %c0_8] : memref<5x48x6xf32, #tpu.memory_space<vmem>>, vector<1x48x6xf32>
    %8 = vector.shape_cast %7 : vector<1x48x6xf32> to vector<48x6xf32>
    %9 = vector.shape_cast %6 : vector<48x6xf32> to vector<1x48x6xf32>
    tpu.vector_store %arg10[%c0_6, %c0_7, %c0_8], %9 {strides = array<i32>} : memref<5x48x6xf32, #tpu.memory_space<vmem>>, vector<1x48x6xf32>,
    %c1 = arith.constant 1 : index
    %c0_9 = arith.constant 0 : index
    %c0_10 = arith.constant 0 : index
    %10 = vector.load %arg1[%c1, %c0_9, %c0_10] : memref<5x16x6xbf16, #tpu.memory_space<vmem>>, vector<1x16x6xbf16>
    %11 = vector.shape_cast %10 : vector<1x16x6xbf16> to vector<16x6xbf16>
    %cst_11 = arith.constant dense<0.000000e+00> : vector<48x6xf32>
    %12 = tpu.matmul %0, %11, %cst_11 {dimension_numbers = #tpu.dot_dimension_numbers<[1], [0], [0], [1], [0, 0, 1, 1], [], []>} : vector<48x16xbf16>, vector<16x6xbf16>, vector<48x6xf32> -> vector<48x6xf32>
    %13 = vector.broadcast %1 : vector<48x1xf32> to vector<48x6xf32>
    %14 = arith.addf %12, %13 : vector<48x6xf32>
    %c1_12 = arith.constant 1 : index
    %c0_13 = arith.constant 0 : index
    %c0_14 = arith.constant 0 : index
    %15 = vector.load %arg10[%c1_12, %c0_13, %c0_14] : memref<5x48x6xf32, #tpu.memory_space<vmem>>, vector<1x48x6xf32>
    %16 = vector.shape_cast %15 : vector<1x48x6xf32> to vector<48x6xf32>
    %17 = vector.shape_cast %14 : vector<48x6xf32> to vector<1x48x6xf32>
    tpu.vector_store %arg10[%c1_12, %c0_13, %c0_14], %17 {strides = array<i32>} : memref<5x48x6xf32, #tpu.memory_space<vmem>>, vector<1x48x6xf32>,
    %c2 = arith.constant 2 : index
    %c0_15 = arith.constant 0 : index
    %c0_16 = arith.constant 0 : index
    %18 = vector.load %arg1[%c2, %c0_15, %c0_16] : memref<5x16x6xbf16, #tpu.memory_space<vmem>>, vector<1x16x6xbf16>
    %19 = vector.shape_cast %18 : vector<1x16x6xbf16> to vector<16x6xbf16>
    %cst_17 = arith.constant dense<0.000000e+00> : vector<48x6xf32>
    %20 = tpu.matmul %0, %19, %cst_17 {dimension_numbers = #tpu.dot_dimension_numbers<[1], [0], [0], [1], [0, 0, 1, 1], [], []>} : vector<48x16xbf16>, vector<16x6xbf16>, vector<48x6xf32> -> vector<48x6xf32>
    %21 = vector.broadcast %1 : vector<48x1xf32> to vector<48x6xf32>
    %22 = arith.addf %20, %21 : vector<48x6xf32>
    %c2_18 = arith.constant 2 : index
    %c0_19 = arith.constant 0 : index
    %c0_20 = arith.constant 0 : index
    %23 = vector.load %arg10[%c2_18, %c0_19, %c0_20] : memref<5x48x6xf32, #tpu.memory_space<vmem>>, vector<1x48x6xf32>
    %24 = vector.shape_cast %23 : vector<1x48x6xf32> to vector<48x6xf32>
    %25 = vector.shape_cast %22 : vector<48x6xf32> to vector<1x48x6xf32>
    tpu.vector_store %arg10[%c2_18, %c0_19, %c0_20], %25 {strides = array<i32>} : memref<5x48x6xf32, #tpu.memory_space<vmem>>, vector<1x48x6xf32>,
    %c3 = arith.constant 3 : index
    %c0_21 = arith.constant 0 : index
    %c0_22 = arith.constant 0 : index
    %26 = vector.load %arg1[%c3, %c0_21, %c0_22] : memref<5x16x6xbf16, #tpu.memory_space<vmem>>, vector<1x16x6xbf16>
    %27 = vector.shape_cast %26 : vector<1x16x6xbf16> to vector<16x6xbf16>
    %cst_23 = arith.constant dense<0.000000e+00> : vector<48x6xf32>
    %28 = tpu.matmul %0, %27, %cst_23 {dimension_numbers = #tpu.dot_dimension_numbers<[1], [0], [0], [1], [0, 0, 1, 1], [], []>} : vector<48x16xbf16>, vector<16x6xbf16>, vector<48x6xf32> -> vector<48x6xf32>
    %29 = vector.broadcast %1 : vector<48x1xf32> to vector<48x6xf32>
    %30 = arith.addf %28, %29 : vector<48x6xf32>
    %c3_24 = arith.constant 3 : index
    %c0_25 = arith.constant 0 : index
    %c0_26 = arith.constant 0 : index
    %31 = vector.load %arg10[%c3_24, %c0_25, %c0_26] : memref<5x48x6xf32, #tpu.memory_space<vmem>>, vector<1x48x6xf32>
    %32 = vector.shape_cast %31 : vector<1x48x6xf32> to vector<48x6xf32>
    %33 = vector.shape_cast %30 : vector<48x6xf32> to vector<1x48x6xf32>
    tpu.vector_store %arg10[%c3_24, %c0_25, %c0_26], %33 {strides = array<i32>} : memref<5x48x6xf32, #tpu.memory_space<vmem>>, vector<1x48x6xf32>,
    %c4 = arith.constant 4 : index
    %c0_27 = arith.constant 0 : index
    %c0_28 = arith.constant 0 : index
    %34 = vector.load %arg1[%c4, %c0_27, %c0_28] : memref<5x16x6xbf16, #tpu.memory_space<vmem>>, vector<1x16x6xbf16>
    %35 = vector.shape_cast %34 : vector<1x16x6xbf16> to vector<16x6xbf16>
    %cst_29 = arith.constant dense<0.000000e+00> : vector<48x6xf32>
    %36 = tpu.matmul %0, %35, %cst_29 {dimension_numbers = #tpu.dot_dimension_numbers<[1], [0], [0], [1], [0, 0, 1, 1], [], []>} : vector<48x16xbf16>, vector<16x6xbf16>, vector<48x6xf32> -> vector<48x6xf32>
    %37 = vector.broadcast %1 : vector<48x1xf32> to vector<48x6xf32>
    %38 = arith.addf %36, %37 : vector<48x6xf32>
    %c4_30 = arith.constant 4 : index
    %c0_31 = arith.constant 0 : index
    %c0_32 = arith.constant 0 : index
    %39 = vector.load %arg10[%c4_30, %c0_31, %c0_32] : memref<5x48x6xf32, #tpu.memory_space<vmem>>, vector<1x48x6xf32>
    %40 = vector.shape_cast %39 : vector<1x48x6xf32> to vector<48x6xf32>
    %41 = vector.shape_cast %38 : vector<48x6xf32> to vector<1x48x6xf32>
    tpu.vector_store %arg10[%c4_30, %c0_31, %c0_32], %41 {strides = array<i32>} : memref<5x48x6xf32, #tpu.memory_space<vmem>>, vector<1x48x6xf32>,
    %c0_33 = arith.constant 0 : index
    %c0_34 = arith.constant 0 : index
    %42 = vector.load %arg4[%c0_33, %c0_34] : memref<48x16xbf16, #tpu.memory_space<vmem>>, vector<48x16xbf16>
    %c0_35 = arith.constant 0 : index
    %c0_36 = arith.constant 0 : index
    %43 = vector.load %arg5[%c0_35, %c0_36] : memref<48x1xf32, #tpu.memory_space<vmem>>, vector<48x1xf32>
    %cst_37 = arith.constant 0.000000e+00 : f32
    %44 = vector.broadcast %cst_37 : f32 to vector<8x6xf32>
    %cst_38 = arith.constant 0.000000e+00 : f32
    %45 = vector.broadcast %cst_38 : f32 to vector<8x6xf32>
    %c0_39 = arith.constant 0 : index
    %c0_40 = arith.constant 0 : index
    %c0_41 = arith.constant 0 : index
    %46 = vector.load %arg10[%c0_39, %c0_40, %c0_41] : memref<5x48x6xf32, #tpu.memory_space<vmem>>, vector<1x24x6xf32>
    %47 = vector.shape_cast %46 : vector<1x24x6xf32> to vector<24x6xf32>
    %c4_42 = arith.constant 4 : index
    %c24 = arith.constant 24 : index
    %c0_43 = arith.constant 0 : index
    %48 = vector.load %arg10[%c4_42, %c24, %c0_43] : memref<5x48x6xf32, #tpu.memory_space<vmem>>, vector<1x24x6xf32>
    %49 = vector.shape_cast %48 : vector<1x24x6xf32> to vector<24x6xf32>
    %50 = tpu.concatenate %44, %45 in 0 : vector<8x6xf32>, vector<8x6xf32> -> vector<16x6xf32>
    %51 = arith.truncf %50 : vector<16x6xf32> to vector<16x6xbf16>
    %cst_44 = arith.constant dense<0.000000e+00> : vector<48x6xf32>
    %52 = tpu.matmul %42, %51, %cst_44 {dimension_numbers = #tpu.dot_dimension_numbers<[1], [0], [0], [1], [0, 0, 1, 1], [], []>} : vector<48x16xbf16>, vector<16x6xbf16>, vector<48x6xf32> -> vector<48x6xf32>
    %53 = vector.broadcast %43 : vector<48x1xf32> to vector<48x6xf32>
    %54 = arith.addf %52, %53 : vector<48x6xf32>
    %55 = vector.extract_strided_slice %47 {offsets = [0, 0], sizes = [8, 6], strides = [1, 1]} : vector<24x6xf32> to vector<8x6xf32>
    %56 = vector.extract_strided_slice %54 {offsets = [0, 0], sizes = [8, 6], strides = [1, 1]} : vector<48x6xf32> to vector<8x6xf32>
    %57 = arith.addf %55, %56 : vector<8x6xf32>
    %58 = arith.negf %57 : vector<8x6xf32>
    %59 = math.exp %58 : vector<8x6xf32>
    %cst_45 = arith.constant 1.000000e+00 : f32
    %60 = vector.broadcast %cst_45 : f32 to vector<8x6xf32>
    %61 = arith.addf %60, %59 : vector<8x6xf32>
    %62 = arith.divf %60, %61 : vector<8x6xf32>
    %63 = vector.extract_strided_slice %47 {offsets = [8, 0], sizes = [8, 6], strides = [1, 1]} : vector<24x6xf32> to vector<8x6xf32>
    %64 = vector.extract_strided_slice %54 {offsets = [8, 0], sizes = [8, 6], strides = [1, 1]} : vector<48x6xf32> to vector<8x6xf32>
    %65 = arith.addf %63, %64 : vector<8x6xf32>
    %66 = arith.negf %65 : vector<8x6xf32>
    %67 = math.exp %66 : vector<8x6xf32>
    %cst_46 = arith.constant 1.000000e+00 : f32
    %68 = vector.broadcast %cst_46 : f32 to vector<8x6xf32>
    %69 = arith.addf %68, %67 : vector<8x6xf32>
    %70 = arith.divf %68, %69 : vector<8x6xf32>
    %71 = vector.extract_strided_slice %47 {offsets = [16, 0], sizes = [8, 6], strides = [1, 1]} : vector<24x6xf32> to vector<8x6xf32>
    %72 = vector.extract_strided_slice %54 {offsets = [16, 0], sizes = [8, 6], strides = [1, 1]} : vector<48x6xf32> to vector<8x6xf32>
    %73 = arith.mulf %62, %72 : vector<8x6xf32>
    %74 = arith.addf %71, %73 : vector<8x6xf32>
    %75 = math.tanh %74 : vector<8x6xf32>
    %cst_47 = arith.constant 1.000000e+00 : f32
    %76 = vector.broadcast %cst_47 : f32 to vector<8x6xf32>
    %77 = arith.subf %76, %70 : vector<8x6xf32>
    %78 = arith.mulf %77, %75 : vector<8x6xf32>
    %79 = arith.mulf %70, %44 : vector<8x6xf32>
    %80 = arith.addf %78, %79 : vector<8x6xf32>
    %81 = vector.extract_strided_slice %49 {offsets = [0, 0], sizes = [8, 6], strides = [1, 1]} : vector<24x6xf32> to vector<8x6xf32>
    %82 = vector.extract_strided_slice %54 {offsets = [24, 0], sizes = [8, 6], strides = [1, 1]} : vector<48x6xf32> to vector<8x6xf32>
    %83 = arith.addf %81, %82 : vector<8x6xf32>
    %84 = arith.negf %83 : vector<8x6xf32>
    %85 = math.exp %84 : vector<8x6xf32>
    %cst_48 = arith.constant 1.000000e+00 : f32
    %86 = vector.broadcast %cst_48 : f32 to vector<8x6xf32>
    %87 = arith.addf %86, %85 : vector<8x6xf32>
    %88 = arith.divf %86, %87 : vector<8x6xf32>
    %89 = vector.extract_strided_slice %49 {offsets = [8, 0], sizes = [8, 6], strides = [1, 1]} : vector<24x6xf32> to vector<8x6xf32>
    %90 = vector.extract_strided_slice %54 {offsets = [32, 0], sizes = [8, 6], strides = [1, 1]} : vector<48x6xf32> to vector<8x6xf32>
    %91 = arith.addf %89, %90 : vector<8x6xf32>
    %92 = arith.negf %91 : vector<8x6xf32>
    %93 = math.exp %92 : vector<8x6xf32>
    %cst_49 = arith.constant 1.000000e+00 : f32
    %94 = vector.broadcast %cst_49 : f32 to vector<8x6xf32>
    %95 = arith.addf %94, %93 : vector<8x6xf32>
    %96 = arith.divf %94, %95 : vector<8x6xf32>
    %97 = vector.extract_strided_slice %49 {offsets = [16, 0], sizes = [8, 6], strides = [1, 1]} : vector<24x6xf32> to vector<8x6xf32>
    %98 = vector.extract_strided_slice %54 {offsets = [40, 0], sizes = [8, 6], strides = [1, 1]} : vector<48x6xf32> to vector<8x6xf32>
    %99 = arith.mulf %88, %98 : vector<8x6xf32>
    %100 = arith.addf %97, %99 : vector<8x6xf32>
    %101 = math.tanh %100 : vector<8x6xf32>
    %cst_50 = arith.constant 1.000000e+00 : f32
    %102 = vector.broadcast %cst_50 : f32 to vector<8x6xf32>
    %103 = arith.subf %102, %96 : vector<8x6xf32>
    %104 = arith.mulf %103, %101 : vector<8x6xf32>
    %105 = arith.mulf %96, %45 : vector<8x6xf32>
    %106 = arith.addf %104, %105 : vector<8x6xf32>
    %c0_51 = arith.constant 0 : index
    %c0_52 = arith.constant 0 : index
    %c0_53 = arith.constant 0 : index
    %107 = vector.load %arg11[%c0_51, %c0_52, %c0_53] : memref<5x16x6xf32, #tpu.memory_space<vmem>>, vector<1x8x6xf32>
    %108 = vector.shape_cast %107 : vector<1x8x6xf32> to vector<8x6xf32>
    %109 = vector.shape_cast %80 : vector<8x6xf32> to vector<1x8x6xf32>
    tpu.vector_store %arg11[%c0_51, %c0_52, %c0_53], %109 {strides = array<i32>} : memref<5x16x6xf32, #tpu.memory_space<vmem>>, vector<1x8x6xf32>,
    %c4_54 = arith.constant 4 : index
    %c8 = arith.constant 8 : index
    %c0_55 = arith.constant 0 : index
    %110 = vector.load %arg11[%c4_54, %c8, %c0_55] : memref<5x16x6xf32, #tpu.memory_space<vmem>>, vector<1x8x6xf32>
    %111 = vector.shape_cast %110 : vector<1x8x6xf32> to vector<8x6xf32>
    %112 = vector.shape_cast %106 : vector<8x6xf32> to vector<1x8x6xf32>
    tpu.vector_store %arg11[%c4_54, %c8, %c0_55], %112 {strides = array<i32>} : memref<5x16x6xf32, #tpu.memory_space<vmem>>, vector<1x8x6xf32>,
    %c1_56 = arith.constant 1 : index
    %c0_57 = arith.constant 0 : index
    %c0_58 = arith.constant 0 : index
    %113 = vector.load %arg10[%c1_56, %c0_57, %c0_58] : memref<5x48x6xf32, #tpu.memory_space<vmem>>, vector<1x24x6xf32>
    %114 = vector.shape_cast %113 : vector<1x24x6xf32> to vector<24x6xf32>
    %c3_59 = arith.constant 3 : index
    %c24_60 = arith.constant 24 : index
    %c0_61 = arith.constant 0 : index
    %115 = vector.load %arg10[%c3_59, %c24_60, %c0_61] : memref<5x48x6xf32, #tpu.memory_space<vmem>>, vector<1x24x6xf32>
    %116 = vector.shape_cast %115 : vector<1x24x6xf32> to vector<24x6xf32>
    %117 = tpu.concatenate %80, %106 in 0 : vector<8x6xf32>, vector<8x6xf32> -> vector<16x6xf32>
    %118 = arith.truncf %117 : vector<16x6xf32> to vector<16x6xbf16>
    %cst_62 = arith.constant dense<0.000000e+00> : vector<48x6xf32>
    %119 = tpu.matmul %42, %118, %cst_62 {dimension_numbers = #tpu.dot_dimension_numbers<[1], [0], [0], [1], [0, 0, 1, 1], [], []>} : vector<48x16xbf16>, vector<16x6xbf16>, vector<48x6xf32> -> vector<48x6xf32>
    %120 = vector.broadcast %43 : vector<48x1xf32> to vector<48x6xf32>
    %121 = arith.addf %119, %120 : vector<48x6xf32>
    %122 = vector.extract_strided_slice %114 {offsets = [0, 0], sizes = [8, 6], strides = [1, 1]} : vector<24x6xf32> to vector<8x6xf32>
    %123 = vector.extract_strided_slice %121 {offsets = [0, 0], sizes = [8, 6], strides = [1, 1]} : vector<48x6xf32> to vector<8x6xf32>
    %124 = arith.addf %122, %123 : vector<8x6xf32>
    %125 = arith.negf %124 : vector<8x6xf32>
    %126 = math.exp %125 : vector<8x6xf32>
    %cst_63 = arith.constant 1.000000e+00 : f32
    %127 = vector.broadcast %cst_63 : f32 to vector<8x6xf32>
    %128 = arith.addf %127, %126 : vector<8x6xf32>
    %129 = arith.divf %127, %128 : vector<8x6xf32>
    %130 = vector.extract_strided_slice %114 {offsets = [8, 0], sizes = [8, 6], strides = [1, 1]} : vector<24x6xf32> to vector<8x6xf32>
    %131 = vector.extract_strided_slice %121 {offsets = [8, 0], sizes = [8, 6], strides = [1, 1]} : vector<48x6xf32> to vector<8x6xf32>
    %132 = arith.addf %130, %131 : vector<8x6xf32>
    %133 = arith.negf %132 : vector<8x6xf32>
    %134 = math.exp %133 : vector<8x6xf32>
    %cst_64 = arith.constant 1.000000e+00 : f32
    %135 = vector.broadcast %cst_64 : f32 to vector<8x6xf32>
    %136 = arith.addf %135, %134 : vector<8x6xf32>
    %137 = arith.divf %135, %136 : vector<8x6xf32>
    %138 = vector.extract_strided_slice %114 {offsets = [16, 0], sizes = [8, 6], strides = [1, 1]} : vector<24x6xf32> to vector<8x6xf32>
    %139 = vector.extract_strided_slice %121 {offsets = [16, 0], sizes = [8, 6], strides = [1, 1]} : vector<48x6xf32> to vector<8x6xf32>
    %140 = arith.mulf %129, %139 : vector<8x6xf32>
    %141 = arith.addf %138, %140 : vector<8x6xf32>
    %142 = math.tanh %141 : vector<8x6xf32>
    %cst_65 = arith.constant 1.000000e+00 : f32
    %143 = vector.broadcast %cst_65 : f32 to vector<8x6xf32>
    %144 = arith.subf %143, %137 : vector<8x6xf32>
    %145 = arith.mulf %144, %142 : vector<8x6xf32>
    %146 = arith.mulf %137, %80 : vector<8x6xf32>
    %147 = arith.addf %145, %146 : vector<8x6xf32>
    %148 = vector.extract_strided_slice %116 {offsets = [0, 0], sizes = [8, 6], strides = [1, 1]} : vector<24x6xf32> to vector<8x6xf32>
    %149 = vector.extract_strided_slice %121 {offsets = [24, 0], sizes = [8, 6], strides = [1, 1]} : vector<48x6xf32> to vector<8x6xf32>
    %150 = arith.addf %148, %149 : vector<8x6xf32>
    %151 = arith.negf %150 : vector<8x6xf32>
    %152 = math.exp %151 : vector<8x6xf32>
    %cst_66 = arith.constant 1.000000e+00 : f32
    %153 = vector.broadcast %cst_66 : f32 to vector<8x6xf32>
    %154 = arith.addf %153, %152 : vector<8x6xf32>
    %155 = arith.divf %153, %154 : vector<8x6xf32>
    %156 = vector.extract_strided_slice %116 {offsets = [8, 0], sizes = [8, 6], strides = [1, 1]} : vector<24x6xf32> to vector<8x6xf32>
    %157 = vector.extract_strided_slice %121 {offsets = [32, 0], sizes = [8, 6], strides = [1, 1]} : vector<48x6xf32> to vector<8x6xf32>
    %158 = arith.addf %156, %157 : vector<8x6xf32>
    %159 = arith.negf %158 : vector<8x6xf32>
    %160 = math.exp %159 : vector<8x6xf32>
    %cst_67 = arith.constant 1.000000e+00 : f32
    %161 = vector.broadcast %cst_67 : f32 to vector<8x6xf32>
    %162 = arith.addf %161, %160 : vector<8x6xf32>
    %163 = arith.divf %161, %162 : vector<8x6xf32>
    %164 = vector.extract_strided_slice %116 {offsets = [16, 0], sizes = [8, 6], strides = [1, 1]} : vector<24x6xf32> to vector<8x6xf32>
    %165 = vector.extract_strided_slice %121 {offsets = [40, 0], sizes = [8, 6], strides = [1, 1]} : vector<48x6xf32> to vector<8x6xf32>
    %166 = arith.mulf %155, %165 : vector<8x6xf32>
    %167 = arith.addf %164, %166 : vector<8x6xf32>
    %168 = math.tanh %167 : vector<8x6xf32>
    %cst_68 = arith.constant 1.000000e+00 : f32
    %169 = vector.broadcast %cst_68 : f32 to vector<8x6xf32>
    %170 = arith.subf %169, %163 : vector<8x6xf32>
    %171 = arith.mulf %170, %168 : vector<8x6xf32>
    %172 = arith.mulf %163, %106 : vector<8x6xf32>
    %173 = arith.addf %171, %172 : vector<8x6xf32>
    %c1_69 = arith.constant 1 : index
    %c0_70 = arith.constant 0 : index
    %c0_71 = arith.constant 0 : index
    %174 = vector.load %arg11[%c1_69, %c0_70, %c0_71] : memref<5x16x6xf32, #tpu.memory_space<vmem>>, vector<1x8x6xf32>
    %175 = vector.shape_cast %174 : vector<1x8x6xf32> to vector<8x6xf32>
    %176 = vector.shape_cast %147 : vector<8x6xf32> to vector<1x8x6xf32>
    tpu.vector_store %arg11[%c1_69, %c0_70, %c0_71], %176 {strides = array<i32>} : memref<5x16x6xf32, #tpu.memory_space<vmem>>, vector<1x8x6xf32>,
    %c3_72 = arith.constant 3 : index
    %c8_73 = arith.constant 8 : index
    %c0_74 = arith.constant 0 : index
    %177 = vector.load %arg11[%c3_72, %c8_73, %c0_74] : memref<5x16x6xf32, #tpu.memory_space<vmem>>, vector<1x8x6xf32>
    %178 = vector.shape_cast %177 : vector<1x8x6xf32> to vector<8x6xf32>
    %179 = vector.shape_cast %173 : vector<8x6xf32> to vector<1x8x6xf32>
    tpu.vector_store %arg11[%c3_72, %c8_73, %c0_74], %179 {strides = array<i32>} : memref<5x16x6xf32, #tpu.memory_space<vmem>>, vector<1x8x6xf32>,
    %c2_75 = arith.constant 2 : index
    %c0_76 = arith.constant 0 : index
    %c0_77 = arith.constant 0 : index
    %180 = vector.load %arg10[%c2_75, %c0_76, %c0_77] : memref<5x48x6xf32, #tpu.memory_space<vmem>>, vector<1x24x6xf32>
    %181 = vector.shape_cast %180 : vector<1x24x6xf32> to vector<24x6xf32>
    %c2_78 = arith.constant 2 : index
    %c24_79 = arith.constant 24 : index
    %c0_80 = arith.constant 0 : index
    %182 = vector.load %arg10[%c2_78, %c24_79, %c0_80] : memref<5x48x6xf32, #tpu.memory_space<vmem>>, vector<1x24x6xf32>
    %183 = vector.shape_cast %182 : vector<1x24x6xf32> to vector<24x6xf32>
    %184 = tpu.concatenate %147, %173 in 0 : vector<8x6xf32>, vector<8x6xf32> -> vector<16x6xf32>
    %185 = arith.truncf %184 : vector<16x6xf32> to vector<16x6xbf16>
    %cst_81 = arith.constant dense<0.000000e+00> : vector<48x6xf32>
    %186 = tpu.matmul %42, %185, %cst_81 {dimension_numbers = #tpu.dot_dimension_numbers<[1], [0], [0], [1], [0, 0, 1, 1], [], []>} : vector<48x16xbf16>, vector<16x6xbf16>, vector<48x6xf32> -> vector<48x6xf32>
    %187 = vector.broadcast %43 : vector<48x1xf32> to vector<48x6xf32>
    %188 = arith.addf %186, %187 : vector<48x6xf32>
    %189 = vector.extract_strided_slice %181 {offsets = [0, 0], sizes = [8, 6], strides = [1, 1]} : vector<24x6xf32> to vector<8x6xf32>
    %190 = vector.extract_strided_slice %188 {offsets = [0, 0], sizes = [8, 6], strides = [1, 1]} : vector<48x6xf32> to vector<8x6xf32>
    %191 = arith.addf %189, %190 : vector<8x6xf32>
    %192 = arith.negf %191 : vector<8x6xf32>
    %193 = math.exp %192 : vector<8x6xf32>
    %cst_82 = arith.constant 1.000000e+00 : f32
    %194 = vector.broadcast %cst_82 : f32 to vector<8x6xf32>
    %195 = arith.addf %194, %193 : vector<8x6xf32>
    %196 = arith.divf %194, %195 : vector<8x6xf32>
    %197 = vector.extract_strided_slice %181 {offsets = [8, 0], sizes = [8, 6], strides = [1, 1]} : vector<24x6xf32> to vector<8x6xf32>
    %198 = vector.extract_strided_slice %188 {offsets = [8, 0], sizes = [8, 6], strides = [1, 1]} : vector<48x6xf32> to vector<8x6xf32>
    %199 = arith.addf %197, %198 : vector<8x6xf32>
    %200 = arith.negf %199 : vector<8x6xf32>
    %201 = math.exp %200 : vector<8x6xf32>
    %cst_83 = arith.constant 1.000000e+00 : f32
    %202 = vector.broadcast %cst_83 : f32 to vector<8x6xf32>
    %203 = arith.addf %202, %201 : vector<8x6xf32>
    %204 = arith.divf %202, %203 : vector<8x6xf32>
    %205 = vector.extract_strided_slice %181 {offsets = [16, 0], sizes = [8, 6], strides = [1, 1]} : vector<24x6xf32> to vector<8x6xf32>
    %206 = vector.extract_strided_slice %188 {offsets = [16, 0], sizes = [8, 6], strides = [1, 1]} : vector<48x6xf32> to vector<8x6xf32>
    %207 = arith.mulf %196, %206 : vector<8x6xf32>
    %208 = arith.addf %205, %207 : vector<8x6xf32>
    %209 = math.tanh %208 : vector<8x6xf32>
    %cst_84 = arith.constant 1.000000e+00 : f32
    %210 = vector.broadcast %cst_84 : f32 to vector<8x6xf32>
    %211 = arith.subf %210, %204 : vector<8x6xf32>
    %212 = arith.mulf %211, %209 : vector<8x6xf32>
    %213 = arith.mulf %204, %147 : vector<8x6xf32>
    %214 = arith.addf %212, %213 : vector<8x6xf32>
    %215 = vector.extract_strided_slice %183 {offsets = [0, 0], sizes = [8, 6], strides = [1, 1]} : vector<24x6xf32> to vector<8x6xf32>
    %216 = vector.extract_strided_slice %188 {offsets = [24, 0], sizes = [8, 6], strides = [1, 1]} : vector<48x6xf32> to vector<8x6xf32>
    %217 = arith.addf %215, %216 : vector<8x6xf32>
    %218 = arith.negf %217 : vector<8x6xf32>
    %219 = math.exp %218 : vector<8x6xf32>
    %cst_85 = arith.constant 1.000000e+00 : f32
    %220 = vector.broadcast %cst_85 : f32 to vector<8x6xf32>
    %221 = arith.addf %220, %219 : vector<8x6xf32>
    %222 = arith.divf %220, %221 : vector<8x6xf32>
    %223 = vector.extract_strided_slice %183 {offsets = [8, 0], sizes = [8, 6], strides = [1, 1]} : vector<24x6xf32> to vector<8x6xf32>
    %224 = vector.extract_strided_slice %188 {offsets = [32, 0], sizes = [8, 6], strides = [1, 1]} : vector<48x6xf32> to vector<8x6xf32>
    %225 = arith.addf %223, %224 : vector<8x6xf32>
    %226 = arith.negf %225 : vector<8x6xf32>
    %227 = math.exp %226 : vector<8x6xf32>
    %cst_86 = arith.constant 1.000000e+00 : f32
    %228 = vector.broadcast %cst_86 : f32 to vector<8x6xf32>
    %229 = arith.addf %228, %227 : vector<8x6xf32>
    %230 = arith.divf %228, %229 : vector<8x6xf32>
    %231 = vector.extract_strided_slice %183 {offsets = [16, 0], sizes = [8, 6], strides = [1, 1]} : vector<24x6xf32> to vector<8x6xf32>
    %232 = vector.extract_strided_slice %188 {offsets = [40, 0], sizes = [8, 6], strides = [1, 1]} : vector<48x6xf32> to vector<8x6xf32>
    %233 = arith.mulf %222, %232 : vector<8x6xf32>
    %234 = arith.addf %231, %233 : vector<8x6xf32>
    %235 = math.tanh %234 : vector<8x6xf32>
    %cst_87 = arith.constant 1.000000e+00 : f32
    %236 = vector.broadcast %cst_87 : f32 to vector<8x6xf32>
    %237 = arith.subf %236, %230 : vector<8x6xf32>
    %238 = arith.mulf %237, %235 : vector<8x6xf32>
    %239 = arith.mulf %230, %173 : vector<8x6xf32>
    %240 = arith.addf %238, %239 : vector<8x6xf32>
    %c2_88 = arith.constant 2 : index
    %c0_89 = arith.constant 0 : index
    %c0_90 = arith.constant 0 : index
    %241 = vector.load %arg11[%c2_88, %c0_89, %c0_90] : memref<5x16x6xf32, #tpu.memory_space<vmem>>, vector<1x8x6xf32>
    %242 = vector.shape_cast %241 : vector<1x8x6xf32> to vector<8x6xf32>
    %243 = vector.shape_cast %214 : vector<8x6xf32> to vector<1x8x6xf32>
    tpu.vector_store %arg11[%c2_88, %c0_89, %c0_90], %243 {strides = array<i32>} : memref<5x16x6xf32, #tpu.memory_space<vmem>>, vector<1x8x6xf32>,
    %c2_91 = arith.constant 2 : index
    %c8_92 = arith.constant 8 : index
    %c0_93 = arith.constant 0 : index
    %244 = vector.load %arg11[%c2_91, %c8_92, %c0_93] : memref<5x16x6xf32, #tpu.memory_space<vmem>>, vector<1x8x6xf32>
    %245 = vector.shape_cast %244 : vector<1x8x6xf32> to vector<8x6xf32>
    %246 = vector.shape_cast %240 : vector<8x6xf32> to vector<1x8x6xf32>
    tpu.vector_store %arg11[%c2_91, %c8_92, %c0_93], %246 {strides = array<i32>} : memref<5x16x6xf32, #tpu.memory_space<vmem>>, vector<1x8x6xf32>,
    %c3_94 = arith.constant 3 : index
    %c0_95 = arith.constant 0 : index
    %c0_96 = arith.constant 0 : index
    %247 = vector.load %arg10[%c3_94, %c0_95, %c0_96] : memref<5x48x6xf32, #tpu.memory_space<vmem>>, vector<1x24x6xf32>
    %248 = vector.shape_cast %247 : vector<1x24x6xf32> to vector<24x6xf32>
    %c1_97 = arith.constant 1 : index
    %c24_98 = arith.constant 24 : index
    %c0_99 = arith.constant 0 : index
    %249 = vector.load %arg10[%c1_97, %c24_98, %c0_99] : memref<5x48x6xf32, #tpu.memory_space<vmem>>, vector<1x24x6xf32>
    %250 = vector.shape_cast %249 : vector<1x24x6xf32> to vector<24x6xf32>
    %251 = tpu.concatenate %214, %240 in 0 : vector<8x6xf32>, vector<8x6xf32> -> vector<16x6xf32>
    %252 = arith.truncf %251 : vector<16x6xf32> to vector<16x6xbf16>
    %cst_100 = arith.constant dense<0.000000e+00> : vector<48x6xf32>
    %253 = tpu.matmul %42, %252, %cst_100 {dimension_numbers = #tpu.dot_dimension_numbers<[1], [0], [0], [1], [0, 0, 1, 1], [], []>} : vector<48x16xbf16>, vector<16x6xbf16>, vector<48x6xf32> -> vector<48x6xf32>
    %254 = vector.broadcast %43 : vector<48x1xf32> to vector<48x6xf32>
    %255 = arith.addf %253, %254 : vector<48x6xf32>
    %256 = vector.extract_strided_slice %248 {offsets = [0, 0], sizes = [8, 6], strides = [1, 1]} : vector<24x6xf32> to vector<8x6xf32>
    %257 = vector.extract_strided_slice %255 {offsets = [0, 0], sizes = [8, 6], strides = [1, 1]} : vector<48x6xf32> to vector<8x6xf32>
    %258 = arith.addf %256, %257 : vector<8x6xf32>
    %259 = arith.negf %258 : vector<8x6xf32>
    %260 = math.exp %259 : vector<8x6xf32>
    %cst_101 = arith.constant 1.000000e+00 : f32
    %261 = vector.broadcast %cst_101 : f32 to vector<8x6xf32>
    %262 = arith.addf %261, %260 : vector<8x6xf32>
    %263 = arith.divf %261, %262 : vector<8x6xf32>
    %264 = vector.extract_strided_slice %248 {offsets = [8, 0], sizes = [8, 6], strides = [1, 1]} : vector<24x6xf32> to vector<8x6xf32>
    %265 = vector.extract_strided_slice %255 {offsets = [8, 0], sizes = [8, 6], strides = [1, 1]} : vector<48x6xf32> to vector<8x6xf32>
    %266 = arith.addf %264, %265 : vector<8x6xf32>
    %267 = arith.negf %266 : vector<8x6xf32>
    %268 = math.exp %267 : vector<8x6xf32>
    %cst_102 = arith.constant 1.000000e+00 : f32
    %269 = vector.broadcast %cst_102 : f32 to vector<8x6xf32>
    %270 = arith.addf %269, %268 : vector<8x6xf32>
    %271 = arith.divf %269, %270 : vector<8x6xf32>
    %272 = vector.extract_strided_slice %248 {offsets = [16, 0], sizes = [8, 6], strides = [1, 1]} : vector<24x6xf32> to vector<8x6xf32>
    %273 = vector.extract_strided_slice %255 {offsets = [16, 0], sizes = [8, 6], strides = [1, 1]} : vector<48x6xf32> to vector<8x6xf32>
    %274 = arith.mulf %263, %273 : vector<8x6xf32>
    %275 = arith.addf %272, %274 : vector<8x6xf32>
    %276 = math.tanh %275 : vector<8x6xf32>
    %cst_103 = arith.constant 1.000000e+00 : f32
    %277 = vector.broadcast %cst_103 : f32 to vector<8x6xf32>
    %278 = arith.subf %277, %271 : vector<8x6xf32>
    %279 = arith.mulf %278, %276 : vector<8x6xf32>
    %280 = arith.mulf %271, %214 : vector<8x6xf32>
    %281 = arith.addf %279, %280 : vector<8x6xf32>
    %282 = vector.extract_strided_slice %250 {offsets = [0, 0], sizes = [8, 6], strides = [1, 1]} : vector<24x6xf32> to vector<8x6xf32>
    %283 = vector.extract_strided_slice %255 {offsets = [24, 0], sizes = [8, 6], strides = [1, 1]} : vector<48x6xf32> to vector<8x6xf32>
    %284 = arith.addf %282, %283 : vector<8x6xf32>
    %285 = arith.negf %284 : vector<8x6xf32>
    %286 = math.exp %285 : vector<8x6xf32>
    %cst_104 = arith.constant 1.000000e+00 : f32
    %287 = vector.broadcast %cst_104 : f32 to vector<8x6xf32>
    %288 = arith.addf %287, %286 : vector<8x6xf32>
    %289 = arith.divf %287, %288 : vector<8x6xf32>
    %290 = vector.extract_strided_slice %250 {offsets = [8, 0], sizes = [8, 6], strides = [1, 1]} : vector<24x6xf32> to vector<8x6xf32>
    %291 = vector.extract_strided_slice %255 {offsets = [32, 0], sizes = [8, 6], strides = [1, 1]} : vector<48x6xf32> to vector<8x6xf32>
    %292 = arith.addf %290, %291 : vector<8x6xf32>
    %293 = arith.negf %292 : vector<8x6xf32>
    %294 = math.exp %293 : vector<8x6xf32>
    %cst_105 = arith.constant 1.000000e+00 : f32
    %295 = vector.broadcast %cst_105 : f32 to vector<8x6xf32>
    %296 = arith.addf %295, %294 : vector<8x6xf32>
    %297 = arith.divf %295, %296 : vector<8x6xf32>
    %298 = vector.extract_strided_slice %250 {offsets = [16, 0], sizes = [8, 6], strides = [1, 1]} : vector<24x6xf32> to vector<8x6xf32>
    %299 = vector.extract_strided_slice %255 {offsets = [40, 0], sizes = [8, 6], strides = [1, 1]} : vector<48x6xf32> to vector<8x6xf32>
    %300 = arith.mulf %289, %299 : vector<8x6xf32>
    %301 = arith.addf %298, %300 : vector<8x6xf32>
    %302 = math.tanh %301 : vector<8x6xf32>
    %cst_106 = arith.constant 1.000000e+00 : f32
    %303 = vector.broadcast %cst_106 : f32 to vector<8x6xf32>
    %304 = arith.subf %303, %297 : vector<8x6xf32>
    %305 = arith.mulf %304, %302 : vector<8x6xf32>
    %306 = arith.mulf %297, %240 : vector<8x6xf32>
    %307 = arith.addf %305, %306 : vector<8x6xf32>
    %c3_107 = arith.constant 3 : index
    %c0_108 = arith.constant 0 : index
    %c0_109 = arith.constant 0 : index
    %308 = vector.load %arg11[%c3_107, %c0_108, %c0_109] : memref<5x16x6xf32, #tpu.memory_space<vmem>>, vector<1x8x6xf32>
    %309 = vector.shape_cast %308 : vector<1x8x6xf32> to vector<8x6xf32>
    %310 = vector.shape_cast %281 : vector<8x6xf32> to vector<1x8x6xf32>
    tpu.vector_store %arg11[%c3_107, %c0_108, %c0_109], %310 {strides = array<i32>} : memref<5x16x6xf32, #tpu.memory_space<vmem>>, vector<1x8x6xf32>,
    %c1_110 = arith.constant 1 : index
    %c8_111 = arith.constant 8 : index
    %c0_112 = arith.constant 0 : index
    %311 = vector.load %arg11[%c1_110, %c8_111, %c0_112] : memref<5x16x6xf32, #tpu.memory_space<vmem>>, vector<1x8x6xf32>
    %312 = vector.shape_cast %311 : vector<1x8x6xf32> to vector<8x6xf32>
    %313 = vector.shape_cast %307 : vector<8x6xf32> to vector<1x8x6xf32>
    tpu.vector_store %arg11[%c1_110, %c8_111, %c0_112], %313 {strides = array<i32>} : memref<5x16x6xf32, #tpu.memory_space<vmem>>, vector<1x8x6xf32>,
    %c4_113 = arith.constant 4 : index
    %c0_114 = arith.constant 0 : index
    %c0_115 = arith.constant 0 : index
    %314 = vector.load %arg10[%c4_113, %c0_114, %c0_115] : memref<5x48x6xf32, #tpu.memory_space<vmem>>, vector<1x24x6xf32>
    %315 = vector.shape_cast %314 : vector<1x24x6xf32> to vector<24x6xf32>
    %c0_116 = arith.constant 0 : index
    %c24_117 = arith.constant 24 : index
    %c0_118 = arith.constant 0 : index
    %316 = vector.load %arg10[%c0_116, %c24_117, %c0_118] : memref<5x48x6xf32, #tpu.memory_space<vmem>>, vector<1x24x6xf32>
    %317 = vector.shape_cast %316 : vector<1x24x6xf32> to vector<24x6xf32>
    %318 = tpu.concatenate %281, %307 in 0 : vector<8x6xf32>, vector<8x6xf32> -> vector<16x6xf32>
    %319 = arith.truncf %318 : vector<16x6xf32> to vector<16x6xbf16>
    %cst_119 = arith.constant dense<0.000000e+00> : vector<48x6xf32>
    %320 = tpu.matmul %42, %319, %cst_119 {dimension_numbers = #tpu.dot_dimension_numbers<[1], [0], [0], [1], [0, 0, 1, 1], [], []>} : vector<48x16xbf16>, vector<16x6xbf16>, vector<48x6xf32> -> vector<48x6xf32>
    %321 = vector.broadcast %43 : vector<48x1xf32> to vector<48x6xf32>
    %322 = arith.addf %320, %321 : vector<48x6xf32>
    %323 = vector.extract_strided_slice %315 {offsets = [0, 0], sizes = [8, 6], strides = [1, 1]} : vector<24x6xf32> to vector<8x6xf32>
    %324 = vector.extract_strided_slice %322 {offsets = [0, 0], sizes = [8, 6], strides = [1, 1]} : vector<48x6xf32> to vector<8x6xf32>
    %325 = arith.addf %323, %324 : vector<8x6xf32>
    %326 = arith.negf %325 : vector<8x6xf32>
    %327 = math.exp %326 : vector<8x6xf32>
    %cst_120 = arith.constant 1.000000e+00 : f32
    %328 = vector.broadcast %cst_120 : f32 to vector<8x6xf32>
    %329 = arith.addf %328, %327 : vector<8x6xf32>
    %330 = arith.divf %328, %329 : vector<8x6xf32>
    %331 = vector.extract_strided_slice %315 {offsets = [8, 0], sizes = [8, 6], strides = [1, 1]} : vector<24x6xf32> to vector<8x6xf32>
    %332 = vector.extract_strided_slice %322 {offsets = [8, 0], sizes = [8, 6], strides = [1, 1]} : vector<48x6xf32> to vector<8x6xf32>
    %333 = arith.addf %331, %332 : vector<8x6xf32>
    %334 = arith.negf %333 : vector<8x6xf32>
    %335 = math.exp %334 : vector<8x6xf32>
    %cst_121 = arith.constant 1.000000e+00 : f32
    %336 = vector.broadcast %cst_121 : f32 to vector<8x6xf32>
    %337 = arith.addf %336, %335 : vector<8x6xf32>
    %338 = arith.divf %336, %337 : vector<8x6xf32>
    %339 = vector.extract_strided_slice %315 {offsets = [16, 0], sizes = [8, 6], strides = [1, 1]} : vector<24x6xf32> to vector<8x6xf32>
    %340 = vector.extract_strided_slice %322 {offsets = [16, 0], sizes = [8, 6], strides = [1, 1]} : vector<48x6xf32> to vector<8x6xf32>
    %341 = arith.mulf %330, %340 : vector<8x6xf32>
    %342 = arith.addf %339, %341 : vector<8x6xf32>
    %343 = math.tanh %342 : vector<8x6xf32>
    %cst_122 = arith.constant 1.000000e+00 : f32
    %344 = vector.broadcast %cst_122 : f32 to vector<8x6xf32>
    %345 = arith.subf %344, %338 : vector<8x6xf32>
    %346 = arith.mulf %345, %343 : vector<8x6xf32>
    %347 = arith.mulf %338, %281 : vector<8x6xf32>
    %348 = arith.addf %346, %347 : vector<8x6xf32>
    %349 = vector.extract_strided_slice %317 {offsets = [0, 0], sizes = [8, 6], strides = [1, 1]} : vector<24x6xf32> to vector<8x6xf32>
    %350 = vector.extract_strided_slice %322 {offsets = [24, 0], sizes = [8, 6], strides = [1, 1]} : vector<48x6xf32> to vector<8x6xf32>
    %351 = arith.addf %349, %350 : vector<8x6xf32>
    %352 = arith.negf %351 : vector<8x6xf32>
    %353 = math.exp %352 : vector<8x6xf32>
    %cst_123 = arith.constant 1.000000e+00 : f32
    %354 = vector.broadcast %cst_123 : f32 to vector<8x6xf32>
    %355 = arith.addf %354, %353 : vector<8x6xf32>
    %356 = arith.divf %354, %355 : vector<8x6xf32>
    %357 = vector.extract_strided_slice %317 {offsets = [8, 0], sizes = [8, 6], strides = [1, 1]} : vector<24x6xf32> to vector<8x6xf32>
    %358 = vector.extract_strided_slice %322 {offsets = [32, 0], sizes = [8, 6], strides = [1, 1]} : vector<48x6xf32> to vector<8x6xf32>
    %359 = arith.addf %357, %358 : vector<8x6xf32>
    %360 = arith.negf %359 : vector<8x6xf32>
    %361 = math.exp %360 : vector<8x6xf32>
    %cst_124 = arith.constant 1.000000e+00 : f32
    %362 = vector.broadcast %cst_124 : f32 to vector<8x6xf32>
    %363 = arith.addf %362, %361 : vector<8x6xf32>
    %364 = arith.divf %362, %363 : vector<8x6xf32>
    %365 = vector.extract_strided_slice %317 {offsets = [16, 0], sizes = [8, 6], strides = [1, 1]} : vector<24x6xf32> to vector<8x6xf32>
    %366 = vector.extract_strided_slice %322 {offsets = [40, 0], sizes = [8, 6], strides = [1, 1]} : vector<48x6xf32> to vector<8x6xf32>
    %367 = arith.mulf %356, %366 : vector<8x6xf32>
    %368 = arith.addf %365, %367 : vector<8x6xf32>
    %369 = math.tanh %368 : vector<8x6xf32>
    %cst_125 = arith.constant 1.000000e+00 : f32
    %370 = vector.broadcast %cst_125 : f32 to vector<8x6xf32>
    %371 = arith.subf %370, %364 : vector<8x6xf32>
    %372 = arith.mulf %371, %369 : vector<8x6xf32>
    %373 = arith.mulf %364, %307 : vector<8x6xf32>
    %374 = arith.addf %372, %373 : vector<8x6xf32>
    %c4_126 = arith.constant 4 : index
    %c0_127 = arith.constant 0 : index
    %c0_128 = arith.constant 0 : index
    %375 = vector.load %arg11[%c4_126, %c0_127, %c0_128] : memref<5x16x6xf32, #tpu.memory_space<vmem>>, vector<1x8x6xf32>
    %376 = vector.shape_cast %375 : vector<1x8x6xf32> to vector<8x6xf32>
    %377 = vector.shape_cast %348 : vector<8x6xf32> to vector<1x8x6xf32>
    tpu.vector_store %arg11[%c4_126, %c0_127, %c0_128], %377 {strides = array<i32>} : memref<5x16x6xf32, #tpu.memory_space<vmem>>, vector<1x8x6xf32>,
    %c0_129 = arith.constant 0 : index
    %c8_130 = arith.constant 8 : index
    %c0_131 = arith.constant 0 : index
    %378 = vector.load %arg11[%c0_129, %c8_130, %c0_131] : memref<5x16x6xf32, #tpu.memory_space<vmem>>, vector<1x8x6xf32>
    %379 = vector.shape_cast %378 : vector<1x8x6xf32> to vector<8x6xf32>
    %380 = vector.shape_cast %374 : vector<8x6xf32> to vector<1x8x6xf32>
    tpu.vector_store %arg11[%c0_129, %c8_130, %c0_131], %380 {strides = array<i32>} : memref<5x16x6xf32, #tpu.memory_space<vmem>>, vector<1x8x6xf32>,
    %c0_132 = arith.constant 0 : index
    %c0_133 = arith.constant 0 : index
    %381 = vector.load %arg6[%c0_132, %c0_133] : memref<16x16xbf16, #tpu.memory_space<vmem>>, vector<16x16xbf16>
    %c0_134 = arith.constant 0 : index
    %c0_135 = arith.constant 0 : index
    %382 = vector.load %arg7[%c0_134, %c0_135] : memref<16x1xf32, #tpu.memory_space<vmem>>, vector<16x1xf32>
    %c0_136 = arith.constant 0 : index
    %c0_137 = arith.constant 0 : index
    %383 = vector.load %arg8[%c0_136, %c0_137] : memref<1x16xbf16, #tpu.memory_space<vmem>>, vector<1x16xbf16>
    %c0_138 = arith.constant 0 : index
    %c0_139 = arith.constant 0 : index
    %c0_140 = arith.constant 0 : index
    %384 = vector.load %arg11[%c0_138, %c0_139, %c0_140] : memref<5x16x6xf32, #tpu.memory_space<vmem>>, vector<1x16x6xf32>
    %385 = vector.shape_cast %384 : vector<1x16x6xf32> to vector<16x6xf32>
    %386 = arith.truncf %385 : vector<16x6xf32> to vector<16x6xbf16>
    %cst_141 = arith.constant dense<0.000000e+00> : vector<16x6xf32>
    %387 = tpu.matmul %381, %386, %cst_141 {dimension_numbers = #tpu.dot_dimension_numbers<[1], [0], [0], [1], [0, 0, 1, 1], [], []>} : vector<16x16xbf16>, vector<16x6xbf16>, vector<16x6xf32> -> vector<16x6xf32>
    %388 = vector.broadcast %382 : vector<16x1xf32> to vector<16x6xf32>
    %389 = arith.addf %387, %388 : vector<16x6xf32>
    %390 = math.tanh %389 : vector<16x6xf32>
    %391 = arith.truncf %390 : vector<16x6xf32> to vector<16x6xbf16>
    %cst_142 = arith.constant dense<0.000000e+00> : vector<1x6xf32>
    %392 = tpu.matmul %383, %391, %cst_142 {dimension_numbers = #tpu.dot_dimension_numbers<[1], [0], [0], [1], [0, 0, 1, 1], [], []>} : vector<1x16xbf16>, vector<16x6xbf16>, vector<1x6xf32> -> vector<1x6xf32>
    %c1_143 = arith.constant 1 : index
    %c0_144 = arith.constant 0 : index
    %c0_145 = arith.constant 0 : index
    %393 = vector.load %arg11[%c1_143, %c0_144, %c0_145] : memref<5x16x6xf32, #tpu.memory_space<vmem>>, vector<1x16x6xf32>
    %394 = vector.shape_cast %393 : vector<1x16x6xf32> to vector<16x6xf32>
    %395 = arith.truncf %394 : vector<16x6xf32> to vector<16x6xbf16>
    %cst_146 = arith.constant dense<0.000000e+00> : vector<16x6xf32>
    %396 = tpu.matmul %381, %395, %cst_146 {dimension_numbers = #tpu.dot_dimension_numbers<[1], [0], [0], [1], [0, 0, 1, 1], [], []>} : vector<16x16xbf16>, vector<16x6xbf16>, vector<16x6xf32> -> vector<16x6xf32>
    %397 = vector.broadcast %382 : vector<16x1xf32> to vector<16x6xf32>
    %398 = arith.addf %396, %397 : vector<16x6xf32>
    %399 = math.tanh %398 : vector<16x6xf32>
    %400 = arith.truncf %399 : vector<16x6xf32> to vector<16x6xbf16>
    %cst_147 = arith.constant dense<0.000000e+00> : vector<1x6xf32>
    %401 = tpu.matmul %383, %400, %cst_147 {dimension_numbers = #tpu.dot_dimension_numbers<[1], [0], [0], [1], [0, 0, 1, 1], [], []>} : vector<1x16xbf16>, vector<16x6xbf16>, vector<1x6xf32> -> vector<1x6xf32>
    %c2_148 = arith.constant 2 : index
    %c0_149 = arith.constant 0 : index
    %c0_150 = arith.constant 0 : index
    %402 = vector.load %arg11[%c2_148, %c0_149, %c0_150] : memref<5x16x6xf32, #tpu.memory_space<vmem>>, vector<1x16x6xf32>
    %403 = vector.shape_cast %402 : vector<1x16x6xf32> to vector<16x6xf32>
    %404 = arith.truncf %403 : vector<16x6xf32> to vector<16x6xbf16>
    %cst_151 = arith.constant dense<0.000000e+00> : vector<16x6xf32>
    %405 = tpu.matmul %381, %404, %cst_151 {dimension_numbers = #tpu.dot_dimension_numbers<[1], [0], [0], [1], [0, 0, 1, 1], [], []>} : vector<16x16xbf16>, vector<16x6xbf16>, vector<16x6xf32> -> vector<16x6xf32>
    %406 = vector.broadcast %382 : vector<16x1xf32> to vector<16x6xf32>
    %407 = arith.addf %405, %406 : vector<16x6xf32>
    %408 = math.tanh %407 : vector<16x6xf32>
    %409 = arith.truncf %408 : vector<16x6xf32> to vector<16x6xbf16>
    %cst_152 = arith.constant dense<0.000000e+00> : vector<1x6xf32>
    %410 = tpu.matmul %383, %409, %cst_152 {dimension_numbers = #tpu.dot_dimension_numbers<[1], [0], [0], [1], [0, 0, 1, 1], [], []>} : vector<1x16xbf16>, vector<16x6xbf16>, vector<1x6xf32> -> vector<1x6xf32>
    %c3_153 = arith.constant 3 : index
    %c0_154 = arith.constant 0 : index
    %c0_155 = arith.constant 0 : index
    %411 = vector.load %arg11[%c3_153, %c0_154, %c0_155] : memref<5x16x6xf32, #tpu.memory_space<vmem>>, vector<1x16x6xf32>
    %412 = vector.shape_cast %411 : vector<1x16x6xf32> to vector<16x6xf32>
    %413 = arith.truncf %412 : vector<16x6xf32> to vector<16x6xbf16>
    %cst_156 = arith.constant dense<0.000000e+00> : vector<16x6xf32>
    %414 = tpu.matmul %381, %413, %cst_156 {dimension_numbers = #tpu.dot_dimension_numbers<[1], [0], [0], [1], [0, 0, 1, 1], [], []>} : vector<16x16xbf16>, vector<16x6xbf16>, vector<16x6xf32> -> vector<16x6xf32>
    %415 = vector.broadcast %382 : vector<16x1xf32> to vector<16x6xf32>
    %416 = arith.addf %414, %415 : vector<16x6xf32>
    %417 = math.tanh %416 : vector<16x6xf32>
    %418 = arith.truncf %417 : vector<16x6xf32> to vector<16x6xbf16>
    %cst_157 = arith.constant dense<0.000000e+00> : vector<1x6xf32>
    %419 = tpu.matmul %383, %418, %cst_157 {dimension_numbers = #tpu.dot_dimension_numbers<[1], [0], [0], [1], [0, 0, 1, 1], [], []>} : vector<1x16xbf16>, vector<16x6xbf16>, vector<1x6xf32> -> vector<1x6xf32>
    %c4_158 = arith.constant 4 : index
    %c0_159 = arith.constant 0 : index
    %c0_160 = arith.constant 0 : index
    %420 = vector.load %arg11[%c4_158, %c0_159, %c0_160] : memref<5x16x6xf32, #tpu.memory_space<vmem>>, vector<1x16x6xf32>
    %421 = vector.shape_cast %420 : vector<1x16x6xf32> to vector<16x6xf32>
    %422 = arith.truncf %421 : vector<16x6xf32> to vector<16x6xbf16>
    %cst_161 = arith.constant dense<0.000000e+00> : vector<16x6xf32>
    %423 = tpu.matmul %381, %422, %cst_161 {dimension_numbers = #tpu.dot_dimension_numbers<[1], [0], [0], [1], [0, 0, 1, 1], [], []>} : vector<16x16xbf16>, vector<16x6xbf16>, vector<16x6xf32> -> vector<16x6xf32>
    %424 = vector.broadcast %382 : vector<16x1xf32> to vector<16x6xf32>
    %425 = arith.addf %423, %424 : vector<16x6xf32>
    %426 = math.tanh %425 : vector<16x6xf32>
    %427 = arith.truncf %426 : vector<16x6xf32> to vector<16x6xbf16>
    %cst_162 = arith.constant dense<0.000000e+00> : vector<1x6xf32>
    %428 = tpu.matmul %383, %427, %cst_162 {dimension_numbers = #tpu.dot_dimension_numbers<[1], [0], [0], [1], [0, 0, 1, 1], [], []>} : vector<1x16xbf16>, vector<16x6xbf16>, vector<1x6xf32> -> vector<1x6xf32>
    %429 = tpu.concatenate %392, %401, %410, %419, %428 in 0 : vector<1x6xf32>, vector<1x6xf32>, vector<1x6xf32>, vector<1x6xf32>, vector<1x6xf32> -> vector<5x6xf32>
    %cst_163 = arith.constant dense<0xFF800000> : vector<6xf32>
    %430 = vector.multi_reduction <maximumf>, %429, %cst_163 [0] : vector<5x6xf32> to vector<6xf32>
    %431 = vector.shape_cast %430 : vector<6xf32> to vector<1x6xf32>
    %432 = vector.broadcast %431 : vector<1x6xf32> to vector<5x6xf32>
    %433 = arith.subf %429, %432 : vector<5x6xf32>
    %434 = math.exp %433 : vector<5x6xf32>
    %cst_164 = arith.constant dense<0.000000e+00> : vector<6xf32>
    %435 = vector.multi_reduction <add>, %434, %cst_164 [0] : vector<5x6xf32> to vector<6xf32>
    %436 = vector.shape_cast %435 : vector<6xf32> to vector<1x6xf32>
    %437 = tpu.reciprocal %436 {approx = true} : vector<1x6xf32> -> vector<1x6xf32>
    %438 = vector.broadcast %437 : vector<1x6xf32> to vector<5x6xf32>
    %439 = arith.mulf %434, %438 : vector<5x6xf32>
    %c0_165 = arith.constant 0 : index
    %c0_166 = arith.constant 0 : index
    %c0_167 = arith.constant 0 : index
    %440 = vector.load %arg11[%c0_165, %c0_166, %c0_167] : memref<5x16x6xf32, #tpu.memory_space<vmem>>, vector<5x16x6xf32>
    %441 = vector.shape_cast %439 : vector<5x6xf32> to vector<5x1x6xf32>
    %442 = vector.broadcast %441 : vector<5x1x6xf32> to vector<5x16x6xf32>
    %443 = arith.mulf %440, %442 : vector<5x16x6xf32>
    %cst_168 = arith.constant dense<0.000000e+00> : vector<16x6xf32>
    %444 = vector.multi_reduction <add>, %443, %cst_168 [0] : vector<5x16x6xf32> to vector<16x6xf32>
    %c0_169 = arith.constant 0 : index
    %c0_170 = arith.constant 0 : index
    %445 = vector.load %arg9[%c0_169, %c0_170] : memref<16x6xf32, #tpu.memory_space<vmem>>, vector<16x6xf32>
    tpu.vector_store %arg9[%c0_169, %c0_170], %444 {strides = array<i32>} : memref<16x6xf32, #tpu.memory_space<vmem>>, vector<16x6xf32>,
    return
  }
  func.func @transform_0(%arg0: i32) -> (i32, i32, i32) {
    %c0_i32 = arith.constant 0 : i32
    %c0_i32_0 = arith.constant 0 : i32
    %c0_i32_1 = arith.constant 0 : i32
    return %c0_i32, %c0_i32_0, %arg0 : i32, i32, i32
  }
  func.func @transform_1(%arg0: i32) -> (i32, i32) {
    %c0_i32 = arith.constant 0 : i32
    %c0_i32_0 = arith.constant 0 : i32
    %c0_i32_1 = arith.constant 0 : i32
    return %c0_i32, %c0_i32_0 : i32, i32
  }
  func.func @transform_2(%arg0: i32) -> (i32, i32) {
    %c0_i32 = arith.constant 0 : i32
    %c0_i32_0 = arith.constant 0 : i32
    %c0_i32_1 = arith.constant 0 : i32
    return %c0_i32, %c0_i32_0 : i32, i32
  }
  func.func @transform_3(%arg0: i32) -> (i32, i32) {
    %c0_i32 = arith.constant 0 : i32
    %c0_i32_0 = arith.constant 0 : i32
    %c0_i32_1 = arith.constant 0 : i32
    return %c0_i32, %c0_i32_0 : i32, i32
  }
  func.func @transform_4(%arg0: i32) -> (i32, i32) {
    %c0_i32 = arith.constant 0 : i32
    %c0_i32_0 = arith.constant 0 : i32
    %c0_i32_1 = arith.constant 0 : i32
    return %c0_i32, %c0_i32_0 : i32, i32
  }
  func.func @transform_5(%arg0: i32) -> (i32, i32) {
    %c0_i32 = arith.constant 0 : i32
    %c0_i32_0 = arith.constant 0 : i32
    %c0_i32_1 = arith.constant 0 : i32
    return %c0_i32, %c0_i32_0 : i32, i32
  }
  func.func @transform_6(%arg0: i32) -> (i32, i32) {
    %c0_i32 = arith.constant 0 : i32
    %c0_i32_0 = arith.constant 0 : i32
    %c0_i32_1 = arith.constant 0 : i32
    return %c0_i32, %c0_i32_0 : i32, i32
  }
  func.func @transform_7(%arg0: i32) -> (i32, i32) {
    %c0_i32 = arith.constant 0 : i32
    %c0_i32_0 = arith.constant 0 : i32
    %c0_i32_1 = arith.constant 0 : i32
    return %c0_i32, %c0_i32_0 : i32, i32
  }
  func.func @transform_8(%arg0: i32) -> (i32, i32) {
    %c0_i32 = arith.constant 0 : i32
    %c0_i32_0 = arith.constant 0 : i32
    return %c0_i32, %arg0 : i32, i32
  }
}

module attributes {stable_mosaic.version = 11 : i64} {
  func.func @_han_level_kernel(%arg0: i32, %arg1: memref<3x16x2xbf16, #tpu.memory_space<vmem>>, %arg2: memref<48x16xbf16, #tpu.memory_space<vmem>>, %arg3: memref<48x1xf32, #tpu.memory_space<vmem>>, %arg4: memref<48x16xbf16, #tpu.memory_space<vmem>>, %arg5: memref<48x1xf32, #tpu.memory_space<vmem>>, %arg6: memref<16x16xbf16, #tpu.memory_space<vmem>>, %arg7: memref<16x1xf32, #tpu.memory_space<vmem>>, %arg8: memref<1x16xbf16, #tpu.memory_space<vmem>>, %arg9: memref<4x16xbf16, #tpu.memory_space<vmem>>, %arg10: memref<4x1xf32, #tpu.memory_space<vmem>>, %arg11: memref<4x2xf32, #tpu.memory_space<vmem>>, %arg12: memref<3x48x2xf32, #tpu.memory_space<vmem>>, %arg13: memref<3x16x2xf32, #tpu.memory_space<vmem>>) attributes {dimension_semantics = [#tpu.dimension_semantics<parallel>], iteration_bounds = array<i64: 1>, scalar_prefetch = 0 : i64, scratch_operands = 2 : i64, tpu.core_type = #tpu.core_type<tc>, window_params = [{transform_indices = @transform_0, window_bounds = array<i64: 3, 16, 2>}, {pipeline_mode = #tpu.pipeline_mode<synchronous>, transform_indices = @transform_1, window_bounds = array<i64: 48, 16>}, {pipeline_mode = #tpu.pipeline_mode<synchronous>, transform_indices = @transform_2, window_bounds = array<i64: 48, 1>}, {pipeline_mode = #tpu.pipeline_mode<synchronous>, transform_indices = @transform_3, window_bounds = array<i64: 48, 16>}, {pipeline_mode = #tpu.pipeline_mode<synchronous>, transform_indices = @transform_4, window_bounds = array<i64: 48, 1>}, {pipeline_mode = #tpu.pipeline_mode<synchronous>, transform_indices = @transform_5, window_bounds = array<i64: 16, 16>}, {pipeline_mode = #tpu.pipeline_mode<synchronous>, transform_indices = @transform_6, window_bounds = array<i64: 16, 1>}, {pipeline_mode = #tpu.pipeline_mode<synchronous>, transform_indices = @transform_7, window_bounds = array<i64: 1, 16>}, {pipeline_mode = #tpu.pipeline_mode<synchronous>, transform_indices = @transform_8, window_bounds = array<i64: 4, 16>}, {pipeline_mode = #tpu.pipeline_mode<synchronous>, transform_indices = @transform_9, window_bounds = array<i64: 4, 1>}, {transform_indices = @transform_10, window_bounds = array<i64: 4, 2>}]} {
    %c0 = arith.constant 0 : index
    %c0_0 = arith.constant 0 : index
    %0 = vector.load %arg2[%c0, %c0_0] : memref<48x16xbf16, #tpu.memory_space<vmem>>, vector<48x16xbf16>
    %c0_1 = arith.constant 0 : index
    %c0_2 = arith.constant 0 : index
    %1 = vector.load %arg3[%c0_1, %c0_2] : memref<48x1xf32, #tpu.memory_space<vmem>>, vector<48x1xf32>
    %c0_3 = arith.constant 0 : index
    %c0_4 = arith.constant 0 : index
    %c0_5 = arith.constant 0 : index
    %2 = vector.load %arg1[%c0_3, %c0_4, %c0_5] : memref<3x16x2xbf16, #tpu.memory_space<vmem>>, vector<1x16x2xbf16>
    %3 = vector.shape_cast %2 : vector<1x16x2xbf16> to vector<16x2xbf16>
    %cst = arith.constant dense<0.000000e+00> : vector<48x2xf32>
    %4 = tpu.matmul %0, %3, %cst {dimension_numbers = #tpu.dot_dimension_numbers<[1], [0], [0], [1], [0, 0, 1, 1], [], []>} : vector<48x16xbf16>, vector<16x2xbf16>, vector<48x2xf32> -> vector<48x2xf32>
    %5 = vector.broadcast %1 : vector<48x1xf32> to vector<48x2xf32>
    %6 = arith.addf %4, %5 : vector<48x2xf32>
    %c0_6 = arith.constant 0 : index
    %c0_7 = arith.constant 0 : index
    %c0_8 = arith.constant 0 : index
    %7 = vector.load %arg12[%c0_6, %c0_7, %c0_8] : memref<3x48x2xf32, #tpu.memory_space<vmem>>, vector<1x48x2xf32>
    %8 = vector.shape_cast %7 : vector<1x48x2xf32> to vector<48x2xf32>
    %9 = vector.shape_cast %6 : vector<48x2xf32> to vector<1x48x2xf32>
    tpu.vector_store %arg12[%c0_6, %c0_7, %c0_8], %9 {strides = array<i32>} : memref<3x48x2xf32, #tpu.memory_space<vmem>>, vector<1x48x2xf32>,
    %c1 = arith.constant 1 : index
    %c0_9 = arith.constant 0 : index
    %c0_10 = arith.constant 0 : index
    %10 = vector.load %arg1[%c1, %c0_9, %c0_10] : memref<3x16x2xbf16, #tpu.memory_space<vmem>>, vector<1x16x2xbf16>
    %11 = vector.shape_cast %10 : vector<1x16x2xbf16> to vector<16x2xbf16>
    %cst_11 = arith.constant dense<0.000000e+00> : vector<48x2xf32>
    %12 = tpu.matmul %0, %11, %cst_11 {dimension_numbers = #tpu.dot_dimension_numbers<[1], [0], [0], [1], [0, 0, 1, 1], [], []>} : vector<48x16xbf16>, vector<16x2xbf16>, vector<48x2xf32> -> vector<48x2xf32>
    %13 = vector.broadcast %1 : vector<48x1xf32> to vector<48x2xf32>
    %14 = arith.addf %12, %13 : vector<48x2xf32>
    %c1_12 = arith.constant 1 : index
    %c0_13 = arith.constant 0 : index
    %c0_14 = arith.constant 0 : index
    %15 = vector.load %arg12[%c1_12, %c0_13, %c0_14] : memref<3x48x2xf32, #tpu.memory_space<vmem>>, vector<1x48x2xf32>
    %16 = vector.shape_cast %15 : vector<1x48x2xf32> to vector<48x2xf32>
    %17 = vector.shape_cast %14 : vector<48x2xf32> to vector<1x48x2xf32>
    tpu.vector_store %arg12[%c1_12, %c0_13, %c0_14], %17 {strides = array<i32>} : memref<3x48x2xf32, #tpu.memory_space<vmem>>, vector<1x48x2xf32>,
    %c2 = arith.constant 2 : index
    %c0_15 = arith.constant 0 : index
    %c0_16 = arith.constant 0 : index
    %18 = vector.load %arg1[%c2, %c0_15, %c0_16] : memref<3x16x2xbf16, #tpu.memory_space<vmem>>, vector<1x16x2xbf16>
    %19 = vector.shape_cast %18 : vector<1x16x2xbf16> to vector<16x2xbf16>
    %cst_17 = arith.constant dense<0.000000e+00> : vector<48x2xf32>
    %20 = tpu.matmul %0, %19, %cst_17 {dimension_numbers = #tpu.dot_dimension_numbers<[1], [0], [0], [1], [0, 0, 1, 1], [], []>} : vector<48x16xbf16>, vector<16x2xbf16>, vector<48x2xf32> -> vector<48x2xf32>
    %21 = vector.broadcast %1 : vector<48x1xf32> to vector<48x2xf32>
    %22 = arith.addf %20, %21 : vector<48x2xf32>
    %c2_18 = arith.constant 2 : index
    %c0_19 = arith.constant 0 : index
    %c0_20 = arith.constant 0 : index
    %23 = vector.load %arg12[%c2_18, %c0_19, %c0_20] : memref<3x48x2xf32, #tpu.memory_space<vmem>>, vector<1x48x2xf32>
    %24 = vector.shape_cast %23 : vector<1x48x2xf32> to vector<48x2xf32>
    %25 = vector.shape_cast %22 : vector<48x2xf32> to vector<1x48x2xf32>
    tpu.vector_store %arg12[%c2_18, %c0_19, %c0_20], %25 {strides = array<i32>} : memref<3x48x2xf32, #tpu.memory_space<vmem>>, vector<1x48x2xf32>,
    %c0_21 = arith.constant 0 : index
    %c0_22 = arith.constant 0 : index
    %26 = vector.load %arg4[%c0_21, %c0_22] : memref<48x16xbf16, #tpu.memory_space<vmem>>, vector<48x16xbf16>
    %c0_23 = arith.constant 0 : index
    %c0_24 = arith.constant 0 : index
    %27 = vector.load %arg5[%c0_23, %c0_24] : memref<48x1xf32, #tpu.memory_space<vmem>>, vector<48x1xf32>
    %cst_25 = arith.constant 0.000000e+00 : f32
    %28 = vector.broadcast %cst_25 : f32 to vector<8x2xf32>
    %cst_26 = arith.constant 0.000000e+00 : f32
    %29 = vector.broadcast %cst_26 : f32 to vector<8x2xf32>
    %c0_27 = arith.constant 0 : index
    %c0_28 = arith.constant 0 : index
    %c0_29 = arith.constant 0 : index
    %30 = vector.load %arg12[%c0_27, %c0_28, %c0_29] : memref<3x48x2xf32, #tpu.memory_space<vmem>>, vector<1x24x2xf32>
    %31 = vector.shape_cast %30 : vector<1x24x2xf32> to vector<24x2xf32>
    %c2_30 = arith.constant 2 : index
    %c24 = arith.constant 24 : index
    %c0_31 = arith.constant 0 : index
    %32 = vector.load %arg12[%c2_30, %c24, %c0_31] : memref<3x48x2xf32, #tpu.memory_space<vmem>>, vector<1x24x2xf32>
    %33 = vector.shape_cast %32 : vector<1x24x2xf32> to vector<24x2xf32>
    %34 = tpu.concatenate %28, %29 in 0 : vector<8x2xf32>, vector<8x2xf32> -> vector<16x2xf32>
    %35 = arith.truncf %34 : vector<16x2xf32> to vector<16x2xbf16>
    %cst_32 = arith.constant dense<0.000000e+00> : vector<48x2xf32>
    %36 = tpu.matmul %26, %35, %cst_32 {dimension_numbers = #tpu.dot_dimension_numbers<[1], [0], [0], [1], [0, 0, 1, 1], [], []>} : vector<48x16xbf16>, vector<16x2xbf16>, vector<48x2xf32> -> vector<48x2xf32>
    %37 = vector.broadcast %27 : vector<48x1xf32> to vector<48x2xf32>
    %38 = arith.addf %36, %37 : vector<48x2xf32>
    %39 = vector.extract_strided_slice %31 {offsets = [0, 0], sizes = [8, 2], strides = [1, 1]} : vector<24x2xf32> to vector<8x2xf32>
    %40 = vector.extract_strided_slice %38 {offsets = [0, 0], sizes = [8, 2], strides = [1, 1]} : vector<48x2xf32> to vector<8x2xf32>
    %41 = arith.addf %39, %40 : vector<8x2xf32>
    %42 = arith.negf %41 : vector<8x2xf32>
    %43 = math.exp %42 : vector<8x2xf32>
    %cst_33 = arith.constant 1.000000e+00 : f32
    %44 = vector.broadcast %cst_33 : f32 to vector<8x2xf32>
    %45 = arith.addf %44, %43 : vector<8x2xf32>
    %46 = arith.divf %44, %45 : vector<8x2xf32>
    %47 = vector.extract_strided_slice %31 {offsets = [8, 0], sizes = [8, 2], strides = [1, 1]} : vector<24x2xf32> to vector<8x2xf32>
    %48 = vector.extract_strided_slice %38 {offsets = [8, 0], sizes = [8, 2], strides = [1, 1]} : vector<48x2xf32> to vector<8x2xf32>
    %49 = arith.addf %47, %48 : vector<8x2xf32>
    %50 = arith.negf %49 : vector<8x2xf32>
    %51 = math.exp %50 : vector<8x2xf32>
    %cst_34 = arith.constant 1.000000e+00 : f32
    %52 = vector.broadcast %cst_34 : f32 to vector<8x2xf32>
    %53 = arith.addf %52, %51 : vector<8x2xf32>
    %54 = arith.divf %52, %53 : vector<8x2xf32>
    %55 = vector.extract_strided_slice %31 {offsets = [16, 0], sizes = [8, 2], strides = [1, 1]} : vector<24x2xf32> to vector<8x2xf32>
    %56 = vector.extract_strided_slice %38 {offsets = [16, 0], sizes = [8, 2], strides = [1, 1]} : vector<48x2xf32> to vector<8x2xf32>
    %57 = arith.mulf %46, %56 : vector<8x2xf32>
    %58 = arith.addf %55, %57 : vector<8x2xf32>
    %59 = math.tanh %58 : vector<8x2xf32>
    %cst_35 = arith.constant 1.000000e+00 : f32
    %60 = vector.broadcast %cst_35 : f32 to vector<8x2xf32>
    %61 = arith.subf %60, %54 : vector<8x2xf32>
    %62 = arith.mulf %61, %59 : vector<8x2xf32>
    %63 = arith.mulf %54, %28 : vector<8x2xf32>
    %64 = arith.addf %62, %63 : vector<8x2xf32>
    %65 = vector.extract_strided_slice %33 {offsets = [0, 0], sizes = [8, 2], strides = [1, 1]} : vector<24x2xf32> to vector<8x2xf32>
    %66 = vector.extract_strided_slice %38 {offsets = [24, 0], sizes = [8, 2], strides = [1, 1]} : vector<48x2xf32> to vector<8x2xf32>
    %67 = arith.addf %65, %66 : vector<8x2xf32>
    %68 = arith.negf %67 : vector<8x2xf32>
    %69 = math.exp %68 : vector<8x2xf32>
    %cst_36 = arith.constant 1.000000e+00 : f32
    %70 = vector.broadcast %cst_36 : f32 to vector<8x2xf32>
    %71 = arith.addf %70, %69 : vector<8x2xf32>
    %72 = arith.divf %70, %71 : vector<8x2xf32>
    %73 = vector.extract_strided_slice %33 {offsets = [8, 0], sizes = [8, 2], strides = [1, 1]} : vector<24x2xf32> to vector<8x2xf32>
    %74 = vector.extract_strided_slice %38 {offsets = [32, 0], sizes = [8, 2], strides = [1, 1]} : vector<48x2xf32> to vector<8x2xf32>
    %75 = arith.addf %73, %74 : vector<8x2xf32>
    %76 = arith.negf %75 : vector<8x2xf32>
    %77 = math.exp %76 : vector<8x2xf32>
    %cst_37 = arith.constant 1.000000e+00 : f32
    %78 = vector.broadcast %cst_37 : f32 to vector<8x2xf32>
    %79 = arith.addf %78, %77 : vector<8x2xf32>
    %80 = arith.divf %78, %79 : vector<8x2xf32>
    %81 = vector.extract_strided_slice %33 {offsets = [16, 0], sizes = [8, 2], strides = [1, 1]} : vector<24x2xf32> to vector<8x2xf32>
    %82 = vector.extract_strided_slice %38 {offsets = [40, 0], sizes = [8, 2], strides = [1, 1]} : vector<48x2xf32> to vector<8x2xf32>
    %83 = arith.mulf %72, %82 : vector<8x2xf32>
    %84 = arith.addf %81, %83 : vector<8x2xf32>
    %85 = math.tanh %84 : vector<8x2xf32>
    %cst_38 = arith.constant 1.000000e+00 : f32
    %86 = vector.broadcast %cst_38 : f32 to vector<8x2xf32>
    %87 = arith.subf %86, %80 : vector<8x2xf32>
    %88 = arith.mulf %87, %85 : vector<8x2xf32>
    %89 = arith.mulf %80, %29 : vector<8x2xf32>
    %90 = arith.addf %88, %89 : vector<8x2xf32>
    %c0_39 = arith.constant 0 : index
    %c0_40 = arith.constant 0 : index
    %c0_41 = arith.constant 0 : index
    %91 = vector.load %arg13[%c0_39, %c0_40, %c0_41] : memref<3x16x2xf32, #tpu.memory_space<vmem>>, vector<1x8x2xf32>
    %92 = vector.shape_cast %91 : vector<1x8x2xf32> to vector<8x2xf32>
    %93 = vector.shape_cast %64 : vector<8x2xf32> to vector<1x8x2xf32>
    tpu.vector_store %arg13[%c0_39, %c0_40, %c0_41], %93 {strides = array<i32>} : memref<3x16x2xf32, #tpu.memory_space<vmem>>, vector<1x8x2xf32>,
    %c2_42 = arith.constant 2 : index
    %c8 = arith.constant 8 : index
    %c0_43 = arith.constant 0 : index
    %94 = vector.load %arg13[%c2_42, %c8, %c0_43] : memref<3x16x2xf32, #tpu.memory_space<vmem>>, vector<1x8x2xf32>
    %95 = vector.shape_cast %94 : vector<1x8x2xf32> to vector<8x2xf32>
    %96 = vector.shape_cast %90 : vector<8x2xf32> to vector<1x8x2xf32>
    tpu.vector_store %arg13[%c2_42, %c8, %c0_43], %96 {strides = array<i32>} : memref<3x16x2xf32, #tpu.memory_space<vmem>>, vector<1x8x2xf32>,
    %c1_44 = arith.constant 1 : index
    %c0_45 = arith.constant 0 : index
    %c0_46 = arith.constant 0 : index
    %97 = vector.load %arg12[%c1_44, %c0_45, %c0_46] : memref<3x48x2xf32, #tpu.memory_space<vmem>>, vector<1x24x2xf32>
    %98 = vector.shape_cast %97 : vector<1x24x2xf32> to vector<24x2xf32>
    %c1_47 = arith.constant 1 : index
    %c24_48 = arith.constant 24 : index
    %c0_49 = arith.constant 0 : index
    %99 = vector.load %arg12[%c1_47, %c24_48, %c0_49] : memref<3x48x2xf32, #tpu.memory_space<vmem>>, vector<1x24x2xf32>
    %100 = vector.shape_cast %99 : vector<1x24x2xf32> to vector<24x2xf32>
    %101 = tpu.concatenate %64, %90 in 0 : vector<8x2xf32>, vector<8x2xf32> -> vector<16x2xf32>
    %102 = arith.truncf %101 : vector<16x2xf32> to vector<16x2xbf16>
    %cst_50 = arith.constant dense<0.000000e+00> : vector<48x2xf32>
    %103 = tpu.matmul %26, %102, %cst_50 {dimension_numbers = #tpu.dot_dimension_numbers<[1], [0], [0], [1], [0, 0, 1, 1], [], []>} : vector<48x16xbf16>, vector<16x2xbf16>, vector<48x2xf32> -> vector<48x2xf32>
    %104 = vector.broadcast %27 : vector<48x1xf32> to vector<48x2xf32>
    %105 = arith.addf %103, %104 : vector<48x2xf32>
    %106 = vector.extract_strided_slice %98 {offsets = [0, 0], sizes = [8, 2], strides = [1, 1]} : vector<24x2xf32> to vector<8x2xf32>
    %107 = vector.extract_strided_slice %105 {offsets = [0, 0], sizes = [8, 2], strides = [1, 1]} : vector<48x2xf32> to vector<8x2xf32>
    %108 = arith.addf %106, %107 : vector<8x2xf32>
    %109 = arith.negf %108 : vector<8x2xf32>
    %110 = math.exp %109 : vector<8x2xf32>
    %cst_51 = arith.constant 1.000000e+00 : f32
    %111 = vector.broadcast %cst_51 : f32 to vector<8x2xf32>
    %112 = arith.addf %111, %110 : vector<8x2xf32>
    %113 = arith.divf %111, %112 : vector<8x2xf32>
    %114 = vector.extract_strided_slice %98 {offsets = [8, 0], sizes = [8, 2], strides = [1, 1]} : vector<24x2xf32> to vector<8x2xf32>
    %115 = vector.extract_strided_slice %105 {offsets = [8, 0], sizes = [8, 2], strides = [1, 1]} : vector<48x2xf32> to vector<8x2xf32>
    %116 = arith.addf %114, %115 : vector<8x2xf32>
    %117 = arith.negf %116 : vector<8x2xf32>
    %118 = math.exp %117 : vector<8x2xf32>
    %cst_52 = arith.constant 1.000000e+00 : f32
    %119 = vector.broadcast %cst_52 : f32 to vector<8x2xf32>
    %120 = arith.addf %119, %118 : vector<8x2xf32>
    %121 = arith.divf %119, %120 : vector<8x2xf32>
    %122 = vector.extract_strided_slice %98 {offsets = [16, 0], sizes = [8, 2], strides = [1, 1]} : vector<24x2xf32> to vector<8x2xf32>
    %123 = vector.extract_strided_slice %105 {offsets = [16, 0], sizes = [8, 2], strides = [1, 1]} : vector<48x2xf32> to vector<8x2xf32>
    %124 = arith.mulf %113, %123 : vector<8x2xf32>
    %125 = arith.addf %122, %124 : vector<8x2xf32>
    %126 = math.tanh %125 : vector<8x2xf32>
    %cst_53 = arith.constant 1.000000e+00 : f32
    %127 = vector.broadcast %cst_53 : f32 to vector<8x2xf32>
    %128 = arith.subf %127, %121 : vector<8x2xf32>
    %129 = arith.mulf %128, %126 : vector<8x2xf32>
    %130 = arith.mulf %121, %64 : vector<8x2xf32>
    %131 = arith.addf %129, %130 : vector<8x2xf32>
    %132 = vector.extract_strided_slice %100 {offsets = [0, 0], sizes = [8, 2], strides = [1, 1]} : vector<24x2xf32> to vector<8x2xf32>
    %133 = vector.extract_strided_slice %105 {offsets = [24, 0], sizes = [8, 2], strides = [1, 1]} : vector<48x2xf32> to vector<8x2xf32>
    %134 = arith.addf %132, %133 : vector<8x2xf32>
    %135 = arith.negf %134 : vector<8x2xf32>
    %136 = math.exp %135 : vector<8x2xf32>
    %cst_54 = arith.constant 1.000000e+00 : f32
    %137 = vector.broadcast %cst_54 : f32 to vector<8x2xf32>
    %138 = arith.addf %137, %136 : vector<8x2xf32>
    %139 = arith.divf %137, %138 : vector<8x2xf32>
    %140 = vector.extract_strided_slice %100 {offsets = [8, 0], sizes = [8, 2], strides = [1, 1]} : vector<24x2xf32> to vector<8x2xf32>
    %141 = vector.extract_strided_slice %105 {offsets = [32, 0], sizes = [8, 2], strides = [1, 1]} : vector<48x2xf32> to vector<8x2xf32>
    %142 = arith.addf %140, %141 : vector<8x2xf32>
    %143 = arith.negf %142 : vector<8x2xf32>
    %144 = math.exp %143 : vector<8x2xf32>
    %cst_55 = arith.constant 1.000000e+00 : f32
    %145 = vector.broadcast %cst_55 : f32 to vector<8x2xf32>
    %146 = arith.addf %145, %144 : vector<8x2xf32>
    %147 = arith.divf %145, %146 : vector<8x2xf32>
    %148 = vector.extract_strided_slice %100 {offsets = [16, 0], sizes = [8, 2], strides = [1, 1]} : vector<24x2xf32> to vector<8x2xf32>
    %149 = vector.extract_strided_slice %105 {offsets = [40, 0], sizes = [8, 2], strides = [1, 1]} : vector<48x2xf32> to vector<8x2xf32>
    %150 = arith.mulf %139, %149 : vector<8x2xf32>
    %151 = arith.addf %148, %150 : vector<8x2xf32>
    %152 = math.tanh %151 : vector<8x2xf32>
    %cst_56 = arith.constant 1.000000e+00 : f32
    %153 = vector.broadcast %cst_56 : f32 to vector<8x2xf32>
    %154 = arith.subf %153, %147 : vector<8x2xf32>
    %155 = arith.mulf %154, %152 : vector<8x2xf32>
    %156 = arith.mulf %147, %90 : vector<8x2xf32>
    %157 = arith.addf %155, %156 : vector<8x2xf32>
    %c1_57 = arith.constant 1 : index
    %c0_58 = arith.constant 0 : index
    %c0_59 = arith.constant 0 : index
    %158 = vector.load %arg13[%c1_57, %c0_58, %c0_59] : memref<3x16x2xf32, #tpu.memory_space<vmem>>, vector<1x8x2xf32>
    %159 = vector.shape_cast %158 : vector<1x8x2xf32> to vector<8x2xf32>
    %160 = vector.shape_cast %131 : vector<8x2xf32> to vector<1x8x2xf32>
    tpu.vector_store %arg13[%c1_57, %c0_58, %c0_59], %160 {strides = array<i32>} : memref<3x16x2xf32, #tpu.memory_space<vmem>>, vector<1x8x2xf32>,
    %c1_60 = arith.constant 1 : index
    %c8_61 = arith.constant 8 : index
    %c0_62 = arith.constant 0 : index
    %161 = vector.load %arg13[%c1_60, %c8_61, %c0_62] : memref<3x16x2xf32, #tpu.memory_space<vmem>>, vector<1x8x2xf32>
    %162 = vector.shape_cast %161 : vector<1x8x2xf32> to vector<8x2xf32>
    %163 = vector.shape_cast %157 : vector<8x2xf32> to vector<1x8x2xf32>
    tpu.vector_store %arg13[%c1_60, %c8_61, %c0_62], %163 {strides = array<i32>} : memref<3x16x2xf32, #tpu.memory_space<vmem>>, vector<1x8x2xf32>,
    %c2_63 = arith.constant 2 : index
    %c0_64 = arith.constant 0 : index
    %c0_65 = arith.constant 0 : index
    %164 = vector.load %arg12[%c2_63, %c0_64, %c0_65] : memref<3x48x2xf32, #tpu.memory_space<vmem>>, vector<1x24x2xf32>
    %165 = vector.shape_cast %164 : vector<1x24x2xf32> to vector<24x2xf32>
    %c0_66 = arith.constant 0 : index
    %c24_67 = arith.constant 24 : index
    %c0_68 = arith.constant 0 : index
    %166 = vector.load %arg12[%c0_66, %c24_67, %c0_68] : memref<3x48x2xf32, #tpu.memory_space<vmem>>, vector<1x24x2xf32>
    %167 = vector.shape_cast %166 : vector<1x24x2xf32> to vector<24x2xf32>
    %168 = tpu.concatenate %131, %157 in 0 : vector<8x2xf32>, vector<8x2xf32> -> vector<16x2xf32>
    %169 = arith.truncf %168 : vector<16x2xf32> to vector<16x2xbf16>
    %cst_69 = arith.constant dense<0.000000e+00> : vector<48x2xf32>
    %170 = tpu.matmul %26, %169, %cst_69 {dimension_numbers = #tpu.dot_dimension_numbers<[1], [0], [0], [1], [0, 0, 1, 1], [], []>} : vector<48x16xbf16>, vector<16x2xbf16>, vector<48x2xf32> -> vector<48x2xf32>
    %171 = vector.broadcast %27 : vector<48x1xf32> to vector<48x2xf32>
    %172 = arith.addf %170, %171 : vector<48x2xf32>
    %173 = vector.extract_strided_slice %165 {offsets = [0, 0], sizes = [8, 2], strides = [1, 1]} : vector<24x2xf32> to vector<8x2xf32>
    %174 = vector.extract_strided_slice %172 {offsets = [0, 0], sizes = [8, 2], strides = [1, 1]} : vector<48x2xf32> to vector<8x2xf32>
    %175 = arith.addf %173, %174 : vector<8x2xf32>
    %176 = arith.negf %175 : vector<8x2xf32>
    %177 = math.exp %176 : vector<8x2xf32>
    %cst_70 = arith.constant 1.000000e+00 : f32
    %178 = vector.broadcast %cst_70 : f32 to vector<8x2xf32>
    %179 = arith.addf %178, %177 : vector<8x2xf32>
    %180 = arith.divf %178, %179 : vector<8x2xf32>
    %181 = vector.extract_strided_slice %165 {offsets = [8, 0], sizes = [8, 2], strides = [1, 1]} : vector<24x2xf32> to vector<8x2xf32>
    %182 = vector.extract_strided_slice %172 {offsets = [8, 0], sizes = [8, 2], strides = [1, 1]} : vector<48x2xf32> to vector<8x2xf32>
    %183 = arith.addf %181, %182 : vector<8x2xf32>
    %184 = arith.negf %183 : vector<8x2xf32>
    %185 = math.exp %184 : vector<8x2xf32>
    %cst_71 = arith.constant 1.000000e+00 : f32
    %186 = vector.broadcast %cst_71 : f32 to vector<8x2xf32>
    %187 = arith.addf %186, %185 : vector<8x2xf32>
    %188 = arith.divf %186, %187 : vector<8x2xf32>
    %189 = vector.extract_strided_slice %165 {offsets = [16, 0], sizes = [8, 2], strides = [1, 1]} : vector<24x2xf32> to vector<8x2xf32>
    %190 = vector.extract_strided_slice %172 {offsets = [16, 0], sizes = [8, 2], strides = [1, 1]} : vector<48x2xf32> to vector<8x2xf32>
    %191 = arith.mulf %180, %190 : vector<8x2xf32>
    %192 = arith.addf %189, %191 : vector<8x2xf32>
    %193 = math.tanh %192 : vector<8x2xf32>
    %cst_72 = arith.constant 1.000000e+00 : f32
    %194 = vector.broadcast %cst_72 : f32 to vector<8x2xf32>
    %195 = arith.subf %194, %188 : vector<8x2xf32>
    %196 = arith.mulf %195, %193 : vector<8x2xf32>
    %197 = arith.mulf %188, %131 : vector<8x2xf32>
    %198 = arith.addf %196, %197 : vector<8x2xf32>
    %199 = vector.extract_strided_slice %167 {offsets = [0, 0], sizes = [8, 2], strides = [1, 1]} : vector<24x2xf32> to vector<8x2xf32>
    %200 = vector.extract_strided_slice %172 {offsets = [24, 0], sizes = [8, 2], strides = [1, 1]} : vector<48x2xf32> to vector<8x2xf32>
    %201 = arith.addf %199, %200 : vector<8x2xf32>
    %202 = arith.negf %201 : vector<8x2xf32>
    %203 = math.exp %202 : vector<8x2xf32>
    %cst_73 = arith.constant 1.000000e+00 : f32
    %204 = vector.broadcast %cst_73 : f32 to vector<8x2xf32>
    %205 = arith.addf %204, %203 : vector<8x2xf32>
    %206 = arith.divf %204, %205 : vector<8x2xf32>
    %207 = vector.extract_strided_slice %167 {offsets = [8, 0], sizes = [8, 2], strides = [1, 1]} : vector<24x2xf32> to vector<8x2xf32>
    %208 = vector.extract_strided_slice %172 {offsets = [32, 0], sizes = [8, 2], strides = [1, 1]} : vector<48x2xf32> to vector<8x2xf32>
    %209 = arith.addf %207, %208 : vector<8x2xf32>
    %210 = arith.negf %209 : vector<8x2xf32>
    %211 = math.exp %210 : vector<8x2xf32>
    %cst_74 = arith.constant 1.000000e+00 : f32
    %212 = vector.broadcast %cst_74 : f32 to vector<8x2xf32>
    %213 = arith.addf %212, %211 : vector<8x2xf32>
    %214 = arith.divf %212, %213 : vector<8x2xf32>
    %215 = vector.extract_strided_slice %167 {offsets = [16, 0], sizes = [8, 2], strides = [1, 1]} : vector<24x2xf32> to vector<8x2xf32>
    %216 = vector.extract_strided_slice %172 {offsets = [40, 0], sizes = [8, 2], strides = [1, 1]} : vector<48x2xf32> to vector<8x2xf32>
    %217 = arith.mulf %206, %216 : vector<8x2xf32>
    %218 = arith.addf %215, %217 : vector<8x2xf32>
    %219 = math.tanh %218 : vector<8x2xf32>
    %cst_75 = arith.constant 1.000000e+00 : f32
    %220 = vector.broadcast %cst_75 : f32 to vector<8x2xf32>
    %221 = arith.subf %220, %214 : vector<8x2xf32>
    %222 = arith.mulf %221, %219 : vector<8x2xf32>
    %223 = arith.mulf %214, %157 : vector<8x2xf32>
    %224 = arith.addf %222, %223 : vector<8x2xf32>
    %c2_76 = arith.constant 2 : index
    %c0_77 = arith.constant 0 : index
    %c0_78 = arith.constant 0 : index
    %225 = vector.load %arg13[%c2_76, %c0_77, %c0_78] : memref<3x16x2xf32, #tpu.memory_space<vmem>>, vector<1x8x2xf32>
    %226 = vector.shape_cast %225 : vector<1x8x2xf32> to vector<8x2xf32>
    %227 = vector.shape_cast %198 : vector<8x2xf32> to vector<1x8x2xf32>
    tpu.vector_store %arg13[%c2_76, %c0_77, %c0_78], %227 {strides = array<i32>} : memref<3x16x2xf32, #tpu.memory_space<vmem>>, vector<1x8x2xf32>,
    %c0_79 = arith.constant 0 : index
    %c8_80 = arith.constant 8 : index
    %c0_81 = arith.constant 0 : index
    %228 = vector.load %arg13[%c0_79, %c8_80, %c0_81] : memref<3x16x2xf32, #tpu.memory_space<vmem>>, vector<1x8x2xf32>
    %229 = vector.shape_cast %228 : vector<1x8x2xf32> to vector<8x2xf32>
    %230 = vector.shape_cast %224 : vector<8x2xf32> to vector<1x8x2xf32>
    tpu.vector_store %arg13[%c0_79, %c8_80, %c0_81], %230 {strides = array<i32>} : memref<3x16x2xf32, #tpu.memory_space<vmem>>, vector<1x8x2xf32>,
    %c0_82 = arith.constant 0 : index
    %c0_83 = arith.constant 0 : index
    %231 = vector.load %arg6[%c0_82, %c0_83] : memref<16x16xbf16, #tpu.memory_space<vmem>>, vector<16x16xbf16>
    %c0_84 = arith.constant 0 : index
    %c0_85 = arith.constant 0 : index
    %232 = vector.load %arg7[%c0_84, %c0_85] : memref<16x1xf32, #tpu.memory_space<vmem>>, vector<16x1xf32>
    %c0_86 = arith.constant 0 : index
    %c0_87 = arith.constant 0 : index
    %233 = vector.load %arg8[%c0_86, %c0_87] : memref<1x16xbf16, #tpu.memory_space<vmem>>, vector<1x16xbf16>
    %c0_88 = arith.constant 0 : index
    %c0_89 = arith.constant 0 : index
    %c0_90 = arith.constant 0 : index
    %234 = vector.load %arg13[%c0_88, %c0_89, %c0_90] : memref<3x16x2xf32, #tpu.memory_space<vmem>>, vector<1x16x2xf32>
    %235 = vector.shape_cast %234 : vector<1x16x2xf32> to vector<16x2xf32>
    %236 = arith.truncf %235 : vector<16x2xf32> to vector<16x2xbf16>
    %cst_91 = arith.constant dense<0.000000e+00> : vector<16x2xf32>
    %237 = tpu.matmul %231, %236, %cst_91 {dimension_numbers = #tpu.dot_dimension_numbers<[1], [0], [0], [1], [0, 0, 1, 1], [], []>} : vector<16x16xbf16>, vector<16x2xbf16>, vector<16x2xf32> -> vector<16x2xf32>
    %238 = vector.broadcast %232 : vector<16x1xf32> to vector<16x2xf32>
    %239 = arith.addf %237, %238 : vector<16x2xf32>
    %cst_92 = arith.constant 0.000000e+00 : f32
    %240 = vector.broadcast %cst_92 : f32 to vector<16x2xf32>
    %241 = arith.maximumf %239, %240 : vector<16x2xf32>
    %242 = arith.truncf %241 : vector<16x2xf32> to vector<16x2xbf16>
    %cst_93 = arith.constant dense<0.000000e+00> : vector<1x2xf32>
    %243 = tpu.matmul %233, %242, %cst_93 {dimension_numbers = #tpu.dot_dimension_numbers<[1], [0], [0], [1], [0, 0, 1, 1], [], []>} : vector<1x16xbf16>, vector<16x2xbf16>, vector<1x2xf32> -> vector<1x2xf32>
    %c1_94 = arith.constant 1 : index
    %c0_95 = arith.constant 0 : index
    %c0_96 = arith.constant 0 : index
    %244 = vector.load %arg13[%c1_94, %c0_95, %c0_96] : memref<3x16x2xf32, #tpu.memory_space<vmem>>, vector<1x16x2xf32>
    %245 = vector.shape_cast %244 : vector<1x16x2xf32> to vector<16x2xf32>
    %246 = arith.truncf %245 : vector<16x2xf32> to vector<16x2xbf16>
    %cst_97 = arith.constant dense<0.000000e+00> : vector<16x2xf32>
    %247 = tpu.matmul %231, %246, %cst_97 {dimension_numbers = #tpu.dot_dimension_numbers<[1], [0], [0], [1], [0, 0, 1, 1], [], []>} : vector<16x16xbf16>, vector<16x2xbf16>, vector<16x2xf32> -> vector<16x2xf32>
    %248 = vector.broadcast %232 : vector<16x1xf32> to vector<16x2xf32>
    %249 = arith.addf %247, %248 : vector<16x2xf32>
    %cst_98 = arith.constant 0.000000e+00 : f32
    %250 = vector.broadcast %cst_98 : f32 to vector<16x2xf32>
    %251 = arith.maximumf %249, %250 : vector<16x2xf32>
    %252 = arith.truncf %251 : vector<16x2xf32> to vector<16x2xbf16>
    %cst_99 = arith.constant dense<0.000000e+00> : vector<1x2xf32>
    %253 = tpu.matmul %233, %252, %cst_99 {dimension_numbers = #tpu.dot_dimension_numbers<[1], [0], [0], [1], [0, 0, 1, 1], [], []>} : vector<1x16xbf16>, vector<16x2xbf16>, vector<1x2xf32> -> vector<1x2xf32>
    %c2_100 = arith.constant 2 : index
    %c0_101 = arith.constant 0 : index
    %c0_102 = arith.constant 0 : index
    %254 = vector.load %arg13[%c2_100, %c0_101, %c0_102] : memref<3x16x2xf32, #tpu.memory_space<vmem>>, vector<1x16x2xf32>
    %255 = vector.shape_cast %254 : vector<1x16x2xf32> to vector<16x2xf32>
    %256 = arith.truncf %255 : vector<16x2xf32> to vector<16x2xbf16>
    %cst_103 = arith.constant dense<0.000000e+00> : vector<16x2xf32>
    %257 = tpu.matmul %231, %256, %cst_103 {dimension_numbers = #tpu.dot_dimension_numbers<[1], [0], [0], [1], [0, 0, 1, 1], [], []>} : vector<16x16xbf16>, vector<16x2xbf16>, vector<16x2xf32> -> vector<16x2xf32>
    %258 = vector.broadcast %232 : vector<16x1xf32> to vector<16x2xf32>
    %259 = arith.addf %257, %258 : vector<16x2xf32>
    %cst_104 = arith.constant 0.000000e+00 : f32
    %260 = vector.broadcast %cst_104 : f32 to vector<16x2xf32>
    %261 = arith.maximumf %259, %260 : vector<16x2xf32>
    %262 = arith.truncf %261 : vector<16x2xf32> to vector<16x2xbf16>
    %cst_105 = arith.constant dense<0.000000e+00> : vector<1x2xf32>
    %263 = tpu.matmul %233, %262, %cst_105 {dimension_numbers = #tpu.dot_dimension_numbers<[1], [0], [0], [1], [0, 0, 1, 1], [], []>} : vector<1x16xbf16>, vector<16x2xbf16>, vector<1x2xf32> -> vector<1x2xf32>
    %264 = tpu.concatenate %243, %253, %263 in 0 : vector<1x2xf32>, vector<1x2xf32>, vector<1x2xf32> -> vector<3x2xf32>
    %cst_106 = arith.constant dense<0xFF800000> : vector<2xf32>
    %265 = vector.multi_reduction <maximumf>, %264, %cst_106 [0] : vector<3x2xf32> to vector<2xf32>
    %266 = vector.shape_cast %265 : vector<2xf32> to vector<1x2xf32>
    %267 = vector.broadcast %266 : vector<1x2xf32> to vector<3x2xf32>
    %268 = arith.subf %264, %267 : vector<3x2xf32>
    %269 = math.exp %268 : vector<3x2xf32>
    %cst_107 = arith.constant dense<0.000000e+00> : vector<2xf32>
    %270 = vector.multi_reduction <add>, %269, %cst_107 [0] : vector<3x2xf32> to vector<2xf32>
    %271 = vector.shape_cast %270 : vector<2xf32> to vector<1x2xf32>
    %272 = tpu.reciprocal %271 {approx = true} : vector<1x2xf32> -> vector<1x2xf32>
    %273 = vector.broadcast %272 : vector<1x2xf32> to vector<3x2xf32>
    %274 = arith.mulf %269, %273 : vector<3x2xf32>
    %c0_108 = arith.constant 0 : index
    %c0_109 = arith.constant 0 : index
    %c0_110 = arith.constant 0 : index
    %275 = vector.load %arg13[%c0_108, %c0_109, %c0_110] : memref<3x16x2xf32, #tpu.memory_space<vmem>>, vector<3x16x2xf32>
    %276 = vector.shape_cast %274 : vector<3x2xf32> to vector<3x1x2xf32>
    %277 = vector.broadcast %276 : vector<3x1x2xf32> to vector<3x16x2xf32>
    %278 = arith.mulf %275, %277 : vector<3x16x2xf32>
    %cst_111 = arith.constant dense<0.000000e+00> : vector<16x2xf32>
    %279 = vector.multi_reduction <add>, %278, %cst_111 [0] : vector<3x16x2xf32> to vector<16x2xf32>
    %c0_112 = arith.constant 0 : index
    %c0_113 = arith.constant 0 : index
    %280 = vector.load %arg9[%c0_112, %c0_113] : memref<4x16xbf16, #tpu.memory_space<vmem>>, vector<4x16xbf16>
    %281 = arith.truncf %279 : vector<16x2xf32> to vector<16x2xbf16>
    %cst_114 = arith.constant dense<0.000000e+00> : vector<4x2xf32>
    %282 = tpu.matmul %280, %281, %cst_114 {dimension_numbers = #tpu.dot_dimension_numbers<[1], [0], [0], [1], [0, 0, 1, 1], [], []>} : vector<4x16xbf16>, vector<16x2xbf16>, vector<4x2xf32> -> vector<4x2xf32>
    %c0_115 = arith.constant 0 : index
    %c0_116 = arith.constant 0 : index
    %283 = vector.load %arg10[%c0_115, %c0_116] : memref<4x1xf32, #tpu.memory_space<vmem>>, vector<4x1xf32>
    %284 = vector.broadcast %283 : vector<4x1xf32> to vector<4x2xf32>
    %285 = arith.addf %282, %284 : vector<4x2xf32>
    %c0_117 = arith.constant 0 : index
    %c0_118 = arith.constant 0 : index
    %286 = vector.load %arg11[%c0_117, %c0_118] : memref<4x2xf32, #tpu.memory_space<vmem>>, vector<4x2xf32>
    tpu.vector_store %arg11[%c0_117, %c0_118], %285 {strides = array<i32>} : memref<4x2xf32, #tpu.memory_space<vmem>>, vector<4x2xf32>,
    return
  }
  func.func @transform_0(%arg0: i32) -> (i32, i32, i32) {
    %c0_i32 = arith.constant 0 : i32
    %c0_i32_0 = arith.constant 0 : i32
    %c0_i32_1 = arith.constant 0 : i32
    return %c0_i32, %c0_i32_0, %arg0 : i32, i32, i32
  }
  func.func @transform_1(%arg0: i32) -> (i32, i32) {
    %c0_i32 = arith.constant 0 : i32
    %c0_i32_0 = arith.constant 0 : i32
    %c0_i32_1 = arith.constant 0 : i32
    return %c0_i32, %c0_i32_0 : i32, i32
  }
  func.func @transform_2(%arg0: i32) -> (i32, i32) {
    %c0_i32 = arith.constant 0 : i32
    %c0_i32_0 = arith.constant 0 : i32
    %c0_i32_1 = arith.constant 0 : i32
    return %c0_i32, %c0_i32_0 : i32, i32
  }
  func.func @transform_3(%arg0: i32) -> (i32, i32) {
    %c0_i32 = arith.constant 0 : i32
    %c0_i32_0 = arith.constant 0 : i32
    %c0_i32_1 = arith.constant 0 : i32
    return %c0_i32, %c0_i32_0 : i32, i32
  }
  func.func @transform_4(%arg0: i32) -> (i32, i32) {
    %c0_i32 = arith.constant 0 : i32
    %c0_i32_0 = arith.constant 0 : i32
    %c0_i32_1 = arith.constant 0 : i32
    return %c0_i32, %c0_i32_0 : i32, i32
  }
  func.func @transform_5(%arg0: i32) -> (i32, i32) {
    %c0_i32 = arith.constant 0 : i32
    %c0_i32_0 = arith.constant 0 : i32
    %c0_i32_1 = arith.constant 0 : i32
    return %c0_i32, %c0_i32_0 : i32, i32
  }
  func.func @transform_6(%arg0: i32) -> (i32, i32) {
    %c0_i32 = arith.constant 0 : i32
    %c0_i32_0 = arith.constant 0 : i32
    %c0_i32_1 = arith.constant 0 : i32
    return %c0_i32, %c0_i32_0 : i32, i32
  }
  func.func @transform_7(%arg0: i32) -> (i32, i32) {
    %c0_i32 = arith.constant 0 : i32
    %c0_i32_0 = arith.constant 0 : i32
    %c0_i32_1 = arith.constant 0 : i32
    return %c0_i32, %c0_i32_0 : i32, i32
  }
  func.func @transform_8(%arg0: i32) -> (i32, i32) {
    %c0_i32 = arith.constant 0 : i32
    %c0_i32_0 = arith.constant 0 : i32
    %c0_i32_1 = arith.constant 0 : i32
    return %c0_i32, %c0_i32_0 : i32, i32
  }
  func.func @transform_9(%arg0: i32) -> (i32, i32) {
    %c0_i32 = arith.constant 0 : i32
    %c0_i32_0 = arith.constant 0 : i32
    %c0_i32_1 = arith.constant 0 : i32
    return %c0_i32, %c0_i32_0 : i32, i32
  }
  func.func @transform_10(%arg0: i32) -> (i32, i32) {
    %c0_i32 = arith.constant 0 : i32
    %c0_i32_0 = arith.constant 0 : i32
    return %c0_i32, %arg0 : i32, i32
  }
}

</mosaic_0001>

<bundles_post_ra>
// kernel: han_forward.3
= control target key start
LH: loop header
LB: loop body
LE: loop exit
PB: predicated region body
PF: predicated region fallthrough
CT: control target
= control target key end

     0   :  { %v1444_v0 = vmov 0.0   ;;  %vm1445_vm0 = vmmov 0   ;;  %vm101_vm1 = vcmask 130048   ;;  %v1446_v4 = vmov 0   ;;  %s1812_s0 = inlined_call_operand.vmem [shape: bf16[3,16,2], index: 0, kind: input, shape index: {}]   ;;  %s1813_s1 = inlined_call_operand.vmem [shape: bf16[48,16], index: 1, kind: input, shape index: {}]   ;;  %s1814_s3 = inlined_call_operand.vmem [shape: bf16[48,16], index: 3, kind: input, shape index: {}]   ;;  %s1815_s2 = inlined_call_operand.vmem [shape: f32[48,1], index: 2, kind: input, shape index: {}]   ;;  %s1816_s4 = inlined_call_operand.vmem [shape: f32[48,1], index: 4, kind: input, shape index: {}]   ;;  %s1817_s6 = inlined_call_operand.vmem [shape: f32[16,1], index: 6, kind: input, shape index: {}]   ;;  %s1818_s9 = inlined_call_operand.vmem [shape: f32[4,1], index: 9, kind: input, shape index: {}]   ;;  %s1819_s5 = inlined_call_operand.vmem [shape: bf16[16,16], index: 5, kind: input, shape index: {}]   ;;  %s1820_s7 = inlined_call_operand.vmem [shape: bf16[1,16], index: 7, kind: input, shape index: {}]   ;;  %s1821_s8 = inlined_call_operand.vmem [shape: bf16[4,16], index: 8, kind: input, shape index: {}]   ;;  %s1822_s10 = inlined_call_operand.vmem [shape: f32[4,2], index: 10, kind: output, shape index: {}]  }
   0x1   :  { %1237 = vmatprep.subr.bf16.mxu0 %v1444_v0  ;;  %1251 = vmatprep.subr.bf16.mxu1 %v1444_v0  ;;  %v1370_v1 = vld [vmem:[%s1812_s0] sm:$0xff]   ;;  %v1371_v2 = vld [vmem:[%s1812_s0 + $0x8] sm:$0xff]   ;;  %v1375_v5 = vld [vmem:[%s1812_s0 + $0x10] sm:$0xff]   ;;  %v1447_v6 = vmov 0.0|0.0   ;;  %vm168_vm2 = vcmask 15360   ;;  %vm1006_vm3 = vcmask 1040384  }
   0x2   :  { %1239 = vmatprep.mubr.msk.bf16.mxu0 %vm1445_vm0, %v1444_v0  ;;  %1253 = vmatprep.mubr.msk.bf16.mxu1 %vm1445_vm0, %v1444_v0  ;;  %v1372_v3 = vld [vmem:[%s1813_s1] sm:$0xff]   ;;  %v1373_v7 = vld [vmem:[%s1813_s1 + $0x8] sm:$0xff]   ;;  %v45_v10 = vld [vmem:[%s1815_s2 + $0x18] sm:$0xff]  ;;  %vm1008_vm4 = vcmask 1041408   ;;  %vm1010_vm5 = vcmask 10240   ;;  %vm1142_vm6 = vcmask 11264  }
   0x3   :  { %1238 = vmatpush3.bf16.msra.mxu0 %v1370_v1  ;;  %1368 = vset.pattern.permute.xlu0 %v1446_v4  ;;  %v42_v8 = vld [vmem:[%s1815_s2] sm:$0xff]  ;;  %v330_v11 = vld [vmem:[%s1816_s4 + $0x18] sm:$0xff]  ;;  %v43_v12 = vld [vmem:[%s1815_s2 + $0x8] sm:$0xff] }
   0x4   :  { %1252 = vmatpush3.bf16.msra.mxu1 %v1371_v2  ;;  %1265 = vmatprep.subr.bf16.mxu0 %v1444_v0  ;;  %v327_v9 = vld [vmem:[%s1816_s4] sm:$0xff]  ;;  %v1374_v13 = vld [vmem:[%s1813_s1 + $0x10] sm:$0xff]   ;;  %v328_v15 = vld [vmem:[%s1816_s4 + $0x8] sm:$0xff] }
   0x5   :  { %1279 = vmatprep.subr.bf16.mxu1 %v1444_v0  ;;  %1369 = vset.pattern.permute.xlu1 %v1446_v4  ;;  %v46_v14 = vld [vmem:[%s1815_s2 + $0x20] sm:$0xff]  ;;  %v44_v17 = vld [vmem:[%s1815_s2 + $0x10] sm:$0xff]  ;;  %v47_v18 = vld [vmem:[%s1815_s2 + $0x28] sm:$0xff] }
   0x6   :  { %1240 = vmatmul.mubr.msk.bf16.vlgmr.msra.gmra.mxu0 %vm101_vm1, %v1372_v3  ;;  %52 = vperm.xlu0 %1368, %v42_v8   ;;  %v331_v16 = vld [vmem:[%s1816_s4 + $0x20] sm:$0xff]  ;;  %v329_v20 = vld [vmem:[%s1816_s4 + $0x10] sm:$0xff]  ;;  %v332_v21 = vld [vmem:[%s1816_s4 + $0x28] sm:$0xff] }
   0x7   :  { %1254 = vmatmul.mubr.msk.bf16.vlgmr.msra.gmra.mxu1 %vm101_vm1, %v1372_v3  ;;  %1243 = vmatprep.mubr.msk.bf16.mxu0 %vm1445_vm0, %v1444_v0  ;;  %v1583_v19 = vld [vmem:[%s1814_s3] sm:$0xff]   ;;  %v716_v23 = vld [vmem:[%s1817_s6 + $0x8] sm:$0xff]  ;;  %v1622_v26 = vld [vmem:[%s1814_s3 + $0x10] sm:$0xff]  }
   0x8   :  { %1257 = vmatprep.mubr.msk.bf16.mxu1 %vm1445_vm0, %v1444_v0  ;;  %1266 = vmatpush3.bf16.msra.mxu0 %v1375_v5  ;;  %v715_v22 = vld [vmem:[%s1817_s6] sm:$0xff]  ;;  %v1607_v24 = vld [vmem:[%s1814_s3 + $0x8] sm:$0xff]  }
   0x9   :  { %1280 = vmatpush3.bf16.msra.mxu1 %v1447_v6  ;;  %1293 = vmatprep.subr.bf16.mxu0 %v1444_v0  ;;  %v1093_v25 = vld [vmem:[%s1818_s9] sm:$0xf] }
   0xa   :  { %1307 = vmatprep.subr.bf16.mxu1 %v1444_v0  ;;  %342 = vperm.xlu1 %1369, %v327_v9  }
   0xb   :  { %67 = vperm.xlu0 %1368, %v45_v10  }
   0xe   :  { %1244 = vmatmul.mubr.msk.bf16.gmra.mxu0 %vm101_vm1, %v1373_v7  ;;  %357 = vperm.xlu1 %1369, %v330_v11  }
   0xf   :  { %1258 = vmatmul.mubr.msk.bf16.gmra.mxu1 %vm101_vm1, %v1373_v7  ;;  %1247 = vmatprep.mubr.msk.bf16.mxu0 %vm1445_vm0, %v1444_v0 }
  0x10   :  { %1261 = vmatprep.mubr.msk.bf16.mxu1 %vm1445_vm0, %v1444_v0  ;;  %57 = vperm.xlu0 %1368, %v43_v12  }
  0x12   :  { %72 = vperm.xlu1 %1369, %v46_v14  }
  0x14   :  { %347 = vperm.xlu0 %1368, %v328_v15  }
  0x16   :  { %1248 = vmatmul.mubr.msk.bf16.gmra.mxu0 %vm101_vm1, %v1374_v13  ;;  %362 = vperm.xlu1 %1369, %v331_v16  }
  0x17   :  { %1262 = vmatmul.mubr.msk.bf16.gmra.mxu1 %vm101_vm1, %v1374_v13  ;;  %1267 = vmatprep.mubr.msk.bf16.mxu0 %vm1445_vm0, %v1444_v0 }
  0x18   :  { %1281 = vmatprep.mubr.msk.bf16.mxu1 %vm1445_vm0, %v1444_v0  ;;  %62 = vperm.xlu0 %1368, %v44_v17  }
  0x1a   :  { %77 = vperm.xlu1 %1369, %v47_v18  }
  0x1c   :  { %352 = vperm.xlu0 %1368, %v329_v20  }
  0x1e   :  { %1268 = vmatmul.mubr.msk.bf16.vlgmr.msra.gmra.mxu0 %vm101_vm1, %v1372_v3  ;;  %367 = vperm.xlu1 %1369, %v332_v21  }
  0x1f   :  { %1282 = vmatmul.mubr.msk.bf16.vlgmr.msra.gmra.mxu1 %vm101_vm1, %v1583_v19  ;;  %1271 = vmatprep.mubr.msk.bf16.mxu0 %vm1445_vm0, %v1444_v0 }
  0x20   :  { %1285 = vmatprep.mubr.msk.bf16.mxu1 %vm1445_vm0, %v1444_v0  ;;  %723 = vperm.xlu0 %1368, %v715_v22  }
  0x22   :  { %728 = vperm.xlu1 %1369, %v716_v23  }
  0x24   :  { %1096 = vperm.xlu0 %1368, %v1093_v25  }
  0x26   :  { %1272 = vmatmul.mubr.msk.bf16.gmra.mxu0 %vm101_vm1, %v1373_v7 }
  0x27   :  { %1286 = vmatmul.mubr.msk.bf16.gmra.mxu1 %vm101_vm1, %v1607_v24  ;;  %1275 = vmatprep.mubr.msk.bf16.mxu0 %vm1445_vm0, %v1444_v0 }
  0x28   :  { %1289 = vmatprep.mubr.msk.bf16.mxu1 %vm1445_vm0, %v1444_v0 }
  0x2e   :  { %1276 = vmatmul.mubr.msk.bf16.gmra.mxu0 %vm101_vm1, %v1374_v13 }
  0x2f   :  { %1290 = vmatmul.mubr.msk.bf16.gmra.mxu1 %vm101_vm1, %v1622_v26  ;;  %1295 = vmatprep.mubr.msk.bf16.mxu0 %vm1445_vm0, %v1444_v0 }
  0x30   :  { %1309 = vmatprep.mubr.msk.bf16.mxu1 %vm1445_vm0, %v1444_v0 }
  0x81   :  { %v53_v27 = vpop.permute.xlu0 %52 }
  0x85   :  { %v1633_v29 = vpop.permute.xlu1 %342 }
  0x86   :  { %v1631_v28 = vpop.permute.xlu0 %67 }
  0x89   :  { %v1637_v31 = vpop.permute.xlu1 %357 }
  0x8b   :  { %v1635_v30 = vpop.permute.xlu0 %57 }
  0x8d   :  { %v1644_v42 = vpop.permute.xlu1 %72 }
  0x8f   :  { %v1639_v33 = vpop.permute.xlu0 %347 }
  0x91   :  { %v1651_v54 = vpop.permute.xlu1 %362 }
  0x93   :  { %v63_v45 = vpop.permute.xlu0 %62 }
  0x95   :  { %v78_v2 = vpop.permute.xlu1 %77 }
  0xc6   :  { %v145_v32 = vpop.f32.mrf.mxu0 }
  0xc7   :  { %v146_v34 = vadd.f32 %v145_v32, %v53_v27  ;;  %v218_v35 = vpop.f32.mrf.mxu1 }
  0xc8   :  { %v219_v36 = vadd.f32 %v218_v35, %v53_v27  ;;  %v1241_v37 = vpop.f32.mrf.mxu0 }
  0xc9   :  { %169 = vst.msk [vmem:[#allocation2] sm:$0xff] %vm168_vm2, %v146_v34  ;;  %v1255_v38 = vpop.f32.mrf.mxu1 }
  0xca   :  { %242 = vst.msk [vmem:[#allocation2 + $0x30] sm:$0xff] %vm168_vm2, %v219_v36  ;;  %v148_v39 = vpop.f32.mrf.mxu0 }
  0xcb   :  { %v149_v40 = vadd.f32 %v148_v39, %v1635_v30  ;;  %v221_v41 = vpop.f32.mrf.mxu1 }
  0xcc   :  { %v222_v43 = vadd.f32 %v221_v41, %v1635_v30  ;;  %v1242_v44 = vpop.f32.mrf.mxu0 }
  0xcd   :  { %170 = vst.msk [vmem:[#allocation2 + $0x8] sm:$0xff] %vm168_vm2, %v149_v40  ;;  %v1256_v46 = vpop.f32.mrf.mxu1 }
  0xce   :  { %243 = vst.msk [vmem:[#allocation2 + $0x38] sm:$0xff] %vm168_vm2, %v222_v43  ;;  %v153_v47 = vpop.f32.mrf.mxu0 }
  0xcf   :  { %v154_v48 = vadd.f32 %v153_v47, %v63_v45  ;;  %v226_v49 = vpop.f32.mrf.mxu1 }
  0xd0   :  { %v227_v50 = vadd.f32 %v226_v49, %v63_v45  ;;  %v1245_v51 = vpop.f32.mrf.mxu0  ;;  %v333_v15 = vld [vmem:[#allocation2] sm:$0xff] }
  0xd1   :  { %171 = vst.msk [vmem:[#allocation2 + $0x10] sm:$0xff] %vm168_vm2, %v154_v48  ;;  %v1259_v52 = vpop.f32.mrf.mxu1 }
  0xd2   :  { %244 = vst.msk [vmem:[#allocation2 + $0x40] sm:$0xff] %vm168_vm2, %v227_v50  ;;  %v156_v53 = vpop.f32.mrf.mxu0 }
  0xd3   :  { %v157_v55 = vadd.f32 %v156_v53, %v1631_v28  ;;  %v229_v56 = vpop.f32.mrf.mxu1 }
  0xd4   :  { %v230_v57 = vadd.f32 %v229_v56, %v1631_v28  ;;  %v1246_v58 = vpop.f32.mrf.mxu0  ;;  %v334_v34 = vld [vmem:[#allocation2 + $0x8] sm:$0xff] }
  0xd5   :  { %172 = vst.msk [vmem:[#allocation2 + $0x18] sm:$0xff] %vm168_vm2, %v157_v55  ;;  %v1260_v59 = vpop.f32.mrf.mxu1 }
  0xd6   :  { %245 = vst.msk [vmem:[#allocation2 + $0x48] sm:$0xff] %vm168_vm2, %v230_v57  ;;  %v161_v60 = vpop.f32.mrf.mxu0 }
  0xd7   :  { %v162_v61 = vadd.f32 %v161_v60, %v1644_v42  ;;  %v234_v62 = vpop.f32.mrf.mxu1 }
  0xd8   :  { %v235_v63 = vadd.f32 %v234_v62, %v1644_v42  ;;  %v1249_v1 = vpop.f32.mrf.mxu0 }
  0xd9   :  { %173 = vst.msk [vmem:[#allocation2 + $0x20] sm:$0xff] %vm168_vm2, %v162_v61  ;;  %v1263_v3 = vpop.f32.mrf.mxu1 }
  0xda   :  { %246 = vst.msk [vmem:[#allocation2 + $0x50] sm:$0xff] %vm168_vm2, %v235_v63  ;;  %v164_v4 = vpop.f32.mrf.mxu0 }
  0xdb   :  { %v165_v5 = vadd.f32 %v164_v4, %v78_v2  ;;  %v237_v6 = vpop.f32.mrf.mxu1 }
  0xdc   :  { %v238_v7 = vadd.f32 %v237_v6, %v78_v2  ;;  %v1250_v8 = vpop.f32.mrf.mxu0 }
  0xdd   :  { %174 = vst.msk [vmem:[#allocation2 + $0x28] sm:$0xff] %vm168_vm2, %v165_v5  ;;  %v1264_v9 = vpop.f32.mrf.mxu1  ;;  %v1676_v5 = vpop.permute.xlu0 %352  ;;  %v335_v8 = vld [vmem:[#allocation2 + $0x10] sm:$0xff] }
  0xde   :  { %247 = vst.msk [vmem:[#allocation2 + $0x58] sm:$0xff] %vm168_vm2, %v238_v7  ;;  %v291_v10 = vpop.f32.mrf.mxu0 }
  0xdf   :  { %v292_v11 = vadd.f32 %v291_v10, %v53_v27  ;;  %v428_v12 = vpop.f32.mrf.mxu1 }
  0xe0   :  { %v429_v13 = vadd.f32 %v428_v12, %v1633_v29  ;;  %v1269_v14 = vpop.f32.mrf.mxu0 }
  0xe1   :  { %315 = vst.msk [vmem:[#allocation2 + $0x60] sm:$0xff] %vm168_vm2, %v292_v11  ;;  %v1283_v16 = vpop.f32.mrf.mxu1 }
  0xe2   :  { %v451_v17 = vadd.f32 %v429_v13, %v333_v15  ;;  %v294_v18 = vpop.f32.mrf.mxu0  ;;  %v1679_v15 = vpop.permute.xlu1 %367 }
  0xe3   :  { %v295_v20 = vadd.f32 %v294_v18, %v1635_v30  ;;  %v431_v21 = vpop.f32.mrf.mxu1 }
  0xe4   :  { %v1173_v22 = vmul.f32 -1.442695, %v451_v17  ;;  %v432_v23 = vadd.f32 %v431_v21, %v1639_v33  ;;  %v1270_v25 = vpop.f32.mrf.mxu0 }
  0xe5   :  { %316 = vst.msk [vmem:[#allocation2 + $0x68] sm:$0xff] %vm168_vm2, %v295_v20  ;;  %v1284_v27 = vpop.f32.mrf.mxu1 }
  0xe6   :  { %1380 = vpow2.f32 %v1173_v22  ;;  %v299_v32 = vpop.f32.mrf.mxu0  ;;  %v458_v37 = vadd.f32 %v432_v23, %v334_v34 }
  0xe7   :  { %v300_v35 = vadd.f32 %v299_v32, %v63_v45  ;;  %v436_v36 = vpop.f32.mrf.mxu1 }
  0xe8   :  { %v1273_v38 = vpop.f32.mrf.mxu0  ;;  %v1174_v43 = vmul.f32 -1.442695, %v458_v37 }
  0xe9   :  { %317 = vst.msk [vmem:[#allocation2 + $0x70] sm:$0xff] %vm168_vm2, %v300_v35  ;;  %v1287_v39 = vpop.f32.mrf.mxu1 }
  0xea   :  { %v302_v40 = vpop.f32.mrf.mxu0  ;;  %1382 = vpow2.f32 %v1174_v43  ;;  %v496_v43 = vld [vmem:[#allocation2 + $0x30] sm:$0xff] }
  0xeb   :  { %v303_v30 = vadd.f32 %v302_v40, %v1631_v28  ;;  %v439_v41 = vpop.f32.mrf.mxu1 }
  0xec   :  { %v1274_v44 = vpop.f32.mrf.mxu0  ;;  %v440_v53 = vadd.f32 %v439_v41, %v1637_v31 }
  0xed   :  { %318 = vst.msk [vmem:[#allocation2 + $0x78] sm:$0xff] %vm168_vm2, %v303_v30  ;;  %v1288_v46 = vpop.f32.mrf.mxu1 }
  0xee   :  { %v307_v47 = vpop.f32.mrf.mxu0 }
  0xef   :  { %v308_v48 = vadd.f32 %v307_v47, %v1644_v42  ;;  %v444_v49 = vpop.f32.mrf.mxu1 }
  0xf0   :  { %v1277_v45 = vpop.f32.mrf.mxu0  ;;  %v445_v62 = vadd.f32 %v444_v49, %v1651_v54 }
  0xf1   :  { %319 = vst.msk [vmem:[#allocation2 + $0x80] sm:$0xff] %vm168_vm2, %v308_v48  ;;  %v1291_v50 = vpop.f32.mrf.mxu1 }
  0xf2   :  { %v310_v51 = vpop.f32.mrf.mxu0  ;;  %v497_v50 = vld [vmem:[#allocation2 + $0x38] sm:$0xff] }
  0xf3   :  { %v1381_v52 = vpop.eup %1380  ;;  %v311_v28 = vadd.f32 %v310_v51, %v78_v2  ;;  %v447_v55 = vpop.f32.mrf.mxu1  ;;  %v437_v2 = vadd.f32 %v436_v36, %v1676_v5 }
  0xf4   :  { %v455_v56 = vadd.f32 1.0, %v1381_v52  ;;  %v336_v57 = vld [vmem:[#allocation2 + $0x78] sm:$0xff]  ;;  %v1278_v58 = vpop.f32.mrf.mxu0  ;;  %v448_v18 = vadd.f32 %v447_v55, %v1679_v15 }
  0xf5   :  { %v472_v59 = vadd.f32 %v440_v53, %v336_v57  ;;  %320 = vst.msk [vmem:[#allocation2 + $0x88] sm:$0xff] %vm168_vm2, %v311_v28  ;;  %v1292_v60 = vpop.f32.mrf.mxu1  ;;  %v499_v57 = vld [vmem:[#allocation2 + $0x48] sm:$0xff] }
  0xf6   :  { %1384 = vrcp.f32 %v455_v56 }
  0xf7   :  { %v1175_v42 = vmul.f32 -1.442695, %v472_v59  ;;  %v1383_v1 = vpop.eup %1382 }
  0xf8   :  { %v337_v61 = vld [vmem:[#allocation2 + $0x80] sm:$0xff]  ;;  %v462_v4 = vadd.f32 1.0, %v1383_v1  ;;  %v500_v1 = vld [vmem:[#allocation2 + $0x50] sm:$0xff] }
  0xf9   :  { %1386 = vpow2.f32 %v1175_v42  ;;  %v479_v63 = vadd.f32 %v445_v62, %v337_v61 }
  0xfb   :  { %v1176_v3 = vmul.f32 -1.442695, %v479_v63 }
  0xfc   :  { %v338_v25 = vld [vmem:[#allocation2 + $0x88] sm:$0xff] }
  0xfd   :  { %1388 = vpow2.f32 %v1176_v3 }
  0xfe   :  { %1390 = vrcp.f32 %v462_v4 }
 0x103   :  { %v1385_v6 = vpop.eup %1384 }
 0x104   :  { %v465_v7 = vmul.f32 %v1385_v6, %v437_v2 }
 0x106   :  { %v1387_v9 = vpop.eup %1386  ;;  %v466_v10 = vadd.f32 %v465_v7, %v335_v8 }
 0x107   :  { %v476_v11 = vadd.f32 1.0, %v1387_v9 }
 0x108   :  { %1392 = vtanh.f32 %v466_v10 }
 0x109   :  { %1394 = vrcp.f32 %v476_v11 }
 0x10a   :  { %v1389_v12 = vpop.eup %1388 }
 0x10b   :  { %v1391_v13 = vpop.eup %1390  ;;  %v483_v14 = vadd.f32 1.0, %v1389_v12 }
 0x10c   :  { %v468_v16 = vsub.f32 1.0, %v1391_v13  ;;  %v470_v22 = vmul.f32 0.0, %v1391_v13 }
 0x10d   :  { %1396 = vrcp.f32 %v483_v14 }
 0x115   :  { %v1393_v17 = vpop.eup %1392 }
 0x116   :  { %v1395_v20 = vpop.eup %1394  ;;  %v469_v21 = vmul.f32 %v1393_v17, %v468_v16  ;;  %v498_v16 = vld [vmem:[#allocation2 + $0x40] sm:$0xff] }
 0x117   :  { %v486_v23 = vmul.f32 %v1395_v20, %v448_v18 }
 0x118   :  { %v1682_v27 = vadd.f32 %v470_v22, %v469_v21 }
 0x119   :  { %v487_v32 = vadd.f32 %v486_v23, %v338_v25 }
 0x11a   :  { %493 = vst.msk [vmem:[#allocation3] sm:$0xff] %vm168_vm2, %v1682_v27  ;;  %v1397_v34 = vpop.eup %1396 }
 0x11b   :  { %1398 = vtanh.f32 %v487_v32  ;;  %v489_v35 = vsub.f32 1.0, %v1397_v34  ;;  %v491_v38 = vmul.f32 0.0, %v1397_v34  ;;  %v501_v32 = vld [vmem:[#allocation2 + $0x58] sm:$0xff] }
 0x128   :  { %v1399_v36 = vpop.eup %1398 }
 0x129   :  { %v490_v37 = vmul.f32 %v1399_v36, %v489_v35 }
 0x12b   :  { %v1686_v39 = vadd.f32 %v491_v38, %v490_v37 }
 0x12d   :  { %495 = vst.msk [vmem:[#allocation3 + $0x28] sm:$0xff] %vm168_vm2, %v1686_v39  ;;  %v502_v40 = vpack.c.bf16 %v1686_v39, %v1682_v27 }
 0x12f   :  { %1294 = vmatpush3.bf16.msra.mxu0 %v502_v40 }
 0x130   :  { %1321 = vmatprep.subr.bf16.mxu0 %v1444_v0 }
 0x132   :  { %1296 = vmatmul.mubr.msk.bf16.vlgmr.msra.gmra.mxu0 %vm101_vm1, %v1583_v19 }
 0x133   :  { %1299 = vmatprep.mubr.msk.bf16.mxu0 %vm1445_vm0, %v1444_v0 }
 0x13a   :  { %1300 = vmatmul.mubr.msk.bf16.gmra.mxu0 %vm101_vm1, %v1607_v24 }
 0x13b   :  { %1303 = vmatprep.mubr.msk.bf16.mxu0 %vm1445_vm0, %v1444_v0 }
 0x142   :  { %1304 = vmatmul.mubr.msk.bf16.gmra.mxu0 %vm101_vm1, %v1622_v26 }
 0x143   :  { %1323 = vmatprep.mubr.msk.bf16.mxu0 %vm1445_vm0, %v1444_v0 }
 0x1f2   :  { %v537_v30 = vpop.f32.mrf.mxu0 }
 0x1f3   :  { %v538_v41 = vadd.f32 %v537_v30, %v1633_v29 }
 0x1f4   :  { %v1297_v44 = vpop.f32.mrf.mxu0 }
 0x1f5   :  { %v560_v46 = vadd.f32 %v538_v41, %v496_v43 }
 0x1f6   :  { %v540_v47 = vpop.f32.mrf.mxu0 }
 0x1f7   :  { %v1180_v48 = vmul.f32 -1.442695, %v560_v46  ;;  %v541_v49 = vadd.f32 %v540_v47, %v1639_v33 }
 0x1f8   :  { %v1298_v45 = vpop.f32.mrf.mxu0 }
 0x1f9   :  { %1400 = vpow2.f32 %v1180_v48  ;;  %v567_v52 = vadd.f32 %v541_v49, %v497_v50  ;;  %v605_v49 = vld [vmem:[#allocation2 + $0x60] sm:$0xff] }
 0x1fa   :  { %v545_v51 = vpop.f32.mrf.mxu0 }
 0x1fb   :  { %v1181_v55 = vmul.f32 -1.442695, %v567_v52  ;;  %v546_v12 = vadd.f32 %v545_v51, %v1676_v5 }
 0x1fc   :  { %v1301_v53 = vpop.f32.mrf.mxu0 }
 0x1fd   :  { %1402 = vpow2.f32 %v1181_v55  ;;  %v606_v53 = vld [vmem:[#allocation2 + $0x68] sm:$0xff] }
 0x1fe   :  { %v548_v28 = vpop.f32.mrf.mxu0 }
 0x1ff   :  { %v549_v56 = vadd.f32 %v548_v28, %v1637_v31 }
 0x200   :  { %v1302_v58 = vpop.f32.mrf.mxu0 }
 0x201   :  { %v581_v59 = vadd.f32 %v549_v56, %v499_v57 }
 0x202   :  { %v553_v60 = vpop.f32.mrf.mxu0 }
 0x203   :  { %v1182_v42 = vmul.f32 -1.442695, %v581_v59  ;;  %v554_v61 = vadd.f32 %v553_v60, %v1651_v54  ;;  %v608_v59 = vld [vmem:[#allocation2 + $0x18] sm:$0xff] }
 0x204   :  { %v1305_v62 = vpop.f32.mrf.mxu0 }
 0x205   :  { %1404 = vpow2.f32 %v1182_v42  ;;  %v588_v2 = vadd.f32 %v554_v61, %v500_v1  ;;  %v609_v1 = vld [vmem:[#allocation2 + $0x20] sm:$0xff] }
 0x206   :  { %v1401_v63 = vpop.eup %1400  ;;  %v556_v3 = vpop.f32.mrf.mxu0 }
 0x207   :  { %v564_v4 = vadd.f32 1.0, %v1401_v63  ;;  %v1183_v7 = vmul.f32 -1.442695, %v588_v2  ;;  %v557_v21 = vadd.f32 %v556_v3, %v1679_v15 }
 0x208   :  { %v1306_v6 = vpop.f32.mrf.mxu0 }
 0x209   :  { %1406 = vrcp.f32 %v564_v4 }
 0x20a   :  { %1408 = vpow2.f32 %v1183_v7  ;;  %v1403_v8 = vpop.eup %1402 }
 0x20b   :  { %v571_v10 = vadd.f32 1.0, %v1403_v8 }
 0x212   :  { %v1405_v9 = vpop.eup %1404 }
 0x213   :  { %v585_v11 = vadd.f32 1.0, %v1405_v9 }
 0x215   :  { %1410 = vrcp.f32 %v585_v11 }
 0x216   :  { %v1407_v13 = vpop.eup %1406  ;;  %1412 = vrcp.f32 %v571_v10 }
 0x217   :  { %v574_v14 = vmul.f32 %v1407_v13, %v546_v12  ;;  %v1409_v18 = vpop.eup %1408  ;;  %v607_v13 = vld [vmem:[#allocation2 + $0x70] sm:$0xff] }
 0x218   :  { %v592_v20 = vadd.f32 1.0, %v1409_v18 }
 0x219   :  { %v575_v17 = vadd.f32 %v574_v14, %v498_v16 }
 0x21b   :  { %1414 = vtanh.f32 %v575_v17 }
 0x21c   :  { %1416 = vrcp.f32 %v592_v20 }
 0x222   :  { %v1411_v22 = vpop.eup %1410 }
 0x223   :  { %v595_v23 = vmul.f32 %v1411_v22, %v557_v21  ;;  %v1413_v25 = vpop.eup %1412 }
 0x224   :  { %v577_v35 = vsub.f32 1.0, %v1413_v25  ;;  %v579_v38 = vmul.f32 %v1413_v25, %v1682_v27 }
 0x225   :  { %v596_v34 = vadd.f32 %v595_v23, %v501_v32  ;;  %v610_v23 = vld [vmem:[#allocation2 + $0x28] sm:$0xff] }
 0x227   :  { %1418 = vtanh.f32 %v596_v34 }
 0x228   :  { %v1415_v36 = vpop.eup %1414 }
 0x229   :  { %v578_v37 = vmul.f32 %v1415_v36, %v577_v35  ;;  %v1417_v30 = vpop.eup %1416 }
 0x22a   :  { %v598_v41 = vsub.f32 1.0, %v1417_v30  ;;  %v600_v46 = vmul.f32 %v1417_v30, %v1686_v39 }
 0x22b   :  { %v1712_v40 = vadd.f32 %v579_v38, %v578_v37 }
 0x22d   :  { %603 = vst.msk [vmem:[#allocation3 + $0x10] sm:$0xff] %vm168_vm2, %v1712_v40 }
 0x234   :  { %v1419_v43 = vpop.eup %1418 }
 0x235   :  { %v599_v44 = vmul.f32 %v1419_v43, %v598_v41 }
 0x237   :  { %v1717_v47 = vadd.f32 %v600_v46, %v599_v44  ;;  %v1746_v44 = vld [vmem:[#allocation3] sm:$0xff] }
 0x239   :  { %604 = vst.msk [vmem:[#allocation3 + $0x18] sm:$0xff] %vm168_vm2, %v1717_v47  ;;  %v611_v48 = vpack.c.bf16 %v1717_v47, %v1712_v40 }
 0x23b   :  { %1308 = vmatpush3.bf16.msra.mxu1 %v611_v48  ;;  %v1379_v48 = vld [vmem:[%s1819_s5] sm:$0xff]  }
 0x23c   :  { %1327 = vmatprep.subr.bf16.mxu1 %v1444_v0 }
 0x23e   :  { %1310 = vmatmul.mubr.msk.bf16.vlgmr.msra.gmra.mxu1 %vm101_vm1, %v1583_v19 }
 0x23f   :  { %1313 = vmatprep.mubr.msk.bf16.mxu1 %vm1445_vm0, %v1444_v0 }
 0x246   :  { %1314 = vmatmul.mubr.msk.bf16.gmra.mxu1 %vm101_vm1, %v1607_v24 }
 0x247   :  { %1317 = vmatprep.mubr.msk.bf16.mxu1 %vm1445_vm0, %v1444_v0 }
 0x24e   :  { %1318 = vmatmul.mubr.msk.bf16.gmra.mxu1 %vm101_vm1, %v1622_v26 }
 0x24f   :  { %1329 = vmatprep.mubr.msk.bf16.mxu1 %vm1445_vm0, %v1444_v0 }
 0x2fe   :  { %v646_v27 = vpop.f32.mrf.mxu1 }
 0x2ff   :  { %v647_v39 = vadd.f32 %v646_v27, %v1633_v29  ;;  %v1755_v27 = vld [vmem:[#allocation3 + $0x18] sm:$0xff] }
 0x300   :  { %v1311_v19 = vpop.f32.mrf.mxu1 }
 0x301   :  { %v669_v45 = vadd.f32 %v647_v39, %v605_v49  ;;  %v1768_v19 = vld [vmem:[#allocation3 + $0x28] sm:$0xff] }
 0x302   :  { %v649_v50 = vpop.f32.mrf.mxu1 }
 0x303   :  { %v1187_v51 = vmul.f32 -1.442695, %v669_v45  ;;  %v650_v52 = vadd.f32 %v649_v50, %v1639_v33 }
 0x304   :  { %v1312_v24 = vpop.f32.mrf.mxu1 }
 0x305   :  { %1420 = vpow2.f32 %v1187_v51  ;;  %v676_v55 = vadd.f32 %v650_v52, %v606_v53  ;;  %v724_v51 = vpop.permute.xlu0 %723  ;;  %v729_v53 = vpop.permute.xlu1 %728 }
 0x306   :  { %v654_v28 = vpop.f32.mrf.mxu1 }
 0x307   :  { %v1188_v57 = vmul.f32 -1.442695, %v676_v55  ;;  %v655_v11 = vadd.f32 %v654_v28, %v1676_v5 }
 0x308   :  { %v1315_v56 = vpop.f32.mrf.mxu1 }
 0x309   :  { %1422 = vpow2.f32 %v1188_v57 }
 0x30a   :  { %v657_v26 = vpop.f32.mrf.mxu1 }
 0x30b   :  { %v658_v58 = vadd.f32 %v657_v26, %v1637_v31 }
 0x30c   :  { %v1316_v60 = vpop.f32.mrf.mxu1 }
 0x30d   :  { %v690_v29 = vadd.f32 %v658_v58, %v608_v59 }
 0x30e   :  { %v662_v42 = vpop.f32.mrf.mxu1 }
 0x30f   :  { %v1189_v61 = vmul.f32 -1.442695, %v690_v29  ;;  %v663_v62 = vadd.f32 %v662_v42, %v1651_v54  ;;  %v717_v42 = vld [vmem:[%s1820_s7] sm:$0x1] }
 0x310   :  { %v1319_v63 = vpop.f32.mrf.mxu1 }
 0x311   :  { %1424 = vpow2.f32 %v1189_v61  ;;  %v697_v2 = vadd.f32 %v663_v62, %v609_v1 }
 0x312   :  { %v1421_v33 = vpop.eup %1420  ;;  %v665_v3 = vpop.f32.mrf.mxu1 }
 0x313   :  { %v673_v4 = vadd.f32 1.0, %v1421_v33  ;;  %v1190_v7 = vmul.f32 -1.442695, %v697_v2  ;;  %v666_v18 = vadd.f32 %v665_v3, %v1679_v15 }
 0x314   :  { %v1320_v6 = vpop.f32.mrf.mxu1 }
 0x315   :  { %1426 = vrcp.f32 %v673_v4 }
 0x316   :  { %1428 = vpow2.f32 %v1190_v7  ;;  %v1423_v31 = vpop.eup %1422 }
 0x317   :  { %v680_v9 = vadd.f32 1.0, %v1423_v31 }
 0x31e   :  { %v1425_v8 = vpop.eup %1424 }
 0x31f   :  { %v694_v10 = vadd.f32 1.0, %v1425_v8 }
 0x321   :  { %1430 = vrcp.f32 %v694_v10 }
 0x322   :  { %v1427_v12 = vpop.eup %1426  ;;  %1432 = vrcp.f32 %v680_v9 }
 0x323   :  { %v683_v54 = vmul.f32 %v1427_v12, %v655_v11  ;;  %v1429_v16 = vpop.eup %1428 }
 0x324   :  { %v701_v17 = vadd.f32 1.0, %v1429_v16 }
 0x325   :  { %v684_v14 = vadd.f32 %v683_v54, %v607_v13 }
 0x327   :  { %1434 = vtanh.f32 %v684_v14 }
 0x328   :  { %1436 = vrcp.f32 %v701_v17 }
 0x32e   :  { %v1431_v20 = vpop.eup %1430 }
 0x32f   :  { %v704_v21 = vmul.f32 %v1431_v20, %v666_v18  ;;  %v1433_v22 = vpop.eup %1432 }
 0x330   :  { %v686_v32 = vsub.f32 1.0, %v1433_v22  ;;  %v688_v34 = vmul.f32 %v1433_v22, %v1712_v40 }
 0x331   :  { %v705_v25 = vadd.f32 %v704_v21, %v610_v23 }
 0x333   :  { %1438 = vtanh.f32 %v705_v25 }
 0x334   :  { %v1435_v5 = vpop.eup %1434 }
 0x335   :  { %v687_v35 = vmul.f32 %v1435_v5, %v686_v32  ;;  %v1437_v37 = vpop.eup %1436 }
 0x336   :  { %v707_v38 = vsub.f32 1.0, %v1437_v37  ;;  %v709_v15 = vmul.f32 %v1437_v37, %v1717_v47  ;;  %v1758_v47 = vld [vmem:[#allocation3 + $0x10] sm:$0xff] }
 0x337   :  { %v689_v36 = vadd.f32 %v688_v34, %v687_v35  ;;  %v828_v39 = vpack.c.bf16 %v1755_v27, %v1758_v47 }
 0x339   :  { %711 = vst.msk [vmem:[#allocation3 + $0x20] sm:$0xff] %vm168_vm2, %v689_v36 }
 0x340   :  { %v1439_v30 = vpop.eup %1438  ;;  %v1766_v49 = vld [vmem:[#allocation3 + $0x20] sm:$0xff] }
 0x341   :  { %v708_v41 = vmul.f32 %v1439_v30, %v707_v38  ;;  %v915_v45 = vpack.c.bf16 %v1768_v19, %v1766_v49 }
 0x343   :  { %v710_v43 = vadd.f32 %v709_v15, %v708_v41 }
 0x345   :  { %712 = vst.msk [vmem:[#allocation3 + $0x8] sm:$0xff] %vm168_vm2, %v710_v43 }
 0x34c   :  { %v1748_v46 = vld [vmem:[#allocation3 + $0x8] sm:$0xff] }
 0x34d   :  { %v720_v40 = vpack.c.bf16 %v1748_v46, %v1746_v44 }
 0x34f   :  { %1322 = vmatpush3.bf16.msra.mxu0 %v720_v40 }
 0x350   :  { %1333 = vmatprep.subr.bf16.mxu0 %v1444_v0 }
 0x352   :  { %1324 = vmatmul.mubr.msk.bf16.vlgmr.msra.gmra.mxu0 %vm101_vm1, %v1379_v48 }
 0x353   :  { %1334 = vmatpush3.bf16.msra.mxu0 %v828_v39  ;;  %1335 = vmatprep.mubr.msk.bf16.mxu0 %vm1445_vm0, %v1444_v0 }
 0x354   :  { %1345 = vmatprep.subr.bf16.mxu0 %v1444_v0 }
 0x35a   :  { %1336 = vmatmul.mubr.msk.bf16.vlgmr.msra.gmra.mxu0 %vm101_vm1, %v1379_v48 }
 0x35b   :  { %1346 = vmatpush3.bf16.msra.mxu0 %v915_v45  ;;  %1347 = vmatprep.mubr.msk.bf16.mxu0 %vm1445_vm0, %v1444_v0 }
 0x35c   :  { %1357 = vmatprep.subr.bf16.mxu0 %v1444_v0 }
 0x362   :  { %1348 = vmatmul.mubr.msk.bf16.vlgmr.msra.gmra.mxu0 %vm101_vm1, %v1379_v48 }
 0x363   :  { %1359 = vmatprep.mubr.msk.bf16.mxu0 %vm1445_vm0, %v1444_v0 }
 0x412   :  { %v773_v50 = vpop.f32.mrf.mxu0 }
 0x413   :  { %v774_v24 = vadd.f32 %v773_v50, %v724_v51 }
 0x414   :  { %v1325_v52 = vpop.f32.mrf.mxu0 }
 0x415   :  { %v780_v26 = vmax.f32 %v774_v24, 0.0 }
 0x416   :  { %v776_v28 = vpop.f32.mrf.mxu0 }
 0x417   :  { %v777_v55 = vadd.f32 %v776_v28, %v729_v53  ;;  %v1448_v28 = vmov 1966171168  }
 0x418   :  { %v1326_v56 = vpop.f32.mrf.mxu0 }
 0x419   :  { %v781_v57 = vmax.f32 %v777_v55, 0.0  ;;  %v1038_v55 = vunpack.c.l.s4 %v1448_v28  ;;  %v1040_v56 = vlaneseq }
 0x41a   :  { %v863_v58 = vpop.f32.mrf.mxu0 }
 0x41b   :  { %v782_v59 = vpack.c.bf16 %v781_v57, %v780_v26  ;;  %v864_v29 = vadd.f32 %v863_v58, %v724_v51  ;;  %v1039_v26 = vunpack.c.0.s8 %v1038_v55  ;;  %v1041_v57 = vshrl.u32 %v1040_v56, 7 }
 0x41c   :  { %v1337_v60 = vpop.f32.mrf.mxu0 }
 0x41d   :  { %1328 = vmatpush3.bf16.msra.mxu1 %v782_v59  ;;  %v870_v33 = vmax.f32 %v864_v29, 0.0  ;;  %v1042_v58 = vsub.s32 %v1039_v26, %v1041_v57 }
 0x41e   :  { %v866_v61 = vpop.f32.mrf.mxu0  ;;  %1339 = vmatprep.subr.bf16.mxu1 %v1444_v0 }
 0x41f   :  { %v867_v62 = vadd.f32 %v866_v61, %v729_v53 }
 0x420   :  { %1330 = vmatmul.mubr.msk.bf16.vlgmr.msra.gmra.mxu1 %vm101_vm1, %v717_v42  ;;  %v1338_v63 = vpop.f32.mrf.mxu0 }
 0x421   :  { %v871_v1 = vmax.f32 %v867_v62, 0.0  ;;  %1341 = vmatprep.mubr.msk.bf16.mxu1 %vm1445_vm0, %v1444_v0 }
 0x422   :  { %v950_v3 = vpop.f32.mrf.mxu0 }
 0x423   :  { %v872_v4 = vpack.c.bf16 %v871_v1, %v870_v33  ;;  %v951_v6 = vadd.f32 %v950_v3, %v724_v51 }
 0x424   :  { %v1349_v2 = vpop.f32.mrf.mxu0 }
 0x425   :  { %1340 = vmatpush3.bf16.msra.mxu1 %v872_v4  ;;  %v957_v9 = vmax.f32 %v951_v6, 0.0 }
 0x426   :  { %v953_v7 = vpop.f32.mrf.mxu0  ;;  %1351 = vmatprep.subr.bf16.mxu1 %v1444_v0 }
 0x427   :  { %v954_v31 = vadd.f32 %v953_v7, %v729_v53 }
 0x428   :  { %1342 = vmatmul.mubr.msk.bf16.vlgmr.msra.gmra.mxu1 %vm101_vm1, %v717_v42  ;;  %v1350_v8 = vpop.f32.mrf.mxu0 }
 0x429   :  { %v958_v10 = vmax.f32 %v954_v31, 0.0  ;;  %1353 = vmatprep.mubr.msk.bf16.mxu1 %vm1445_vm0, %v1444_v0 }
 0x42b   :  { %v959_v11 = vpack.c.bf16 %v958_v10, %v957_v9 }
 0x42d   :  { %1352 = vmatpush3.bf16.msra.mxu1 %v959_v11 }
 0x430   :  { %1354 = vmatmul.mubr.msk.bf16.vlgmr.msra.gmra.mxu1 %vm101_vm1, %v717_v42  ;;  %v1062_v42 = vsub.s32 0, %v1041_v57 }
 0x4e0   :  { %v820_v12 = vpop.f32.mrf.mxu1 }
 0x4e2   :  { %v1331_v54 = vpop.f32.mrf.mxu1 }
 0x4e4   :  { %v823_v13 = vpop.f32.mrf.mxu1 }
 0x4e6   :  { %v1332_v14 = vpop.f32.mrf.mxu1 }
 0x4e8   :  { %v907_v16 = vpop.f32.mrf.mxu1 }
 0x4e9   :  { %v1001_v20 = vrot.slane %v907_v16, 7 }
 0x4ea   :  { %v1343_v17 = vpop.f32.mrf.mxu1 }
 0x4eb   :  { %v1007_v25 = vsel %vm1006_vm3, %v820_v12, %v1001_v20 }
 0x4ec   :  { %v910_v18 = vpop.f32.mrf.mxu1 }
 0x4ee   :  { %v1344_v21 = vpop.f32.mrf.mxu1 }
 0x4f0   :  { %v994_v22 = vpop.f32.mrf.mxu1 }
 0x4f1   :  { %v1004_v23 = vrot.slane %v994_v22, 6 }
 0x4f2   :  { %v1355_v0 = vpop.f32.mrf.mxu1 }
 0x4f3   :  { %v1009_v32 = vsel %vm1008_vm4, %v1007_v25, %v1004_v23 }
 0x4f4   :  { %v1011_v5 = vsel %vm1010_vm5, %v1009_v32, -inf  ;;  %v997_v34 = vpop.f32.mrf.mxu1 }
 0x4f5   :  { %v1012_v35 = vrot.slane %v1011_v5, 4 }
 0x4f6   :  { %v1356_v36 = vpop.f32.mrf.mxu1 }
 0x4f7   :  { %v1013_v37 = vmax.f32 %v1011_v5, %v1012_v35 }
 0x4f9   :  { %v1014_v38 = vrot.slane %v1013_v37, 2 }
 0x4fb   :  { %v1015_v30 = vmax.f32 %v1013_v37, %v1014_v38 }
 0x4fd   :  { %v1016_v15 = vrot.slane %v1015_v30, 1 }
 0x4ff   :  { %v1017_v41 = vmax.f32 %v1015_v30, %v1016_v15 }
 0x501   :  { %v1018_v43 = vsub.f32 %v1009_v32, %v1017_v41 }
 0x503   :  { %v1019_v40 = vmul.f32 1.442695, %v1018_v43 }
 0x505   :  { %1440 = vpow2.f32 %v1019_v40 }
 0x512   :  { %v1441_v48 = vpop.eup %1440 }
 0x513   :  { %v1021_v39 = vsel %vm1010_vm5, %v1441_v48, 0.0 }
 0x514   :  { %v1022_v45 = vrot.slane %v1021_v39, 4 }
 0x516   :  { %v1023_v50 = vadd.f32 %v1022_v45, %v1021_v39 }
 0x518   :  { %v1024_v51 = vrot.slane %v1023_v50, 2 }
 0x51a   :  { %v1025_v52 = vadd.f32 %v1024_v51, %v1023_v50 }
 0x51c   :  { %v1026_v24 = vrot.slane %v1025_v52, 1 }
 0x51e   :  { %v1027_v53 = vadd.f32 %v1026_v24, %v1025_v52 }
 0x520   :  { %1442 = vrcp.f32 %v1027_v53 }
 0x52d   :  { %v1443_v59 = vpop.eup %1442 }
 0x52e   :  { %v1029_v60 = vmul.f32 %v1443_v59, %v1441_v48 }
 0x530   :  { %v1043_v29 = vrot.slane %v1029_v60, %v1042_v58 }
 0x532   :  { %v1044_v61 = vcombine.high %v1043_v29, %v1043_v29  ;;  %v1051_v62 = vrot.slane %v1043_v29, %v1042_v58 }
 0x534   :  { %v1058_v63 = vrot.slane %v1044_v61, %v1042_v58  ;;  %v1059_v33 = vcombine.high %v1051_v62, %v1051_v62  ;;  %v1063_v1 = vrot.slane %v1051_v62, %v1062_v42 }
 0x536   :  { %v1067_v3 = vrot.slane %v1058_v63, %v1062_v42  ;;  %v1071_v4 = vrot.slane %v1059_v33, %v1062_v42  ;;  %v1075_v2 = vmul.f32 %v1063_v1, %v1746_v44  ;;  %v1076_v6 = vmul.f32 %v1063_v1, %v1748_v46 }
 0x538   :  { %v1077_v7 = vmul.f32 %v1067_v3, %v1758_v47  ;;  %v1078_v31 = vmul.f32 %v1067_v3, %v1755_v27  ;;  %v1079_v8 = vmul.f32 %v1071_v4, %v1766_v49  ;;  %v1080_v9 = vmul.f32 %v1071_v4, %v1768_v19  ;;  %v1091_v49 = vld [vmem:[%s1821_s8] sm:$0x3]  ;;  %v1097_v19 = vpop.permute.xlu0 %1096 }
 0x539   :  { %v1081_v10 = vsel %vm168_vm2, %v1075_v2, 0.0  ;;  %v1086_v12 = vsel %vm168_vm2, %v1076_v6, 0.0 }
 0x53a   :  { %v1082_v11 = vsel %vm168_vm2, %v1077_v7, 0.0  ;;  %v1087_v54 = vsel %vm168_vm2, %v1078_v31, 0.0  ;;  %v1084_v46 = vsel %vm168_vm2, %v1079_v8, 0.0  ;;  %v1089_v47 = vsel %vm168_vm2, %v1080_v9, 0.0 }
 0x53b   :  { %v1083_v13 = vadd.f32 %v1082_v11, %v1081_v10  ;;  %v1088_v44 = vadd.f32 %v1087_v54, %v1086_v12 }
 0x53d   :  { %v1085_v14 = vadd.f32 %v1084_v46, %v1083_v13  ;;  %v1090_v27 = vadd.f32 %v1089_v47, %v1088_v44 }
 0x53f   :  { %v1092_v16 = vpack.c.bf16 %v1090_v27, %v1085_v14 }
 0x541   :  { %1358 = vmatpush3.bf16.msra.mxu0 %v1092_v16 }
 0x544   :  { %1360 = vmatmul.mubr.msk.bf16.vlgmr.msra.gmra.mxu0 %vm101_vm1, %v1091_v49 }
 0x604   :  { %v1136_v17 = vpop.f32.mrf.mxu0 }
 0x605   :  { %v1137_v18 = vadd.f32 %v1136_v17, %v1097_v19 }
 0x606   :  { %v1361_v20 = vpop.f32.mrf.mxu0 }
 0x607   :  { %1143 = vst.msk [vmem:[%s1822_s10] sm:$0xf] %vm1142_vm6, %v1137_v18 }
 0x608   :  { %v1139_v21 = vpop.f32.mrf.mxu0 }
 0x60a   :  { %v1362_v22 = vpop.f32.mrf.mxu0 }

// kernel: han_forward.2
= control target key start
LH: loop header
LB: loop body
LE: loop exit
PB: predicated region body
PF: predicated region fallthrough
CT: control target
= control target key end

     0   :  { %v2164_v0 = vmov 0.0   ;;  %vm2165_vm0 = vmmov 0   ;;  %vm95_vm1 = vcmask 130048   ;;  %v2166_v4 = vmov 0   ;;  %s2694_s0 = inlined_call_operand.vmem [shape: bf16[5,16,6], index: 0, kind: input, shape index: {}]   ;;  %s2695_s1 = inlined_call_operand.vmem [shape: bf16[48,16], index: 1, kind: input, shape index: {}]   ;;  %s2696_s3 = inlined_call_operand.vmem [shape: bf16[48,16], index: 3, kind: input, shape index: {}]   ;;  %s2697_s2 = inlined_call_operand.vmem [shape: f32[48,1], index: 2, kind: input, shape index: {}]   ;;  %s2698_s4 = inlined_call_operand.vmem [shape: f32[48,1], index: 4, kind: input, shape index: {}]   ;;  %s2699_s6 = inlined_call_operand.vmem [shape: f32[16,1], index: 6, kind: input, shape index: {}]   ;;  %s2700_s5 = inlined_call_operand.vmem [shape: bf16[16,16], index: 5, kind: input, shape index: {}]   ;;  %s2701_s7 = inlined_call_operand.vmem [shape: bf16[1,16], index: 7, kind: input, shape index: {}]   ;;  %s2702_s8 = inlined_call_operand.vmem [shape: f32[16,6], index: 8, kind: output, shape index: {}]  }
   0x1   :  { %1821 = vmatprep.subr.bf16.mxu0 %v2164_v0  ;;  %1835 = vmatprep.subr.bf16.mxu1 %v2164_v0  ;;  %v2028_v1 = vld [vmem:[%s2694_s0] sm:$0xff]   ;;  %v2029_v2 = vld [vmem:[%s2694_s0 + $0x8] sm:$0xff]   ;;  %v2033_v5 = vld [vmem:[%s2694_s0 + $0x10] sm:$0xff]   ;;  %v2167_v22 = vmov 0.0|0.0   ;;  %vm162_vm2 = vcmask 48128   ;;  %vm1544_vm3 = vcmask 1040384  }
   0x2   :  { %1823 = vmatprep.mubr.msk.bf16.mxu0 %vm2165_vm0, %v2164_v0  ;;  %1837 = vmatprep.mubr.msk.bf16.mxu1 %vm2165_vm0, %v2164_v0  ;;  %v2229_v3 = vld [vmem:[%s2695_s1] sm:$0xff]   ;;  %v2034_v6 = vld [vmem:[%s2694_s0 + $0x18] sm:$0xff]   ;;  %v2251_v7 = vld [vmem:[%s2695_s1 + $0x8] sm:$0xff]   ;;  %vm1546_vm4 = vcmask 1041408   ;;  %vm1548_vm5 = vcmask 1042432   ;;  %vm1550_vm6 = vcmask 1043456  }
   0x3   :  { %1822 = vmatpush3.bf16.msra.mxu0 %v2028_v1  ;;  %2026 = vset.pattern.permute.xlu0 %v2166_v4  ;;  %v36_v8 = vld [vmem:[%s2697_s2] sm:$0xff]  ;;  %v39_v9 = vld [vmem:[%s2697_s2 + $0x18] sm:$0xff]  ;;  %v37_v12 = vld [vmem:[%s2697_s2 + $0x8] sm:$0xff]  ;;  %vm1552_vm7 = vcmask 45056  }
   0x4   :  { %1836 = vmatpush3.bf16.msra.mxu1 %v2029_v2  ;;  %1849 = vmatprep.subr.bf16.mxu0 %v2164_v0  ;;  %v467_v10 = vld [vmem:[%s2698_s4] sm:$0xff]  ;;  %v470_v11 = vld [vmem:[%s2698_s4 + $0x18] sm:$0xff]  ;;  %v2032_v13 = vld [vmem:[%s2695_s1 + $0x10] sm:$0xff]  }
   0x5   :  { %1863 = vmatprep.subr.bf16.mxu1 %v2164_v0  ;;  %2027 = vset.pattern.permute.xlu1 %v2166_v4  ;;  %v40_v14 = vld [vmem:[%s2697_s2 + $0x20] sm:$0xff]  ;;  %v468_v15 = vld [vmem:[%s2698_s4 + $0x8] sm:$0xff]  ;;  %v38_v17 = vld [vmem:[%s2697_s2 + $0x10] sm:$0xff] }
   0x6   :  { %1824 = vmatmul.mubr.msk.bf16.vlgmr.msra.gmra.mxu0 %vm95_vm1, %v2229_v3  ;;  %46 = vperm.xlu0 %2026, %v36_v8   ;;  %v471_v16 = vld [vmem:[%s2698_s4 + $0x20] sm:$0xff]  ;;  %v41_v18 = vld [vmem:[%s2697_s2 + $0x28] sm:$0xff]  ;;  %v469_v20 = vld [vmem:[%s2698_s4 + $0x10] sm:$0xff] }
   0x7   :  { %1838 = vmatmul.mubr.msk.bf16.vlgmr.msra.gmra.mxu1 %vm95_vm1, %v2229_v3  ;;  %1827 = vmatprep.mubr.msk.bf16.mxu0 %vm2165_vm0, %v2164_v0  ;;  %v2035_v19 = vld [vmem:[%s2694_s0 + $0x20] sm:$0xff]   ;;  %v472_v21 = vld [vmem:[%s2698_s4 + $0x28] sm:$0xff]  ;;  %v2369_v27 = vld [vmem:[%s2696_s3 + $0x10] sm:$0xff]  }
   0x8   :  { %1841 = vmatprep.mubr.msk.bf16.mxu1 %vm2165_vm0, %v2164_v0  ;;  %1850 = vmatpush3.bf16.msra.mxu0 %v2033_v5  ;;  %v1073_v23 = vld [vmem:[%s2699_s6] sm:$0xff]  ;;  %v1074_v24 = vld [vmem:[%s2699_s6 + $0x8] sm:$0xff] }
   0x9   :  { %1864 = vmatpush3.bf16.msra.mxu1 %v2034_v6  ;;  %1877 = vmatprep.subr.bf16.mxu0 %v2164_v0  ;;  %v2343_v25 = vld [vmem:[%s2696_s3] sm:$0xff]   ;;  %v2356_v26 = vld [vmem:[%s2696_s3 + $0x8] sm:$0xff]  }
   0xa   :  { %1891 = vmatprep.subr.bf16.mxu1 %v2164_v0  ;;  %482 = vperm.xlu1 %2027, %v467_v10  }
   0xb   :  { %61 = vperm.xlu0 %2026, %v39_v9  }
   0xe   :  { %1828 = vmatmul.mubr.msk.bf16.gmra.mxu0 %vm95_vm1, %v2251_v7  ;;  %497 = vperm.xlu1 %2027, %v470_v11  }
   0xf   :  { %1842 = vmatmul.mubr.msk.bf16.gmra.mxu1 %vm95_vm1, %v2251_v7  ;;  %1831 = vmatprep.mubr.msk.bf16.mxu0 %vm2165_vm0, %v2164_v0 }
  0x10   :  { %1845 = vmatprep.mubr.msk.bf16.mxu1 %vm2165_vm0, %v2164_v0  ;;  %51 = vperm.xlu0 %2026, %v37_v12  }
  0x12   :  { %66 = vperm.xlu1 %2027, %v40_v14  }
  0x14   :  { %487 = vperm.xlu0 %2026, %v468_v15  }
  0x16   :  { %1832 = vmatmul.mubr.msk.bf16.gmra.mxu0 %vm95_vm1, %v2032_v13  ;;  %502 = vperm.xlu1 %2027, %v471_v16  }
  0x17   :  { %1846 = vmatmul.mubr.msk.bf16.gmra.mxu1 %vm95_vm1, %v2032_v13  ;;  %1851 = vmatprep.mubr.msk.bf16.mxu0 %vm2165_vm0, %v2164_v0 }
  0x18   :  { %1865 = vmatprep.mubr.msk.bf16.mxu1 %vm2165_vm0, %v2164_v0  ;;  %56 = vperm.xlu0 %2026, %v38_v17  }
  0x1a   :  { %71 = vperm.xlu1 %2027, %v41_v18  }
  0x1c   :  { %492 = vperm.xlu0 %2026, %v469_v20  }
  0x1e   :  { %1852 = vmatmul.mubr.msk.bf16.vlgmr.msra.gmra.mxu0 %vm95_vm1, %v2229_v3  ;;  %507 = vperm.xlu1 %2027, %v472_v21  }
  0x1f   :  { %1866 = vmatmul.mubr.msk.bf16.vlgmr.msra.gmra.mxu1 %vm95_vm1, %v2229_v3  ;;  %1855 = vmatprep.mubr.msk.bf16.mxu0 %vm2165_vm0, %v2164_v0 }
  0x20   :  { %1869 = vmatprep.mubr.msk.bf16.mxu1 %vm2165_vm0, %v2164_v0  ;;  %1878 = vmatpush3.bf16.msra.mxu0 %v2035_v19 }
  0x21   :  { %1892 = vmatpush3.bf16.msra.mxu1 %v2167_v22  ;;  %1905 = vmatprep.subr.bf16.mxu0 %v2164_v0 }
  0x22   :  { %1919 = vmatprep.subr.bf16.mxu1 %v2164_v0  ;;  %1081 = vperm.xlu0 %2026, %v1073_v23  }
  0x23   :  { %1086 = vperm.xlu1 %2027, %v1074_v24  }
  0x26   :  { %1856 = vmatmul.mubr.msk.bf16.gmra.mxu0 %vm95_vm1, %v2251_v7 }
  0x27   :  { %1870 = vmatmul.mubr.msk.bf16.gmra.mxu1 %vm95_vm1, %v2251_v7  ;;  %1859 = vmatprep.mubr.msk.bf16.mxu0 %vm2165_vm0, %v2164_v0 }
  0x28   :  { %1873 = vmatprep.mubr.msk.bf16.mxu1 %vm2165_vm0, %v2164_v0 }
  0x2e   :  { %1860 = vmatmul.mubr.msk.bf16.gmra.mxu0 %vm95_vm1, %v2032_v13 }
  0x2f   :  { %1874 = vmatmul.mubr.msk.bf16.gmra.mxu1 %vm95_vm1, %v2032_v13  ;;  %1879 = vmatprep.mubr.msk.bf16.mxu0 %vm2165_vm0, %v2164_v0 }
  0x30   :  { %1893 = vmatprep.mubr.msk.bf16.mxu1 %vm2165_vm0, %v2164_v0 }
  0x36   :  { %1880 = vmatmul.mubr.msk.bf16.vlgmr.msra.gmra.mxu0 %vm95_vm1, %v2229_v3 }
  0x37   :  { %1894 = vmatmul.mubr.msk.bf16.vlgmr.msra.gmra.mxu1 %vm95_vm1, %v2343_v25  ;;  %1883 = vmatprep.mubr.msk.bf16.mxu0 %vm2165_vm0, %v2164_v0 }
  0x38   :  { %1897 = vmatprep.mubr.msk.bf16.mxu1 %vm2165_vm0, %v2164_v0 }
  0x3e   :  { %1884 = vmatmul.mubr.msk.bf16.gmra.mxu0 %vm95_vm1, %v2251_v7 }
  0x3f   :  { %1898 = vmatmul.mubr.msk.bf16.gmra.mxu1 %vm95_vm1, %v2356_v26  ;;  %1887 = vmatprep.mubr.msk.bf16.mxu0 %vm2165_vm0, %v2164_v0 }
  0x40   :  { %1901 = vmatprep.mubr.msk.bf16.mxu1 %vm2165_vm0, %v2164_v0 }
  0x46   :  { %1888 = vmatmul.mubr.msk.bf16.gmra.mxu0 %vm95_vm1, %v2032_v13 }
  0x47   :  { %1902 = vmatmul.mubr.msk.bf16.gmra.mxu1 %vm95_vm1, %v2369_v27  ;;  %1907 = vmatprep.mubr.msk.bf16.mxu0 %vm2165_vm0, %v2164_v0 }
  0x48   :  { %1921 = vmatprep.mubr.msk.bf16.mxu1 %vm2165_vm0, %v2164_v0 }
  0x81   :  { %v2378_v28 = vpop.permute.xlu0 %46 }
  0x85   :  { %v2382_v30 = vpop.permute.xlu1 %482 }
  0x86   :  { %v2380_v29 = vpop.permute.xlu0 %61 }
  0x89   :  { %v2386_v32 = vpop.permute.xlu1 %497 }
  0x8b   :  { %v2384_v31 = vpop.permute.xlu0 %51 }
  0x8d   :  { %v2395_v43 = vpop.permute.xlu1 %66 }
  0x8f   :  { %v2388_v34 = vpop.permute.xlu0 %487 }
  0x91   :  { %v2406_v55 = vpop.permute.xlu1 %502 }
  0x93   :  { %v2398_v46 = vpop.permute.xlu0 %56 }
  0x95   :  { %v2414_v3 = vpop.permute.xlu1 %71 }
  0xc6   :  { %v139_v33 = vpop.f32.mrf.mxu0 }
  0xc7   :  { %v140_v35 = vadd.f32 %v139_v33, %v2378_v28  ;;  %v212_v36 = vpop.f32.mrf.mxu1 }
  0xc8   :  { %v213_v37 = vadd.f32 %v212_v36, %v2378_v28  ;;  %v1825_v38 = vpop.f32.mrf.mxu0 }
  0xc9   :  { %163 = vst.msk [vmem:[#allocation2] sm:$0xff] %vm162_vm2, %v140_v35  ;;  %v1839_v39 = vpop.f32.mrf.mxu1 }
  0xca   :  { %236 = vst.msk [vmem:[#allocation2 + $0x30] sm:$0xff] %vm162_vm2, %v213_v37  ;;  %v142_v40 = vpop.f32.mrf.mxu0 }
  0xcb   :  { %v143_v41 = vadd.f32 %v142_v40, %v2384_v31  ;;  %v215_v42 = vpop.f32.mrf.mxu1 }
  0xcc   :  { %v216_v44 = vadd.f32 %v215_v42, %v2384_v31  ;;  %v1826_v45 = vpop.f32.mrf.mxu0 }
  0xcd   :  { %164 = vst.msk [vmem:[#allocation2 + $0x8] sm:$0xff] %vm162_vm2, %v143_v41  ;;  %v1840_v47 = vpop.f32.mrf.mxu1 }
  0xce   :  { %237 = vst.msk [vmem:[#allocation2 + $0x38] sm:$0xff] %vm162_vm2, %v216_v44  ;;  %v147_v48 = vpop.f32.mrf.mxu0 }
  0xcf   :  { %v148_v49 = vadd.f32 %v147_v48, %v2398_v46  ;;  %v220_v50 = vpop.f32.mrf.mxu1 }
  0xd0   :  { %v221_v51 = vadd.f32 %v220_v50, %v2398_v46  ;;  %v1829_v52 = vpop.f32.mrf.mxu0 }
  0xd1   :  { %165 = vst.msk [vmem:[#allocation2 + $0x10] sm:$0xff] %vm162_vm2, %v148_v49  ;;  %v1843_v53 = vpop.f32.mrf.mxu1 }
  0xd2   :  { %238 = vst.msk [vmem:[#allocation2 + $0x40] sm:$0xff] %vm162_vm2, %v221_v51  ;;  %v150_v54 = vpop.f32.mrf.mxu0 }
  0xd3   :  { %v151_v56 = vadd.f32 %v150_v54, %v2380_v29  ;;  %v223_v57 = vpop.f32.mrf.mxu1 }
  0xd4   :  { %v224_v58 = vadd.f32 %v223_v57, %v2380_v29  ;;  %v1830_v59 = vpop.f32.mrf.mxu0 }
  0xd5   :  { %166 = vst.msk [vmem:[#allocation2 + $0x18] sm:$0xff] %vm162_vm2, %v151_v56  ;;  %v1844_v60 = vpop.f32.mrf.mxu1 }
  0xd6   :  { %239 = vst.msk [vmem:[#allocation2 + $0x48] sm:$0xff] %vm162_vm2, %v224_v58  ;;  %v155_v61 = vpop.f32.mrf.mxu0 }
  0xd7   :  { %v156_v62 = vadd.f32 %v155_v61, %v2395_v43  ;;  %v228_v63 = vpop.f32.mrf.mxu1 }
  0xd8   :  { %v229_v1 = vadd.f32 %v228_v63, %v2395_v43  ;;  %v1833_v2 = vpop.f32.mrf.mxu0 }
  0xd9   :  { %167 = vst.msk [vmem:[#allocation2 + $0x20] sm:$0xff] %vm162_vm2, %v156_v62  ;;  %v1847_v4 = vpop.f32.mrf.mxu1 }
  0xda   :  { %240 = vst.msk [vmem:[#allocation2 + $0x50] sm:$0xff] %vm162_vm2, %v229_v1  ;;  %v158_v5 = vpop.f32.mrf.mxu0  ;;  %v473_v1 = vld [vmem:[#allocation2] sm:$0xff] }
  0xdb   :  { %v159_v6 = vadd.f32 %v158_v5, %v2414_v3  ;;  %v231_v7 = vpop.f32.mrf.mxu1 }
  0xdc   :  { %v232_v8 = vadd.f32 %v231_v7, %v2414_v3  ;;  %v1834_v9 = vpop.f32.mrf.mxu0 }
  0xdd   :  { %168 = vst.msk [vmem:[#allocation2 + $0x28] sm:$0xff] %vm162_vm2, %v159_v6  ;;  %v1848_v10 = vpop.f32.mrf.mxu1 }
  0xde   :  { %241 = vst.msk [vmem:[#allocation2 + $0x58] sm:$0xff] %vm162_vm2, %v232_v8  ;;  %v285_v11 = vpop.f32.mrf.mxu0 }
  0xdf   :  { %v286_v12 = vadd.f32 %v285_v11, %v2378_v28  ;;  %v358_v13 = vpop.f32.mrf.mxu1 }
  0xe0   :  { %v359_v14 = vadd.f32 %v358_v13, %v2378_v28  ;;  %v1853_v15 = vpop.f32.mrf.mxu0 }
  0xe1   :  { %309 = vst.msk [vmem:[#allocation2 + $0x60] sm:$0xff] %vm162_vm2, %v286_v12  ;;  %v1867_v16 = vpop.f32.mrf.mxu1  ;;  %v474_v12 = vld [vmem:[#allocation2 + $0x8] sm:$0xff] }
  0xe2   :  { %382 = vst.msk [vmem:[#allocation2 + $0x90] sm:$0xff] %vm162_vm2, %v359_v14  ;;  %v288_v17 = vpop.f32.mrf.mxu0 }
  0xe3   :  { %v289_v18 = vadd.f32 %v288_v17, %v2384_v31  ;;  %v361_v19 = vpop.f32.mrf.mxu1 }
  0xe4   :  { %v362_v20 = vadd.f32 %v361_v19, %v2384_v31  ;;  %v1854_v21 = vpop.f32.mrf.mxu0 }
  0xe5   :  { %310 = vst.msk [vmem:[#allocation2 + $0x68] sm:$0xff] %vm162_vm2, %v289_v18  ;;  %v1868_v22 = vpop.f32.mrf.mxu1 }
  0xe6   :  { %383 = vst.msk [vmem:[#allocation2 + $0x98] sm:$0xff] %vm162_vm2, %v362_v20  ;;  %v293_v23 = vpop.f32.mrf.mxu0 }
  0xe7   :  { %v294_v24 = vadd.f32 %v293_v23, %v2398_v46  ;;  %v366_v33 = vpop.f32.mrf.mxu1 }
  0xe8   :  { %v367_v35 = vadd.f32 %v366_v33, %v2398_v46  ;;  %v1857_v36 = vpop.f32.mrf.mxu0 }
  0xe9   :  { %311 = vst.msk [vmem:[#allocation2 + $0x70] sm:$0xff] %vm162_vm2, %v294_v24  ;;  %v1871_v37 = vpop.f32.mrf.mxu1 }
  0xea   :  { %384 = vst.msk [vmem:[#allocation2 + $0xa0] sm:$0xff] %vm162_vm2, %v367_v35  ;;  %v296_v38 = vpop.f32.mrf.mxu0 }
  0xeb   :  { %v297_v39 = vadd.f32 %v296_v38, %v2380_v29  ;;  %v369_v40 = vpop.f32.mrf.mxu1 }
  0xec   :  { %v370_v41 = vadd.f32 %v369_v40, %v2380_v29  ;;  %v1858_v42 = vpop.f32.mrf.mxu0 }
  0xed   :  { %312 = vst.msk [vmem:[#allocation2 + $0x78] sm:$0xff] %vm162_vm2, %v297_v39  ;;  %v1872_v44 = vpop.f32.mrf.mxu1 }
  0xee   :  { %385 = vst.msk [vmem:[#allocation2 + $0xa8] sm:$0xff] %vm162_vm2, %v370_v41  ;;  %v301_v45 = vpop.f32.mrf.mxu0 }
  0xef   :  { %v302_v47 = vadd.f32 %v301_v45, %v2395_v43  ;;  %v374_v48 = vpop.f32.mrf.mxu1 }
  0xf0   :  { %v375_v49 = vadd.f32 %v374_v48, %v2395_v43  ;;  %v1861_v50 = vpop.f32.mrf.mxu0 }
  0xf1   :  { %313 = vst.msk [vmem:[#allocation2 + $0x80] sm:$0xff] %vm162_vm2, %v302_v47  ;;  %v1875_v51 = vpop.f32.mrf.mxu1 }
  0xf2   :  { %386 = vst.msk [vmem:[#allocation2 + $0xb0] sm:$0xff] %vm162_vm2, %v375_v49  ;;  %v304_v52 = vpop.f32.mrf.mxu0 }
  0xf3   :  { %v305_v53 = vadd.f32 %v304_v52, %v2414_v3  ;;  %v377_v54 = vpop.f32.mrf.mxu1 }
  0xf4   :  { %v378_v56 = vadd.f32 %v377_v54, %v2414_v3  ;;  %v1862_v57 = vpop.f32.mrf.mxu0 }
  0xf5   :  { %314 = vst.msk [vmem:[#allocation2 + $0x88] sm:$0xff] %vm162_vm2, %v305_v53  ;;  %v1876_v58 = vpop.f32.mrf.mxu1  ;;  %v2462_v53 = vpop.permute.xlu0 %492  ;;  %v475_v57 = vld [vmem:[#allocation2 + $0x10] sm:$0xff] }
  0xf6   :  { %387 = vst.msk [vmem:[#allocation2 + $0xb8] sm:$0xff] %vm162_vm2, %v378_v56  ;;  %v431_v59 = vpop.f32.mrf.mxu0 }
  0xf7   :  { %v432_v60 = vadd.f32 %v431_v59, %v2378_v28  ;;  %v568_v61 = vpop.f32.mrf.mxu1 }
  0xf8   :  { %v569_v62 = vadd.f32 %v568_v61, %v2382_v30  ;;  %v1881_v63 = vpop.f32.mrf.mxu0 }
  0xf9   :  { %455 = vst.msk [vmem:[#allocation2 + $0xc0] sm:$0xff] %vm162_vm2, %v432_v60  ;;  %v1895_v2 = vpop.f32.mrf.mxu1 }
  0xfa   :  { %v591_v4 = vadd.f32 %v569_v62, %v473_v1  ;;  %v434_v5 = vpop.f32.mrf.mxu0  ;;  %v2465_v1 = vpop.permute.xlu1 %507 }
  0xfb   :  { %v435_v6 = vadd.f32 %v434_v5, %v2384_v31  ;;  %v571_v7 = vpop.f32.mrf.mxu1 }
  0xfc   :  { %v1718_v8 = vmul.f32 -1.442695, %v591_v4  ;;  %v572_v9 = vadd.f32 %v571_v7, %v2388_v34  ;;  %v1882_v10 = vpop.f32.mrf.mxu0 }
  0xfd   :  { %456 = vst.msk [vmem:[#allocation2 + $0xc8] sm:$0xff] %vm162_vm2, %v435_v6  ;;  %v1896_v28 = vpop.f32.mrf.mxu1 }
  0xfe   :  { %2040 = vpow2.f32 %v1718_v8  ;;  %v439_v11 = vpop.f32.mrf.mxu0  ;;  %v598_v15 = vadd.f32 %v572_v9, %v474_v12 }
  0xff   :  { %v440_v13 = vadd.f32 %v439_v11, %v2398_v46  ;;  %v576_v14 = vpop.f32.mrf.mxu1 }
 0x100   :  { %v1885_v16 = vpop.f32.mrf.mxu0  ;;  %v1719_v20 = vmul.f32 -1.442695, %v598_v15 }
 0x101   :  { %457 = vst.msk [vmem:[#allocation2 + $0xd0] sm:$0xff] %vm162_vm2, %v440_v13  ;;  %v1899_v17 = vpop.f32.mrf.mxu1 }
 0x102   :  { %v442_v31 = vpop.f32.mrf.mxu0  ;;  %2042 = vpow2.f32 %v1719_v20  ;;  %v636_v20 = vld [vmem:[#allocation2 + $0x30] sm:$0xff] }
 0x103   :  { %v443_v18 = vadd.f32 %v442_v31, %v2380_v29  ;;  %v579_v19 = vpop.f32.mrf.mxu1 }
 0x104   :  { %v1886_v21 = vpop.f32.mrf.mxu0  ;;  %v580_v38 = vadd.f32 %v579_v19, %v2386_v32 }
 0x105   :  { %458 = vst.msk [vmem:[#allocation2 + $0xd8] sm:$0xff] %vm162_vm2, %v443_v18  ;;  %v1900_v22 = vpop.f32.mrf.mxu1 }
 0x106   :  { %v447_v23 = vpop.f32.mrf.mxu0 }
 0x107   :  { %v448_v24 = vadd.f32 %v447_v23, %v2395_v43  ;;  %v584_v33 = vpop.f32.mrf.mxu1 }
 0x108   :  { %v1889_v46 = vpop.f32.mrf.mxu0  ;;  %v585_v48 = vadd.f32 %v584_v33, %v2406_v55 }
 0x109   :  { %459 = vst.msk [vmem:[#allocation2 + $0xe0] sm:$0xff] %vm162_vm2, %v448_v24  ;;  %v1903_v35 = vpop.f32.mrf.mxu1 }
 0x10a   :  { %v450_v36 = vpop.f32.mrf.mxu0  ;;  %v637_v35 = vld [vmem:[#allocation2 + $0x38] sm:$0xff] }
 0x10b   :  { %v2041_v37 = vpop.eup %2040  ;;  %v451_v29 = vadd.f32 %v450_v36, %v2414_v3  ;;  %v587_v39 = vpop.f32.mrf.mxu1  ;;  %v577_v3 = vadd.f32 %v576_v14, %v2462_v53 }
 0x10c   :  { %v595_v40 = vadd.f32 1.0, %v2041_v37  ;;  %v476_v41 = vld [vmem:[#allocation2 + $0xd8] sm:$0xff]  ;;  %v1890_v42 = vpop.f32.mrf.mxu0  ;;  %v588_v5 = vadd.f32 %v587_v39, %v2465_v1 }
 0x10d   :  { %v612_v44 = vadd.f32 %v580_v38, %v476_v41  ;;  %460 = vst.msk [vmem:[#allocation2 + $0xe8] sm:$0xff] %vm162_vm2, %v451_v29  ;;  %v1904_v43 = vpop.f32.mrf.mxu1  ;;  %v639_v41 = vld [vmem:[#allocation2 + $0xa8] sm:$0xff] }
 0x10e   :  { %2044 = vrcp.f32 %v595_v40 }
 0x10f   :  { %v1720_v45 = vmul.f32 -1.442695, %v612_v44  ;;  %v2043_v50 = vpop.eup %2042 }
 0x110   :  { %v477_v47 = vld [vmem:[#allocation2 + $0xe0] sm:$0xff]  ;;  %v602_v52 = vadd.f32 1.0, %v2043_v50  ;;  %v640_v50 = vld [vmem:[#allocation2 + $0xb0] sm:$0xff] }
 0x111   :  { %2046 = vpow2.f32 %v1720_v45  ;;  %v619_v49 = vadd.f32 %v585_v48, %v477_v47 }
 0x113   :  { %v1721_v51 = vmul.f32 -1.442695, %v619_v49 }
 0x114   :  { %v478_v10 = vld [vmem:[#allocation2 + $0xe8] sm:$0xff] }
 0x115   :  { %2048 = vpow2.f32 %v1721_v51 }
 0x116   :  { %2050 = vrcp.f32 %v602_v52 }
 0x11b   :  { %v2045_v54 = vpop.eup %2044 }
 0x11c   :  { %v605_v56 = vmul.f32 %v2045_v54, %v577_v3 }
 0x11e   :  { %v2047_v58 = vpop.eup %2046  ;;  %v606_v59 = vadd.f32 %v605_v56, %v475_v57 }
 0x11f   :  { %v616_v60 = vadd.f32 1.0, %v2047_v58 }
 0x120   :  { %2052 = vtanh.f32 %v606_v59 }
 0x121   :  { %2054 = vrcp.f32 %v616_v60 }
 0x122   :  { %v2049_v61 = vpop.eup %2048 }
 0x123   :  { %v2051_v62 = vpop.eup %2050  ;;  %v623_v63 = vadd.f32 1.0, %v2049_v61 }
 0x124   :  { %v608_v2 = vsub.f32 1.0, %v2051_v62  ;;  %v610_v8 = vmul.f32 0.0, %v2051_v62 }
 0x125   :  { %2056 = vrcp.f32 %v623_v63 }
 0x12d   :  { %v2053_v4 = vpop.eup %2052 }
 0x12e   :  { %v2055_v6 = vpop.eup %2054  ;;  %v609_v7 = vmul.f32 %v2053_v4, %v608_v2  ;;  %v638_v2 = vld [vmem:[#allocation2 + $0x40] sm:$0xff] }
 0x12f   :  { %v626_v9 = vmul.f32 %v2055_v6, %v588_v5 }
 0x130   :  { %v2468_v28 = vadd.f32 %v610_v8, %v609_v7 }
 0x131   :  { %v627_v11 = vadd.f32 %v626_v9, %v478_v10 }
 0x132   :  { %633 = vst.msk [vmem:[#allocation3] sm:$0xff] %vm162_vm2, %v2468_v28  ;;  %v2057_v12 = vpop.eup %2056 }
 0x133   :  { %2058 = vtanh.f32 %v627_v11  ;;  %v629_v13 = vsub.f32 1.0, %v2057_v12  ;;  %v631_v16 = vmul.f32 0.0, %v2057_v12  ;;  %v641_v11 = vld [vmem:[#allocation2 + $0xb8] sm:$0xff] }
 0x140   :  { %v2059_v14 = vpop.eup %2058 }
 0x141   :  { %v630_v15 = vmul.f32 %v2059_v14, %v629_v13 }
 0x143   :  { %v2472_v17 = vadd.f32 %v631_v16, %v630_v15 }
 0x145   :  { %635 = vst.msk [vmem:[#allocation3 + $0x48] sm:$0xff] %vm162_vm2, %v2472_v17  ;;  %v642_v31 = vpack.c.bf16 %v2472_v17, %v2468_v28 }
 0x147   :  { %1906 = vmatpush3.bf16.msra.mxu0 %v642_v31 }
 0x148   :  { %1933 = vmatprep.subr.bf16.mxu0 %v2164_v0 }
 0x14a   :  { %1908 = vmatmul.mubr.msk.bf16.vlgmr.msra.gmra.mxu0 %vm95_vm1, %v2343_v25 }
 0x14b   :  { %1911 = vmatprep.mubr.msk.bf16.mxu0 %vm2165_vm0, %v2164_v0 }
 0x152   :  { %1912 = vmatmul.mubr.msk.bf16.gmra.mxu0 %vm95_vm1, %v2356_v26 }
 0x153   :  { %1915 = vmatprep.mubr.msk.bf16.mxu0 %vm2165_vm0, %v2164_v0 }
 0x15a   :  { %1916 = vmatmul.mubr.msk.bf16.gmra.mxu0 %vm95_vm1, %v2369_v27 }
 0x15b   :  { %1935 = vmatprep.mubr.msk.bf16.mxu0 %vm2165_vm0, %v2164_v0 }
 0x20a   :  { %v677_v18 = vpop.f32.mrf.mxu0 }
 0x20b   :  { %v678_v19 = vadd.f32 %v677_v18, %v2382_v30 }
 0x20c   :  { %v1909_v21 = vpop.f32.mrf.mxu0 }
 0x20d   :  { %v700_v22 = vadd.f32 %v678_v19, %v636_v20 }
 0x20e   :  { %v680_v23 = vpop.f32.mrf.mxu0 }
 0x20f   :  { %v1725_v24 = vmul.f32 -1.442695, %v700_v22  ;;  %v681_v33 = vadd.f32 %v680_v23, %v2388_v34 }
 0x210   :  { %v1910_v46 = vpop.f32.mrf.mxu0 }
 0x211   :  { %2060 = vpow2.f32 %v1725_v24  ;;  %v707_v37 = vadd.f32 %v681_v33, %v637_v35  ;;  %v746_v33 = vld [vmem:[#allocation2 + $0x60] sm:$0xff] }
 0x212   :  { %v685_v36 = vpop.f32.mrf.mxu0 }
 0x213   :  { %v1726_v39 = vmul.f32 -1.442695, %v707_v37  ;;  %v686_v61 = vadd.f32 %v685_v36, %v2462_v53 }
 0x214   :  { %v1913_v38 = vpop.f32.mrf.mxu0 }
 0x215   :  { %2062 = vpow2.f32 %v1726_v39  ;;  %v747_v39 = vld [vmem:[#allocation2 + $0x68] sm:$0xff] }
 0x216   :  { %v688_v29 = vpop.f32.mrf.mxu0 }
 0x217   :  { %v689_v40 = vadd.f32 %v688_v29, %v2386_v32 }
 0x218   :  { %v1914_v42 = vpop.f32.mrf.mxu0 }
 0x219   :  { %v721_v44 = vadd.f32 %v689_v40, %v639_v41 }
 0x21a   :  { %v693_v43 = vpop.f32.mrf.mxu0 }
 0x21b   :  { %v1727_v45 = vmul.f32 -1.442695, %v721_v44  ;;  %v694_v47 = vadd.f32 %v693_v43, %v2406_v55 }
 0x21c   :  { %v1917_v48 = vpop.f32.mrf.mxu0 }
 0x21d   :  { %2064 = vpow2.f32 %v1727_v45  ;;  %v728_v3 = vadd.f32 %v694_v47, %v640_v50  ;;  %v749_v47 = vld [vmem:[#allocation2 + $0x78] sm:$0xff] }
 0x21e   :  { %v2061_v49 = vpop.eup %2060  ;;  %v696_v51 = vpop.f32.mrf.mxu0 }
 0x21f   :  { %v704_v52 = vadd.f32 1.0, %v2061_v49  ;;  %v1728_v56 = vmul.f32 -1.442695, %v728_v3  ;;  %v697_v7 = vadd.f32 %v696_v51, %v2465_v1 }
 0x220   :  { %v1918_v54 = vpop.f32.mrf.mxu0 }
 0x221   :  { %2066 = vrcp.f32 %v704_v52 }
 0x222   :  { %2068 = vpow2.f32 %v1728_v56  ;;  %v2063_v57 = vpop.eup %2062  ;;  %v750_v56 = vld [vmem:[#allocation2 + $0x80] sm:$0xff] }
 0x223   :  { %v711_v59 = vadd.f32 1.0, %v2063_v57 }
 0x22a   :  { %v2065_v58 = vpop.eup %2064 }
 0x22b   :  { %v725_v60 = vadd.f32 1.0, %v2065_v58 }
 0x22d   :  { %2070 = vrcp.f32 %v725_v60 }
 0x22e   :  { %v2067_v62 = vpop.eup %2066  ;;  %2072 = vrcp.f32 %v711_v59 }
 0x22f   :  { %v714_v63 = vmul.f32 %v2067_v62, %v686_v61  ;;  %v2069_v5 = vpop.eup %2068 }
 0x230   :  { %v732_v6 = vadd.f32 1.0, %v2069_v5 }
 0x231   :  { %v715_v4 = vadd.f32 %v714_v63, %v638_v2 }
 0x233   :  { %2074 = vtanh.f32 %v715_v4 }
 0x234   :  { %2076 = vrcp.f32 %v732_v6 }
 0x23a   :  { %v2071_v8 = vpop.eup %2070 }
 0x23b   :  { %v735_v9 = vmul.f32 %v2071_v8, %v697_v7  ;;  %v2073_v10 = vpop.eup %2072  ;;  %v748_v8 = vld [vmem:[#allocation2 + $0x70] sm:$0xff] }
 0x23c   :  { %v717_v13 = vsub.f32 1.0, %v2073_v10  ;;  %v719_v16 = vmul.f32 %v2073_v10, %v2468_v28 }
 0x23d   :  { %v736_v12 = vadd.f32 %v735_v9, %v641_v11 }
 0x23f   :  { %2078 = vtanh.f32 %v736_v12 }
 0x240   :  { %v2075_v14 = vpop.eup %2074 }
 0x241   :  { %v718_v15 = vmul.f32 %v2075_v14, %v717_v13  ;;  %v2077_v18 = vpop.eup %2076 }
 0x242   :  { %v738_v19 = vsub.f32 1.0, %v2077_v18  ;;  %v740_v22 = vmul.f32 %v2077_v18, %v2472_v17 }
 0x243   :  { %v2498_v31 = vadd.f32 %v719_v16, %v718_v15  ;;  %v751_v16 = vld [vmem:[#allocation2 + $0x88] sm:$0xff] }
 0x245   :  { %743 = vst.msk [vmem:[#allocation3 + $0x10] sm:$0xff] %vm162_vm2, %v2498_v31 }
 0x24c   :  { %v2079_v20 = vpop.eup %2078 }
 0x24d   :  { %v739_v21 = vmul.f32 %v2079_v20, %v738_v19 }
 0x24f   :  { %v2503_v23 = vadd.f32 %v740_v22, %v739_v21 }
 0x251   :  { %745 = vst.msk [vmem:[#allocation3 + $0x38] sm:$0xff] %vm162_vm2, %v2503_v23  ;;  %v752_v24 = vpack.c.bf16 %v2503_v23, %v2498_v31 }
 0x253   :  { %1920 = vmatpush3.bf16.msra.mxu1 %v752_v24 }
 0x254   :  { %1947 = vmatprep.subr.bf16.mxu1 %v2164_v0 }
 0x256   :  { %1922 = vmatmul.mubr.msk.bf16.vlgmr.msra.gmra.mxu1 %vm95_vm1, %v2343_v25 }
 0x257   :  { %1925 = vmatprep.mubr.msk.bf16.mxu1 %vm2165_vm0, %v2164_v0 }
 0x25e   :  { %1926 = vmatmul.mubr.msk.bf16.gmra.mxu1 %vm95_vm1, %v2356_v26 }
 0x25f   :  { %1929 = vmatprep.mubr.msk.bf16.mxu1 %vm2165_vm0, %v2164_v0 }
 0x266   :  { %1930 = vmatmul.mubr.msk.bf16.gmra.mxu1 %vm95_vm1, %v2369_v27 }
 0x267   :  { %1949 = vmatprep.mubr.msk.bf16.mxu1 %vm2165_vm0, %v2164_v0 }
 0x316   :  { %v787_v28 = vpop.f32.mrf.mxu1 }
 0x317   :  { %v788_v17 = vadd.f32 %v787_v28, %v2382_v30 }
 0x318   :  { %v1923_v46 = vpop.f32.mrf.mxu1 }
 0x319   :  { %v810_v35 = vadd.f32 %v788_v17, %v746_v33 }
 0x31a   :  { %v790_v36 = vpop.f32.mrf.mxu1 }
 0x31b   :  { %v1732_v37 = vmul.f32 -1.442695, %v810_v35  ;;  %v791_v38 = vadd.f32 %v790_v36, %v2388_v34 }
 0x31c   :  { %v1924_v29 = vpop.f32.mrf.mxu1 }
 0x31d   :  { %2080 = vpow2.f32 %v1732_v37  ;;  %v817_v41 = vadd.f32 %v791_v38, %v747_v39  ;;  %v855_v38 = vld [vmem:[#allocation2 + $0x90] sm:$0xff] }
 0x31e   :  { %v795_v40 = vpop.f32.mrf.mxu1 }
 0x31f   :  { %v1733_v43 = vmul.f32 -1.442695, %v817_v41  ;;  %v796_v5 = vadd.f32 %v795_v40, %v2462_v53 }
 0x320   :  { %v1927_v42 = vpop.f32.mrf.mxu1 }
 0x321   :  { %2082 = vpow2.f32 %v1733_v43  ;;  %v856_v43 = vld [vmem:[#allocation2 + $0x98] sm:$0xff] }
 0x322   :  { %v798_v44 = vpop.f32.mrf.mxu1 }
 0x323   :  { %v799_v45 = vadd.f32 %v798_v44, %v2386_v32 }
 0x324   :  { %v1928_v48 = vpop.f32.mrf.mxu1 }
 0x325   :  { %v831_v49 = vadd.f32 %v799_v45, %v749_v47 }
 0x326   :  { %v803_v50 = vpop.f32.mrf.mxu1 }
 0x327   :  { %v1734_v51 = vmul.f32 -1.442695, %v831_v49  ;;  %v804_v52 = vadd.f32 %v803_v50, %v2406_v55 }
 0x328   :  { %v1931_v3 = vpop.f32.mrf.mxu1 }
 0x329   :  { %2084 = vpow2.f32 %v1734_v51  ;;  %v838_v59 = vadd.f32 %v804_v52, %v750_v56  ;;  %v858_v52 = vld [vmem:[#allocation2 + $0x48] sm:$0xff] }
 0x32a   :  { %v2081_v54 = vpop.eup %2080  ;;  %v806_v57 = vpop.f32.mrf.mxu1 }
 0x32b   :  { %v814_v58 = vadd.f32 1.0, %v2081_v54  ;;  %v1735_v61 = vmul.f32 -1.442695, %v838_v59  ;;  %v807_v12 = vadd.f32 %v806_v57, %v2465_v1 }
 0x32c   :  { %v1932_v60 = vpop.f32.mrf.mxu1 }
 0x32d   :  { %2086 = vrcp.f32 %v814_v58 }
 0x32e   :  { %2088 = vpow2.f32 %v1735_v61  ;;  %v2083_v62 = vpop.eup %2082  ;;  %v859_v61 = vld [vmem:[#allocation2 + $0x50] sm:$0xff] }
 0x32f   :  { %v821_v2 = vadd.f32 1.0, %v2083_v62 }
 0x336   :  { %v2085_v63 = vpop.eup %2084 }
 0x337   :  { %v835_v4 = vadd.f32 1.0, %v2085_v63 }
 0x339   :  { %2090 = vrcp.f32 %v835_v4 }
 0x33a   :  { %v2087_v6 = vpop.eup %2086  ;;  %2092 = vrcp.f32 %v821_v2 }
 0x33b   :  { %v824_v7 = vmul.f32 %v2087_v6, %v796_v5  ;;  %v2089_v10 = vpop.eup %2088 }
 0x33c   :  { %v842_v11 = vadd.f32 1.0, %v2089_v10 }
 0x33d   :  { %v825_v9 = vadd.f32 %v824_v7, %v748_v8 }
 0x33f   :  { %2094 = vtanh.f32 %v825_v9 }
 0x340   :  { %2096 = vrcp.f32 %v842_v11 }
 0x346   :  { %v2091_v13 = vpop.eup %2090 }
 0x347   :  { %v845_v14 = vmul.f32 %v2091_v13, %v807_v12  ;;  %v2093_v15 = vpop.eup %2092  ;;  %v857_v13 = vld [vmem:[#allocation2 + $0xa0] sm:$0xff] }
 0x348   :  { %v827_v19 = vsub.f32 1.0, %v2093_v15  ;;  %v829_v22 = vmul.f32 %v2093_v15, %v2498_v31 }
 0x349   :  { %v846_v18 = vadd.f32 %v845_v14, %v751_v16 }
 0x34b   :  { %2098 = vtanh.f32 %v846_v18 }
 0x34c   :  { %v2095_v20 = vpop.eup %2094 }
 0x34d   :  { %v828_v21 = vmul.f32 %v2095_v20, %v827_v19  ;;  %v2097_v28 = vpop.eup %2096 }
 0x34e   :  { %v848_v17 = vsub.f32 1.0, %v2097_v28  ;;  %v850_v35 = vmul.f32 %v2097_v28, %v2503_v23 }
 0x34f   :  { %v2529_v24 = vadd.f32 %v829_v22, %v828_v21  ;;  %v860_v22 = vld [vmem:[#allocation2 + $0x58] sm:$0xff] }
 0x351   :  { %853 = vst.msk [vmem:[#allocation3 + $0x20] sm:$0xff] %vm162_vm2, %v2529_v24 }
 0x358   :  { %v2099_v33 = vpop.eup %2098 }
 0x359   :  { %v849_v46 = vmul.f32 %v2099_v33, %v848_v17 }
 0x35b   :  { %v2534_v36 = vadd.f32 %v850_v35, %v849_v46 }
 0x35d   :  { %854 = vst.msk [vmem:[#allocation3 + $0x28] sm:$0xff] %vm162_vm2, %v2534_v36  ;;  %v861_v37 = vpack.c.bf16 %v2534_v36, %v2529_v24 }
 0x35f   :  { %1934 = vmatpush3.bf16.msra.mxu0 %v861_v37 }
 0x360   :  { %1961 = vmatprep.subr.bf16.mxu0 %v2164_v0 }
 0x362   :  { %1936 = vmatmul.mubr.msk.bf16.vlgmr.msra.gmra.mxu0 %vm95_vm1, %v2343_v25 }
 0x363   :  { %1939 = vmatprep.mubr.msk.bf16.mxu0 %vm2165_vm0, %v2164_v0 }
 0x36a   :  { %1940 = vmatmul.mubr.msk.bf16.gmra.mxu0 %vm95_vm1, %v2356_v26 }
 0x36b   :  { %1943 = vmatprep.mubr.msk.bf16.mxu0 %vm2165_vm0, %v2164_v0 }
 0x372   :  { %1944 = vmatmul.mubr.msk.bf16.gmra.mxu0 %vm95_vm1, %v2369_v27 }
 0x373   :  { %1963 = vmatprep.mubr.msk.bf16.mxu0 %vm2165_vm0, %v2164_v0 }
 0x422   :  { %v896_v31 = vpop.f32.mrf.mxu0 }
 0x423   :  { %v897_v23 = vadd.f32 %v896_v31, %v2382_v30 }
 0x424   :  { %v1937_v29 = vpop.f32.mrf.mxu0 }
 0x425   :  { %v919_v39 = vadd.f32 %v897_v23, %v855_v38 }
 0x426   :  { %v899_v40 = vpop.f32.mrf.mxu0 }
 0x427   :  { %v1739_v41 = vmul.f32 -1.442695, %v919_v39  ;;  %v900_v42 = vadd.f32 %v899_v40, %v2388_v34 }
 0x428   :  { %v1938_v44 = vpop.f32.mrf.mxu0 }
 0x429   :  { %2100 = vpow2.f32 %v1739_v41  ;;  %v926_v47 = vadd.f32 %v900_v42, %v856_v43  ;;  %v963_v42 = vld [vmem:[#allocation2 + $0xc0] sm:$0xff] }
 0x42a   :  { %v904_v45 = vpop.f32.mrf.mxu0 }
 0x42b   :  { %v1740_v50 = vmul.f32 -1.442695, %v926_v47  ;;  %v905_v10 = vadd.f32 %v904_v45, %v2462_v53 }
 0x42c   :  { %v1941_v48 = vpop.f32.mrf.mxu0 }
 0x42d   :  { %2102 = vpow2.f32 %v1740_v50  ;;  %v964_v48 = vld [vmem:[#allocation2 + $0xc8] sm:$0xff] }
 0x42e   :  { %v907_v49 = vpop.f32.mrf.mxu0 }
 0x42f   :  { %v908_v51 = vadd.f32 %v907_v49, %v2386_v32 }
 0x430   :  { %v1942_v3 = vpop.f32.mrf.mxu0 }
 0x431   :  { %v940_v54 = vadd.f32 %v908_v51, %v858_v52 }
 0x432   :  { %v912_v56 = vpop.f32.mrf.mxu0 }
 0x433   :  { %v1741_v57 = vmul.f32 -1.442695, %v940_v54  ;;  %v913_v58 = vadd.f32 %v912_v56, %v2406_v55  ;;  %v966_v54 = vld [vmem:[#allocation2 + $0x18] sm:$0xff] }
 0x434   :  { %v1945_v59 = vpop.f32.mrf.mxu0 }
 0x435   :  { %2104 = vpow2.f32 %v1741_v57  ;;  %v947_v2 = vadd.f32 %v913_v58, %v859_v61  ;;  %v967_v61 = vld [vmem:[#allocation2 + $0x20] sm:$0xff] }
 0x436   :  { %v2101_v60 = vpop.eup %2100  ;;  %v915_v62 = vpop.f32.mrf.mxu0 }
 0x437   :  { %v923_v63 = vadd.f32 1.0, %v2101_v60  ;;  %v1742_v5 = vmul.f32 -1.442695, %v947_v2  ;;  %v916_v18 = vadd.f32 %v915_v62, %v2465_v1 }
 0x438   :  { %v1946_v4 = vpop.f32.mrf.mxu0 }
 0x439   :  { %2106 = vrcp.f32 %v923_v63 }
 0x43a   :  { %2108 = vpow2.f32 %v1742_v5  ;;  %v2103_v6 = vpop.eup %2102 }
 0x43b   :  { %v930_v8 = vadd.f32 1.0, %v2103_v6 }
 0x442   :  { %v2105_v7 = vpop.eup %2104 }
 0x443   :  { %v944_v9 = vadd.f32 1.0, %v2105_v7 }
 0x445   :  { %2110 = vrcp.f32 %v944_v9 }
 0x446   :  { %v2107_v11 = vpop.eup %2106  ;;  %2112 = vrcp.f32 %v930_v8 }
 0x447   :  { %v933_v12 = vmul.f32 %v2107_v11, %v905_v10  ;;  %v2109_v15 = vpop.eup %2108  ;;  %v965_v11 = vld [vmem:[#allocation2 + $0xd0] sm:$0xff] }
 0x448   :  { %v951_v16 = vadd.f32 1.0, %v2109_v15 }
 0x449   :  { %v934_v14 = vadd.f32 %v933_v12, %v857_v13 }
 0x44b   :  { %2114 = vtanh.f32 %v934_v14 }
 0x44c   :  { %2116 = vrcp.f32 %v951_v16 }
 0x452   :  { %v2111_v19 = vpop.eup %2110 }
 0x453   :  { %v954_v20 = vmul.f32 %v2111_v19, %v916_v18  ;;  %v2113_v21 = vpop.eup %2112 }
 0x454   :  { %v936_v17 = vsub.f32 1.0, %v2113_v21  ;;  %v938_v35 = vmul.f32 %v2113_v21, %v2529_v24 }
 0x455   :  { %v955_v28 = vadd.f32 %v954_v20, %v860_v22  ;;  %v968_v20 = vld [vmem:[#allocation2 + $0x28] sm:$0xff] }
 0x457   :  { %2118 = vtanh.f32 %v955_v28 }
 0x458   :  { %v2115_v33 = vpop.eup %2114 }
 0x459   :  { %v937_v46 = vmul.f32 %v2115_v33, %v936_v17  ;;  %v2117_v31 = vpop.eup %2116 }
 0x45a   :  { %v957_v23 = vsub.f32 1.0, %v2117_v31  ;;  %v959_v39 = vmul.f32 %v2117_v31, %v2534_v36 }
 0x45b   :  { %v2560_v37 = vadd.f32 %v938_v35, %v937_v46 }
 0x45d   :  { %961 = vst.msk [vmem:[#allocation3 + $0x30] sm:$0xff] %vm162_vm2, %v2560_v37 }
 0x464   :  { %v2119_v38 = vpop.eup %2118 }
 0x465   :  { %v958_v29 = vmul.f32 %v2119_v38, %v957_v23 }
 0x467   :  { %v2565_v40 = vadd.f32 %v959_v39, %v958_v29  ;;  %v2594_v29 = vld [vmem:[#allocation3] sm:$0xff] }
 0x469   :  { %962 = vst.msk [vmem:[#allocation3 + $0x18] sm:$0xff] %vm162_vm2, %v2565_v40  ;;  %v969_v41 = vpack.c.bf16 %v2565_v40, %v2560_v37 }
 0x46b   :  { %1948 = vmatpush3.bf16.msra.mxu1 %v969_v41  ;;  %v2039_v41 = vld [vmem:[%s2700_s5] sm:$0xff]  }
 0x46c   :  { %1967 = vmatprep.subr.bf16.mxu1 %v2164_v0 }
 0x46e   :  { %1950 = vmatmul.mubr.msk.bf16.vlgmr.msra.gmra.mxu1 %vm95_vm1, %v2343_v25 }
 0x46f   :  { %1953 = vmatprep.mubr.msk.bf16.mxu1 %vm2165_vm0, %v2164_v0 }
 0x476   :  { %1954 = vmatmul.mubr.msk.bf16.gmra.mxu1 %vm95_vm1, %v2356_v26 }
 0x477   :  { %1957 = vmatprep.mubr.msk.bf16.mxu1 %vm2165_vm0, %v2164_v0 }
 0x47e   :  { %1958 = vmatmul.mubr.msk.bf16.gmra.mxu1 %vm95_vm1, %v2369_v27 }
 0x47f   :  { %1969 = vmatprep.mubr.msk.bf16.mxu1 %vm2165_vm0, %v2164_v0 }
 0x52e   :  { %v1004_v24 = vpop.f32.mrf.mxu1 }
 0x52f   :  { %v1005_v36 = vadd.f32 %v1004_v24, %v2382_v30  ;;  %v2603_v24 = vld [vmem:[#allocation3 + $0x18] sm:$0xff] }
 0x530   :  { %v1951_v25 = vpop.f32.mrf.mxu1 }
 0x531   :  { %v1027_v44 = vadd.f32 %v1005_v36, %v963_v42  ;;  %v2614_v42 = vld [vmem:[#allocation3 + $0x28] sm:$0xff]  ;;  %v2616_v25 = vld [vmem:[#allocation3 + $0x20] sm:$0xff] }
 0x532   :  { %v1007_v43 = vpop.f32.mrf.mxu1 }
 0x533   :  { %v1746_v45 = vmul.f32 -1.442695, %v1027_v44  ;;  %v1008_v47 = vadd.f32 %v1007_v43, %v2388_v34  ;;  %v1273_v44 = vpack.c.bf16 %v2614_v42, %v2616_v25  ;;  %v2624_v43 = vld [vmem:[#allocation3 + $0x30] sm:$0xff] }
 0x534   :  { %v1952_v26 = vpop.f32.mrf.mxu1 }
 0x535   :  { %2120 = vpow2.f32 %v1746_v45  ;;  %v1034_v50 = vadd.f32 %v1008_v47, %v964_v48  ;;  %v2626_v45 = vld [vmem:[#allocation3 + $0x38] sm:$0xff]  ;;  %v2636_v48 = vld [vmem:[#allocation3 + $0x48] sm:$0xff] }
 0x536   :  { %v1012_v49 = vpop.f32.mrf.mxu1  ;;  %v1360_v47 = vpack.c.bf16 %v2626_v45, %v2624_v43 }
 0x537   :  { %v1747_v52 = vmul.f32 -1.442695, %v1034_v50  ;;  %v1013_v9 = vadd.f32 %v1012_v49, %v2462_v53 }
 0x538   :  { %v1955_v51 = vpop.f32.mrf.mxu1 }
 0x539   :  { %2122 = vpow2.f32 %v1747_v52  ;;  %v1082_v51 = vpop.permute.xlu0 %1081 }
 0x53a   :  { %v1015_v27 = vpop.f32.mrf.mxu1 }
 0x53b   :  { %v1016_v3 = vadd.f32 %v1015_v27, %v2386_v32 }
 0x53c   :  { %v1956_v56 = vpop.f32.mrf.mxu1 }
 0x53d   :  { %v1048_v30 = vadd.f32 %v1016_v3, %v966_v54  ;;  %v1087_v3 = vpop.permute.xlu1 %1086 }
 0x53e   :  { %v1020_v57 = vpop.f32.mrf.mxu1 }
 0x53f   :  { %v1748_v58 = vmul.f32 -1.442695, %v1048_v30  ;;  %v1021_v59 = vadd.f32 %v1020_v57, %v2406_v55 }
 0x540   :  { %v1959_v60 = vpop.f32.mrf.mxu1 }
 0x541   :  { %2124 = vpow2.f32 %v1748_v58  ;;  %v1055_v2 = vadd.f32 %v1021_v59, %v967_v61 }
 0x542   :  { %v2121_v34 = vpop.eup %2120  ;;  %v1023_v62 = vpop.f32.mrf.mxu1 }
 0x543   :  { %v1031_v63 = vadd.f32 1.0, %v2121_v34  ;;  %v1749_v5 = vmul.f32 -1.442695, %v1055_v2  ;;  %v1024_v15 = vadd.f32 %v1023_v62, %v2465_v1 }
 0x544   :  { %v1960_v4 = vpop.f32.mrf.mxu1 }
 0x545   :  { %2126 = vrcp.f32 %v1031_v63 }
 0x546   :  { %2128 = vpow2.f32 %v1749_v5  ;;  %v2123_v32 = vpop.eup %2122 }
 0x547   :  { %v1038_v7 = vadd.f32 1.0, %v2123_v32 }
 0x54e   :  { %v2125_v6 = vpop.eup %2124 }
 0x54f   :  { %v1052_v8 = vadd.f32 1.0, %v2125_v6 }
 0x551   :  { %2130 = vrcp.f32 %v1052_v8 }
 0x552   :  { %v2127_v10 = vpop.eup %2126  ;;  %2132 = vrcp.f32 %v1038_v7 }
 0x553   :  { %v1041_v55 = vmul.f32 %v2127_v10, %v1013_v9  ;;  %v2129_v13 = vpop.eup %2128  ;;  %v1075_v9 = vld [vmem:[%s2701_s7] sm:$0x1] }
 0x554   :  { %v1059_v14 = vadd.f32 1.0, %v2129_v13 }
 0x555   :  { %v1042_v12 = vadd.f32 %v1041_v55, %v965_v11 }
 0x557   :  { %2134 = vtanh.f32 %v1042_v12 }
 0x558   :  { %2136 = vrcp.f32 %v1059_v14 }
 0x55e   :  { %v2131_v16 = vpop.eup %2130 }
 0x55f   :  { %v1062_v18 = vmul.f32 %v2131_v16, %v1024_v15  ;;  %v2133_v19 = vpop.eup %2132 }
 0x560   :  { %v1044_v22 = vsub.f32 1.0, %v2133_v19  ;;  %v1046_v28 = vmul.f32 %v2133_v19, %v2560_v37 }
 0x561   :  { %v1063_v21 = vadd.f32 %v1062_v18, %v968_v20 }
 0x563   :  { %2138 = vtanh.f32 %v1063_v21 }
 0x564   :  { %v2135_v53 = vpop.eup %2134 }
 0x565   :  { %v1045_v17 = vmul.f32 %v2135_v53, %v1044_v22  ;;  %v2137_v46 = vpop.eup %2136 }
 0x566   :  { %v1065_v35 = vsub.f32 1.0, %v2137_v46  ;;  %v1067_v1 = vmul.f32 %v2137_v46, %v2565_v40  ;;  %v2606_v40 = vld [vmem:[#allocation3 + $0x10] sm:$0xff] }
 0x567   :  { %v1047_v33 = vadd.f32 %v1046_v28, %v1045_v17  ;;  %v1186_v36 = vpack.c.bf16 %v2603_v24, %v2606_v40 }
 0x569   :  { %1069 = vst.msk [vmem:[#allocation3 + $0x40] sm:$0xff] %vm162_vm2, %v1047_v33 }
 0x570   :  { %v2139_v31 = vpop.eup %2138  ;;  %v2634_v26 = vld [vmem:[#allocation3 + $0x40] sm:$0xff] }
 0x571   :  { %v1066_v23 = vmul.f32 %v2139_v31, %v1065_v35  ;;  %v1447_v49 = vpack.c.bf16 %v2636_v48, %v2634_v26 }
 0x573   :  { %v1068_v38 = vadd.f32 %v1067_v1, %v1066_v23 }
 0x575   :  { %1070 = vst.msk [vmem:[#allocation3 + $0x8] sm:$0xff] %vm162_vm2, %v1068_v38 }
 0x57c   :  { %v2596_v39 = vld [vmem:[#allocation3 + $0x8] sm:$0xff] }
 0x57d   :  { %v1078_v37 = vpack.c.bf16 %v2596_v39, %v2594_v29 }
 0x57f   :  { %1962 = vmatpush3.bf16.msra.mxu0 %v1078_v37 }
 0x580   :  { %1973 = vmatprep.subr.bf16.mxu0 %v2164_v0 }
 0x582   :  { %1964 = vmatmul.mubr.msk.bf16.vlgmr.msra.gmra.mxu0 %vm95_vm1, %v2039_v41 }
 0x583   :  { %1974 = vmatpush3.bf16.msra.mxu0 %v1186_v36  ;;  %1975 = vmatprep.mubr.msk.bf16.mxu0 %vm2165_vm0, %v2164_v0 }
 0x584   :  { %1985 = vmatprep.subr.bf16.mxu0 %v2164_v0 }
 0x58a   :  { %1976 = vmatmul.mubr.msk.bf16.vlgmr.msra.gmra.mxu0 %vm95_vm1, %v2039_v41 }
 0x58b   :  { %1986 = vmatpush3.bf16.msra.mxu0 %v1273_v44  ;;  %1987 = vmatprep.mubr.msk.bf16.mxu0 %vm2165_vm0, %v2164_v0 }
 0x58c   :  { %1997 = vmatprep.subr.bf16.mxu0 %v2164_v0 }
 0x592   :  { %1988 = vmatmul.mubr.msk.bf16.vlgmr.msra.gmra.mxu0 %vm95_vm1, %v2039_v41 }
 0x593   :  { %1998 = vmatpush3.bf16.msra.mxu0 %v1360_v47  ;;  %1999 = vmatprep.mubr.msk.bf16.mxu0 %vm2165_vm0, %v2164_v0 }
 0x594   :  { %2009 = vmatprep.subr.bf16.mxu0 %v2164_v0 }
 0x59a   :  { %2000 = vmatmul.mubr.msk.bf16.vlgmr.msra.gmra.mxu0 %vm95_vm1, %v2039_v41 }
 0x59b   :  { %2010 = vmatpush3.bf16.msra.mxu0 %v1447_v49  ;;  %2011 = vmatprep.mubr.msk.bf16.mxu0 %vm2165_vm0, %v2164_v0 }
 0x5a2   :  { %2012 = vmatmul.mubr.msk.bf16.vlgmr.msra.gmra.mxu0 %vm95_vm1, %v2039_v41 }
 0x642   :  { %v1131_v50 = vpop.f32.mrf.mxu0 }
 0x643   :  { %v1132_v27 = vadd.f32 %v1131_v50, %v1082_v51 }
 0x644   :  { %v1965_v52 = vpop.f32.mrf.mxu0 }
 0x645   :  { %2140 = vtanh.f32 %v1132_v27 }
 0x646   :  { %v1134_v54 = vpop.f32.mrf.mxu0 }
 0x647   :  { %v1135_v56 = vadd.f32 %v1134_v54, %v1087_v3 }
 0x648   :  { %v1966_v30 = vpop.f32.mrf.mxu0 }
 0x649   :  { %2142 = vtanh.f32 %v1135_v56 }
 0x64a   :  { %v1221_v57 = vpop.f32.mrf.mxu0 }
 0x64b   :  { %v1222_v58 = vadd.f32 %v1221_v57, %v1082_v51 }
 0x64c   :  { %v1977_v59 = vpop.f32.mrf.mxu0 }
 0x64d   :  { %2144 = vtanh.f32 %v1222_v58 }
 0x64e   :  { %v1224_v60 = vpop.f32.mrf.mxu0 }
 0x64f   :  { %v1225_v34 = vadd.f32 %v1224_v60, %v1087_v3 }
 0x650   :  { %v1978_v61 = vpop.f32.mrf.mxu0 }
 0x651   :  { %2146 = vtanh.f32 %v1225_v34 }
 0x652   :  { %v1308_v62 = vpop.f32.mrf.mxu0  ;;  %v2141_v4 = vpop.eup %2140 }
 0x653   :  { %v1309_v63 = vadd.f32 %v1308_v62, %v1082_v51 }
 0x654   :  { %v1989_v2 = vpop.f32.mrf.mxu0 }
 0x655   :  { %2148 = vtanh.f32 %v1309_v63 }
 0x656   :  { %v2143_v5 = vpop.eup %2142  ;;  %v1311_v32 = vpop.f32.mrf.mxu0 }
 0x657   :  { %v1312_v6 = vadd.f32 %v1311_v32, %v1087_v3  ;;  %v1140_v7 = vpack.c.bf16 %v2143_v5, %v2141_v4 }
 0x658   :  { %v1990_v8 = vpop.f32.mrf.mxu0 }
 0x659   :  { %2150 = vtanh.f32 %v1312_v6  ;;  %1968 = vmatpush3.bf16.msra.mxu1 %v1140_v7 }
 0x65a   :  { %v1395_v10 = vpop.f32.mrf.mxu0  ;;  %1979 = vmatprep.subr.bf16.mxu1 %v2164_v0  ;;  %v2145_v12 = vpop.eup %2144 }
 0x65b   :  { %v1396_v55 = vadd.f32 %v1395_v10, %v1082_v51 }
 0x65c   :  { %1970 = vmatmul.mubr.msk.bf16.vlgmr.msra.gmra.mxu1 %vm95_vm1, %v1075_v9  ;;  %v2001_v11 = vpop.f32.mrf.mxu0 }
 0x65d   :  { %1981 = vmatprep.mubr.msk.bf16.mxu1 %vm2165_vm0, %v2164_v0  ;;  %2152 = vtanh.f32 %v1396_v55 }
 0x65e   :  { %v2147_v13 = vpop.eup %2146  ;;  %v1398_v14 = vpop.f32.mrf.mxu0 }
 0x65f   :  { %v1399_v15 = vadd.f32 %v1398_v14, %v1087_v3  ;;  %v1230_v16 = vpack.c.bf16 %v2147_v13, %v2145_v12 }
 0x660   :  { %v2002_v18 = vpop.f32.mrf.mxu0 }
 0x661   :  { %2154 = vtanh.f32 %v1399_v15  ;;  %1980 = vmatpush3.bf16.msra.mxu1 %v1230_v16 }
 0x662   :  { %v1482_v19 = vpop.f32.mrf.mxu0  ;;  %1991 = vmatprep.subr.bf16.mxu1 %v2164_v0  ;;  %v2149_v22 = vpop.eup %2148 }
 0x663   :  { %v1483_v20 = vadd.f32 %v1482_v19, %v1082_v51 }
 0x664   :  { %1982 = vmatmul.mubr.msk.bf16.vlgmr.msra.gmra.mxu1 %vm95_vm1, %v1075_v9  ;;  %v2013_v21 = vpop.f32.mrf.mxu0 }
 0x665   :  { %1993 = vmatprep.mubr.msk.bf16.mxu1 %vm2165_vm0, %v2164_v0  ;;  %2156 = vtanh.f32 %v1483_v20 }
 0x666   :  { %v2151_v53 = vpop.eup %2150  ;;  %v1485_v28 = vpop.f32.mrf.mxu0 }
 0x667   :  { %v1486_v17 = vadd.f32 %v1485_v28, %v1087_v3  ;;  %v1317_v33 = vpack.c.bf16 %v2151_v53, %v2149_v22 }
 0x668   :  { %v2014_v46 = vpop.f32.mrf.mxu0 }
 0x669   :  { %2158 = vtanh.f32 %v1486_v17  ;;  %1992 = vmatpush3.bf16.msra.mxu1 %v1317_v33  ;;  %v2168_v17 = vmov 1966171168   ;;  %v1587_v46 = vlaneseq }
 0x66a   :  { %2003 = vmatprep.subr.bf16.mxu1 %v2164_v0  ;;  %v2153_v35 = vpop.eup %2152  ;;  %v1585_v33 = vunpack.c.l.s4 %v2168_v17 }
 0x66c   :  { %1994 = vmatmul.mubr.msk.bf16.vlgmr.msra.gmra.mxu1 %vm95_vm1, %v1075_v9 }
 0x66d   :  { %2005 = vmatprep.mubr.msk.bf16.mxu1 %vm2165_vm0, %v2164_v0 }
 0x66e   :  { %v2155_v31 = vpop.eup %2154 }
 0x66f   :  { %v1404_v1 = vpack.c.bf16 %v2155_v31, %v2153_v35  ;;  %v1586_v35 = vunpack.c.0.s8 %v1585_v33  ;;  %v1588_v31 = vshrl.u32 %v1587_v46, 7 }
 0x671   :  { %2004 = vmatpush3.bf16.msra.mxu1 %v1404_v1  ;;  %v1589_v1 = vsub.s32 %v1586_v35, %v1588_v31 }
 0x672   :  { %2015 = vmatprep.subr.bf16.mxu1 %v2164_v0  ;;  %v2157_v23 = vpop.eup %2156 }
 0x674   :  { %2006 = vmatmul.mubr.msk.bf16.vlgmr.msra.gmra.mxu1 %vm95_vm1, %v1075_v9 }
 0x675   :  { %2017 = vmatprep.mubr.msk.bf16.mxu1 %vm2165_vm0, %v2164_v0 }
 0x676   :  { %v2159_v38 = vpop.eup %2158 }
 0x677   :  { %v1491_v37 = vpack.c.bf16 %v2159_v38, %v2157_v23 }
 0x679   :  { %2016 = vmatpush3.bf16.msra.mxu1 %v1491_v37 }
 0x67c   :  { %2018 = vmatmul.mubr.msk.bf16.vlgmr.msra.gmra.mxu1 %vm95_vm1, %v1075_v9 }
 0x71c   :  { %v1178_v41 = vpop.f32.mrf.mxu1 }
 0x71e   :  { %v1971_v36 = vpop.f32.mrf.mxu1 }
 0x71f   :  { %v1624_v36 = vsub.s32 0, %v1588_v31 }
 0x720   :  { %v1181_v44 = vpop.f32.mrf.mxu1 }
 0x722   :  { %v1972_v47 = vpop.f32.mrf.mxu1 }
 0x724   :  { %v1265_v49 = vpop.f32.mrf.mxu1 }
 0x725   :  { %v1533_v0 = vrot.slane %v1265_v49, 7 }
 0x726   :  { %v1983_v50 = vpop.f32.mrf.mxu1 }
 0x727   :  { %v1545_v61 = vsel %vm1544_vm3, %v1178_v41, %v1533_v0 }
 0x728   :  { %v1268_v51 = vpop.f32.mrf.mxu1 }
 0x72a   :  { %v1984_v27 = vpop.f32.mrf.mxu1 }
 0x72c   :  { %v1352_v52 = vpop.f32.mrf.mxu1 }
 0x72d   :  { %v1536_v59 = vrot.slane %v1352_v52, 6 }
 0x72e   :  { %v1995_v3 = vpop.f32.mrf.mxu1 }
 0x72f   :  { %v1547_v63 = vsel %vm1546_vm4, %v1545_v61, %v1536_v59 }
 0x730   :  { %v1355_v54 = vpop.f32.mrf.mxu1 }
 0x732   :  { %v1996_v56 = vpop.f32.mrf.mxu1 }
 0x734   :  { %v1439_v30 = vpop.f32.mrf.mxu1 }
 0x735   :  { %v1539_v60 = vrot.slane %v1439_v30, 5 }
 0x736   :  { %v2007_v57 = vpop.f32.mrf.mxu1 }
 0x737   :  { %v1549_v4 = vsel %vm1548_vm5, %v1547_v63, %v1539_v60 }
 0x738   :  { %v1442_v58 = vpop.f32.mrf.mxu1 }
 0x73a   :  { %v2008_v34 = vpop.f32.mrf.mxu1 }
 0x73c   :  { %v1526_v62 = vpop.f32.mrf.mxu1 }
 0x73d   :  { %v1542_v2 = vrot.slane %v1526_v62, 4 }
 0x73e   :  { %v2019_v5 = vpop.f32.mrf.mxu1 }
 0x73f   :  { %v1551_v32 = vsel %vm1550_vm6, %v1549_v4, %v1542_v2 }
 0x740   :  { %v1553_v6 = vsel %vm1552_vm7, %v1551_v32, -inf  ;;  %v1529_v7 = vpop.f32.mrf.mxu1 }
 0x741   :  { %v1554_v8 = vrot.slane %v1553_v6, 4 }
 0x742   :  { %v2020_v9 = vpop.f32.mrf.mxu1 }
 0x743   :  { %v1555_v10 = vmax.f32 %v1553_v6, %v1554_v8 }
 0x745   :  { %v1556_v55 = vrot.slane %v1555_v10, 2 }
 0x747   :  { %v1557_v11 = vmax.f32 %v1555_v10, %v1556_v55 }
 0x749   :  { %v1558_v12 = vrot.slane %v1557_v11, 1 }
 0x74b   :  { %v1559_v13 = vmax.f32 %v1557_v11, %v1558_v12 }
 0x74d   :  { %v1560_v14 = vsub.f32 %v1551_v32, %v1559_v13 }
 0x74f   :  { %v1561_v15 = vmul.f32 1.442695, %v1560_v14 }
 0x751   :  { %2160 = vpow2.f32 %v1561_v15 }
 0x75e   :  { %v2161_v16 = vpop.eup %2160 }
 0x75f   :  { %v1563_v18 = vsel %vm1552_vm7, %v2161_v16, 0.0 }
 0x760   :  { %v1564_v19 = vrot.slane %v1563_v18, 4 }
 0x762   :  { %v1565_v20 = vadd.f32 %v1564_v19, %v1563_v18 }
 0x764   :  { %v1566_v21 = vrot.slane %v1565_v20, 2 }
 0x766   :  { %v1567_v22 = vadd.f32 %v1566_v21, %v1565_v20 }
 0x768   :  { %v1568_v53 = vrot.slane %v1567_v22, 1 }
 0x76a   :  { %v1569_v28 = vadd.f32 %v1568_v53, %v1567_v22 }
 0x76c   :  { %2162 = vrcp.f32 %v1569_v28 }
 0x779   :  { %v2163_v23 = vpop.eup %2162 }
 0x77a   :  { %v1571_v38 = vmul.f32 %v2163_v23, %v2161_v16 }
 0x77c   :  { %v1583_v37 = vcombine.high %v1571_v38, %v1571_v38  ;;  %v1590_v41 = vrot.slane %v1571_v38, %v1589_v1 }
 0x77e   :  { %v1597_v44 = vrot.slane %v1583_v37, %v1589_v1  ;;  %v1598_v47 = vcombine.high %v1590_v41, %v1590_v41  ;;  %v1605_v49 = vrot.slane %v1590_v41, %v1589_v1 }
 0x780   :  { %v1612_v50 = vrot.slane %v1597_v44, %v1589_v1  ;;  %v1619_v51 = vrot.slane %v1598_v47, %v1589_v1  ;;  %v1620_v27 = vcombine.high %v1605_v49, %v1605_v49  ;;  %v1625_v52 = vrot.slane %v1605_v49, %v1624_v36 }
 0x782   :  { %v1621_v3 = vcombine.high %v1619_v51, %v1619_v51  ;;  %v1629_v54 = vrot.slane %v1619_v51, %v1624_v36  ;;  %v1633_v56 = vrot.slane %v1620_v27, %v1624_v36  ;;  %v1641_v30 = vrot.slane %v1612_v50, %v1624_v36 }
 0x783   :  { %v1647_v57 = vmul.f32 %v1625_v52, %v2594_v29  ;;  %v1648_v0 = vmul.f32 %v1625_v52, %v2596_v39 }
 0x784   :  { %v1637_v58 = vrot.slane %v1621_v3, %v1624_v36  ;;  %v1649_v59 = vmul.f32 %v1629_v54, %v2606_v40  ;;  %v1650_v60 = vmul.f32 %v1629_v54, %v2603_v24  ;;  %v1651_v34 = vmul.f32 %v1633_v56, %v2616_v25 }
 0x785   :  { %v1652_v61 = vmul.f32 %v1633_v56, %v2614_v42  ;;  %v1657_v63 = vsel %vm162_vm2, %v1647_v57, 0.0  ;;  %v1666_v39 = vsel %vm162_vm2, %v1648_v0, 0.0  ;;  %v1655_v40 = vmul.f32 %v1641_v30, %v2634_v26 }
 0x786   :  { %v1653_v62 = vmul.f32 %v1637_v58, %v2624_v43  ;;  %v1658_v2 = vsel %vm162_vm2, %v1649_v59, 0.0  ;;  %v1654_v4 = vmul.f32 %v1637_v58, %v2626_v45  ;;  %v1667_v5 = vsel %vm162_vm2, %v1650_v60, 0.0 }
 0x787   :  { %v1659_v29 = vadd.f32 %v1658_v2, %v1657_v63  ;;  %v1660_v24 = vsel %vm162_vm2, %v1651_v34, 0.0  ;;  %v1668_v25 = vadd.f32 %v1667_v5, %v1666_v39  ;;  %v1656_v42 = vmul.f32 %v1641_v30, %v2636_v48 }
 0x788   :  { %v1669_v43 = vsel %vm162_vm2, %v1652_v61, 0.0  ;;  %v1662_v6 = vsel %vm162_vm2, %v1653_v62, 0.0  ;;  %v1671_v45 = vsel %vm162_vm2, %v1654_v4, 0.0  ;;  %v1664_v9 = vsel %vm162_vm2, %v1655_v40, 0.0 }
 0x789   :  { %v1661_v32 = vadd.f32 %v1660_v24, %v1659_v29  ;;  %v1670_v7 = vadd.f32 %v1669_v43, %v1668_v25  ;;  %v1673_v26 = vsel %vm162_vm2, %v1656_v42, 0.0 }
 0x78b   :  { %v1663_v8 = vadd.f32 %v1662_v6, %v1661_v32  ;;  %v1672_v10 = vadd.f32 %v1671_v45, %v1670_v7 }
 0x78d   :  { %v1665_v55 = vadd.f32 %v1664_v9, %v1663_v8  ;;  %v1674_v11 = vadd.f32 %v1673_v26, %v1672_v10 }
 0x78f   :  { %1675 = vst.msk [vmem:[%s2702_s8] sm:$0xff] %vm162_vm2, %v1665_v55  ;;  %1676 = vst.msk [vmem:[%s2702_s8 + $0x8] sm:$0xff] %vm162_vm2, %v1674_v11 }

</bundles_post_ra>
